<compile_context>
chip_gen: v5e
topology: v5e:2x2
jax: 0.10.0
libtpu: 0.0.40
codegen_flags: <defaults>
</compile_context>

<pallas_src>
import math

import jax
import jax.numpy as jnp
from jax import lax
from jax.experimental import pallas as pl
from jax.experimental.pallas import tpu as pltpu


# ------------------------------ Pallas kernel ---------------------------------
def _make_hs_chain_kernel(ng, chunk, cpad, carry_pos, tap_offsets, p_pad, guard):
    """Fused per-batch-item kernel: all conv groups + folded BN + ReLU + carry."""
    carry_slots = cpad - chunk

    def kernel(mask_ref, x_ref, w_ref, o1_ref, o2_ref, carry_ref, xbig_ref):
        # mask_ref : (1, Pp)             f32, 1.0 at interior pixels of one image
        # x_ref    : (s, chunk, Lf)      bf16 chunks of this batch item (guarded)
        # w_ref    : (ng, cpad, 9*cpad)  bf16 packed weights (BN scale folded in)
        # o1_ref   : (ng, carry_pos, Pp) f32  -- y1 rows per group
        # o2_ref   : (carry_slots, Pp)   f32  -- last group's y2 rows
        # carry_ref: (carry_slots, Lf)   bf16 scratch, y2 carried between groups
        # xbig_ref : (9*cpad, Pp)        bf16 scratch, single-materialization im2col

        # Zero the carry (including the lane guards read by the taps) once per
        # batch item; no cross-grid-step state -> batch axis is truly parallel.
        carry_ref[...] = jnp.zeros_like(carry_ref)
        mask = mask_ref[...]                                   # (1, Pp) f32
        zero_carry_rows = jnp.zeros((carry_slots, p_pad), jnp.bfloat16)

        for g in range(ng):                                    # unrolled, serial carry
            # Build the 9-tap operand in ONE materialization: row k*cpad + ci of
            # xbig is input channel ci shifted by tap k.
            for k, off in enumerate(tap_offsets):
                r = k * cpad
                xbig_ref[r:r + chunk, :] = x_ref[g + 1, :, off:off + p_pad]
                if g == 0:
                    # Group 0 has no carried channels; keep the rows finite/zero
                    # (their weight columns are zero anyway).
                    xbig_ref[r + chunk:r + cpad, :] = zero_carry_rows
                else:
                    xbig_ref[r + chunk:r + cpad, :] = carry_ref[:, off:off + p_pad]

            # Single MXU contraction over K = 9*cpad, bf16 x bf16 -> f32.
            y = jnp.dot(w_ref[g], xbig_ref[...],
                        preferred_element_type=jnp.float32)    # (cpad, Pp) f32
            y = jnp.maximum(y, 0.0)

            # y1 rows straight to HBM (spatial padding is cropped by the wrapper,
            # so no mask on the output path).
            o1_ref[g] = y[0:carry_pos, :]

            if g < ng - 1:
                # y2 becomes the next group's carry; re-zero the padding columns
                # so the next conv sees proper zero padding at image borders.
                carry = y[carry_pos:carry_pos + carry_slots, :] * mask
                carry_ref[:, guard:guard + p_pad] = carry.astype(jnp.bfloat16)
            else:
                o2_ref[...] = y[carry_pos:carry_pos + carry_slots, :]

    return kernel


# ----------------------------- HSBlock wrapper ---------------------------------
def _torch_chunk_sizes(n, chunks):
    """Replicates torch.chunk sizes along a dim of length n."""
    size = math.ceil(n / chunks)
    sizes, rem = [], n
    while rem > 0:
        c = min(size, rem)
        sizes.append(c)
        rem -= c
    return sizes


class HSBlockPallas:
    def __init__(self, in_ch, s=8, key=None):
        if key is None:
            key = jax.random.PRNGKey(0)
        self.s = s
        self.chunk_sizes = _torch_chunk_sizes(in_ch, s)
        assert len(set(self.chunk_sizes)) == 1, (
            "fused kernel assumes uniform torch.chunk sizes (in_ch % s == 0)")
        # TODO(synk): ragged chunk sizes would need per-group channel offsets.
        self.chunk = self.chunk_sizes[0]
        self.n_groups = len(self.chunk_sizes) - 1       # conv groups (modules 1..s-1)

        # Channel bookkeeping, identical to the PyTorch module.
        couts = []
        for i in range(1, self.n_groups + 1):
            if i == 1:
                c = self.chunk_sizes[1]
            else:
                prev = couts[-1]
                c = (prev - math.ceil(prev / 2)) + self.chunk_sizes[i]
            couts.append(c)
        self.couts = couts
        self.c1 = [math.ceil(c / 2) for c in couts]          # first halves -> xs[0]
        self.c2 = [c - h for c, h in zip(couts, self.c1)]    # second halves -> carry

        # Padded channel layout inside the kernel:
        #   input rows  [0, chunk)                  : this group's chunk
        #   input rows  [chunk, cpad)               : carried y2 (zero padded)
        #   output rows [0, c1)                     : y1
        #   output rows [carry_pos, carry_pos+c2)   : y2 (next carry)
        self.cpad = 2 * self.chunk
        self.carry_pos = self.chunk
        assert max(self.c1) <= self.carry_pos
        assert max(self.c2) <= self.cpad - self.carry_pos

        # Eval-mode BN (gamma=1, beta=0, mean=0, var=1) folded to a scale.
        eps = 1e-5
        self.bn_scale = 1.0 / math.sqrt(1.0 + eps)

        keys = jax.random.split(key, self.n_groups)
        w_raw, w_big = [], []
        for g in range(self.n_groups):
            cout = couts[g]
            cin = self.chunk + (self.c2[g - 1] if g > 0 else 0)
            # Kaiming normal, fan_out, relu: std = sqrt(2 / (Cout*3*3)).
            std = math.sqrt(2.0 / (cout * 9))
            w = std * jax.random.normal(keys[g], (cout, cin, 3, 3), jnp.float32)
            w_raw.append(w)

            c1 = self.c1[g]
            wp = jnp.zeros((self.cpad, self.cpad, 3, 3), jnp.float32)
            wp = wp.at[0:c1, 0:cin].set(w[0:c1] * self.bn_scale)
            wp = wp.at[self.carry_pos:self.carry_pos + (cout - c1), 0:cin].set(
                w[c1:] * self.bn_scale)
            # (r, ci, kh, kw) -> (r, kh, kw, ci) -> (r, 9*cpad); column k*cpad + ci.
            w_big.append(
                jnp.transpose(wp, (0, 2, 3, 1)).reshape(self.cpad, 9 * self.cpad))

        self.w_raw = w_raw                                     # for the reference
        # bf16 MXU operands; accumulation stays f32 in the kernel.
        self.w_big = jnp.stack(w_big, axis=0).astype(jnp.bfloat16)

    def __call__(self, x_nchw):
        N, C, H, W = x_nchw.shape
        chunk, cpad, ng = self.chunk, self.cpad, self.n_groups
        carry_pos = self.carry_pos
        carry_slots = cpad - carry_pos
        n_chunks = len(self.chunk_sizes)
        Hp, Wp = H + 2, W + 2
        Pimg = Hp * Wp
        Pp = ((Pimg + 127) // 128) * 128        # lane-dense flattened spatial axis
        G = ((Wp + 1 + 127) // 128) * 128       # lane guard, 128-aligned, >= Wp+1
        Lf = Pp + 2 * G

        # Per-image channel-major flattened, zero-padded input (bf16) with lane
        # guards -- no transpose needed since the batch axis stays leading.
        xp = jnp.pad(x_nchw, ((0, 0), (0, 0), (1, 1), (1, 1)))
        xt = xp.reshape(N, C, Pimg).astype(jnp.bfloat16)
        xt = jnp.pad(xt, ((0, 0), (0, 0), (G, G + (Pp - Pimg))))
        x_in = xt.reshape(N, n_chunks, chunk, Lf)              # (N, s, chunk, Lf)

        # Interior (non-padding) pixel mask for one image, lane-padded with zeros.
        mask = jnp.zeros((Hp, Wp), jnp.float32).at[1:H + 1, 1:W + 1].set(1.0)
        mask = jnp.pad(mask.reshape(1, Pimg), ((0, 0), (0, Pp - Pimg)))

        # Tap k = kh*3 + kw reads flattened position p + (kh-1)*Wp + (kw-1);
        # with the guard the static slice start is G + (kh-1)*Wp + (kw-1).
        tap_offsets = tuple(G + (kh - 1) * Wp + (kw - 1)
                            for kh in range(3) for kw in range(3))

        kernel = _make_hs_chain_kernel(ng, chunk, cpad, carry_pos,
                                       tap_offsets, Pp, G)

        out1, out2 = pl.pallas_call(
            kernel,
            out_shape=(
                jax.ShapeDtypeStruct((N, ng, carry_pos, Pp), jnp.float32),
                jax.ShapeDtypeStruct((N, carry_slots, Pp), jnp.float32),
            ),
            grid=(N,),
            in_specs=[
                pl.BlockSpec((1, Pp), lambda n: (0, 0)),                       # mask
                pl.BlockSpec((None, n_chunks, chunk, Lf), lambda n: (n, 0, 0, 0)),
                pl.BlockSpec((ng, cpad, 9 * cpad), lambda n: (0, 0, 0)),       # weights
            ],
            out_specs=(
                pl.BlockSpec((None, ng, carry_pos, Pp), lambda n: (n, 0, 0, 0)),
                pl.BlockSpec((None, carry_slots, Pp), lambda n: (n, 0, 0)),
            ),
            scratch_shapes=[
                pltpu.VMEM((carry_slots, Lf), jnp.bfloat16),   # y2 carry
                pltpu.VMEM((9 * cpad, Pp), jnp.bfloat16),      # im2col operand
            ],
            compiler_params=pltpu.CompilerParams(
                # Batch items are independent (carry is per-image): let v7x's
                # second TensorCore take half of them; harmless on v5e/v6e.
                dimension_semantics=("parallel",)),
        )(mask, x_in, self.w_big)

        # Unflatten, crop padding, gather pieces; batch-major outputs mean no
        # per-group transposes and ONE concatenate at the end.
        out1 = out1[..., :Pimg].reshape(N, ng, carry_pos, Hp, Wp)[..., 1:H + 1, 1:W + 1]
        out2 = out2[..., :Pimg].reshape(N, carry_slots, Hp, Wp)[..., 1:H + 1, 1:W + 1]

        pieces = [x_nchw[:, 0:chunk]]                          # passthrough chunk 0
        for g in range(ng):
            pieces.append(out1[:, g, 0:self.c1[g]])            # y1 of group g
        pieces.append(out2[:, 0:self.c2[-1]])                  # y2 of the last group
        return jnp.concatenate(pieces, axis=1)                 # NCHW, in_ch channels


# ------------------------ pure-JAX reference (for checking) --------------------
def hs_block_reference(x, w_list, bn_scale, chunk_sizes):
    """Reference HSBlock forward mirroring the kernel's numerics: bf16 conv
    operands with f32 accumulation, bf16 inter-group carry, eval-mode BN folded
    into the weights as a scale."""
    xs, off = [], 0
    for c in chunk_sizes:
        xs.append(x[:, off:off + c])
        off += c
    n = len(xs)
    pieces = [xs[0]]
    carry = None
    for i in range(1, n):
        inp = xs[i].astype(jnp.bfloat16)
        if carry is not None:
            inp = jnp.concatenate([inp, carry], axis=1)
        w = (w_list[i - 1] * bn_scale).astype(jnp.bfloat16)
        y = lax.conv_general_dilated(
            inp, w, window_strides=(1, 1), padding=((1, 1), (1, 1)),
            dimension_numbers=("NCHW", "OIHW", "NCHW"),
            preferred_element_type=jnp.float32)
        y = jnp.maximum(y, 0.0)
        if i == n - 1:
            pieces.append(y)
        else:
            c1 = math.ceil(y.shape[1] / 2)
            pieces.append(y[:, :c1])
            carry = y[:, c1:].astype(jnp.bfloat16)
    return jnp.concatenate(pieces, axis=1)


# --------------------------------- main -----------------------------------------
if __name__ == "__main__":
    key = jax.random.PRNGKey(0)
    k_x, k_p = jax.random.split(key)

    in_ch, s = 32, 8
    N, H, W = 2, 16, 16
    x = jax.random.normal(k_x, (N, in_ch, H, W), jnp.float32)   # NCHW input

    block = HSBlockPallas(in_ch, s=s, key=k_p)
    fwd = jax.jit(lambda t: block(t))
    out = jax.block_until_ready(fwd(x))

    # HSBlock preserves the feature size: (N, in_ch, H, W).
    assert out.shape == (N, in_ch, H, W), out.shape
    assert bool(jnp.all(jnp.isfinite(out)))

    # Both paths use bf16 operands with f32 accumulation and a bf16 carried y2;
    # tolerance covers rare bf16 re-rounding flips of the carry between the two
    # implementations while still catching tap-offset / carry-indexing bugs.
    ref = hs_block_reference(x, block.w_raw, block.bn_scale, block.chunk_sizes)
    bad = jnp.abs(out - ref) > (2e-2 + 2e-2 * jnp.abs(ref))
    n_bad = int(jnp.sum(bad))
    assert n_bad == 0, f"{n_bad} elements mismatch the reference"

    print("KERNEL_OK")
</pallas_src>

<mosaic_0001>
module attributes {stable_mosaic.version = 11 : i64} {
  func.func @kernel(%arg0: i32, %arg1: memref<1x384xf32, #tpu.memory_space<vmem>>, %arg2: memref<1x8x4x640xbf16, #tpu.memory_space<vmem>>, %arg3: memref<7x8x72xbf16, #tpu.memory_space<vmem>>, %arg4: memref<1x7x4x384xf32, #tpu.memory_space<vmem>>, %arg5: memref<1x4x384xf32, #tpu.memory_space<vmem>>, %arg6: memref<4x640xbf16, #tpu.memory_space<vmem>>, %arg7: memref<72x384xbf16, #tpu.memory_space<vmem>>) attributes {dimension_semantics = [#tpu.dimension_semantics<parallel>], iteration_bounds = array<i64: 2>, scalar_prefetch = 0 : i64, scratch_operands = 2 : i64, tpu.core_type = #tpu.core_type<tc>, window_params = [{pipeline_mode = #tpu.pipeline_mode<synchronous>, transform_indices = @transform_0, window_bounds = array<i64: 1, 384>}, {transform_indices = @transform_1, window_bounds = array<i64: 1, 8, 4, 640>}, {pipeline_mode = #tpu.pipeline_mode<synchronous>, transform_indices = @transform_2, window_bounds = array<i64: 7, 8, 72>}, {transform_indices = @transform_3, window_bounds = array<i64: 1, 7, 4, 384>}, {transform_indices = @transform_4, window_bounds = array<i64: 1, 4, 384>}]} {
    %cst = arith.constant 0.000000e+00 : bf16
    %0 = vector.broadcast %cst : bf16 to vector<4x640xbf16>
    %c0 = arith.constant 0 : index
    %c0_0 = arith.constant 0 : index
    %1 = vector.load %arg6[%c0, %c0_0] : memref<4x640xbf16, #tpu.memory_space<vmem>>, vector<4x640xbf16>
    tpu.vector_store %arg6[%c0, %c0_0], %0 {strides = array<i32>} : memref<4x640xbf16, #tpu.memory_space<vmem>>, vector<4x640xbf16>,
    %c0_1 = arith.constant 0 : index
    %c0_2 = arith.constant 0 : index
    %2 = vector.load %arg1[%c0_1, %c0_2] : memref<1x384xf32, #tpu.memory_space<vmem>>, vector<1x384xf32>
    %cst_3 = arith.constant 0.000000e+00 : bf16
    %3 = vector.broadcast %cst_3 : bf16 to vector<4x384xbf16>
    %c0_4 = arith.constant 0 : index
    %c1 = arith.constant 1 : index
    %c0_5 = arith.constant 0 : index
    %c109 = arith.constant 109 : index
    %4 = vector.load %arg2[%c0_4, %c1, %c0_5, %c109] : memref<1x8x4x640xbf16, #tpu.memory_space<vmem>>, vector<1x1x4x384xbf16>
    %5 = vector.shape_cast %4 : vector<1x1x4x384xbf16> to vector<4x384xbf16>
    %c0_6 = arith.constant 0 : index
    %c0_7 = arith.constant 0 : index
    %6 = vector.load %arg7[%c0_6, %c0_7] : memref<72x384xbf16, #tpu.memory_space<vmem>>, vector<4x384xbf16>
    tpu.vector_store %arg7[%c0_6, %c0_7], %5 {strides = array<i32>} : memref<72x384xbf16, #tpu.memory_space<vmem>>, vector<4x384xbf16>,
    %c4 = arith.constant 4 : index
    %c0_8 = arith.constant 0 : index
    %7 = vector.load %arg7[%c4, %c0_8] : memref<72x384xbf16, #tpu.memory_space<vmem>>, vector<4x384xbf16>
    tpu.vector_store %arg7[%c4, %c0_8], %3 {strides = array<i32>} : memref<72x384xbf16, #tpu.memory_space<vmem>>, vector<4x384xbf16>,
    %c0_9 = arith.constant 0 : index
    %c1_10 = arith.constant 1 : index
    %c0_11 = arith.constant 0 : index
    %c110 = arith.constant 110 : index
    %8 = vector.load %arg2[%c0_9, %c1_10, %c0_11, %c110] : memref<1x8x4x640xbf16, #tpu.memory_space<vmem>>, vector<1x1x4x384xbf16>
    %9 = vector.shape_cast %8 : vector<1x1x4x384xbf16> to vector<4x384xbf16>
    %c8 = arith.constant 8 : index
    %c0_12 = arith.constant 0 : index
    %10 = vector.load %arg7[%c8, %c0_12] : memref<72x384xbf16, #tpu.memory_space<vmem>>, vector<4x384xbf16>
    tpu.vector_store %arg7[%c8, %c0_12], %9 {strides = array<i32>} : memref<72x384xbf16, #tpu.memory_space<vmem>>, vector<4x384xbf16>,
    %c12 = arith.constant 12 : index
    %c0_13 = arith.constant 0 : index
    %11 = vector.load %arg7[%c12, %c0_13] : memref<72x384xbf16, #tpu.memory_space<vmem>>, vector<4x384xbf16>
    tpu.vector_store %arg7[%c12, %c0_13], %3 {strides = array<i32>} : memref<72x384xbf16, #tpu.memory_space<vmem>>, vector<4x384xbf16>,
    %c0_14 = arith.constant 0 : index
    %c1_15 = arith.constant 1 : index
    %c0_16 = arith.constant 0 : index
    %c111 = arith.constant 111 : index
    %12 = vector.load %arg2[%c0_14, %c1_15, %c0_16, %c111] : memref<1x8x4x640xbf16, #tpu.memory_space<vmem>>, vector<1x1x4x384xbf16>
    %13 = vector.shape_cast %12 : vector<1x1x4x384xbf16> to vector<4x384xbf16>
    %c16 = arith.constant 16 : index
    %c0_17 = arith.constant 0 : index
    %14 = vector.load %arg7[%c16, %c0_17] : memref<72x384xbf16, #tpu.memory_space<vmem>>, vector<4x384xbf16>
    tpu.vector_store %arg7[%c16, %c0_17], %13 {strides = array<i32>} : memref<72x384xbf16, #tpu.memory_space<vmem>>, vector<4x384xbf16>,
    %c20 = arith.constant 20 : index
    %c0_18 = arith.constant 0 : index
    %15 = vector.load %arg7[%c20, %c0_18] : memref<72x384xbf16, #tpu.memory_space<vmem>>, vector<4x384xbf16>
    tpu.vector_store %arg7[%c20, %c0_18], %3 {strides = array<i32>} : memref<72x384xbf16, #tpu.memory_space<vmem>>, vector<4x384xbf16>,
    %c0_19 = arith.constant 0 : index
    %c1_20 = arith.constant 1 : index
    %c0_21 = arith.constant 0 : index
    %c127 = arith.constant 127 : index
    %16 = vector.load %arg2[%c0_19, %c1_20, %c0_21, %c127] : memref<1x8x4x640xbf16, #tpu.memory_space<vmem>>, vector<1x1x4x384xbf16>
    %17 = vector.shape_cast %16 : vector<1x1x4x384xbf16> to vector<4x384xbf16>
    %c24 = arith.constant 24 : index
    %c0_22 = arith.constant 0 : index
    %18 = vector.load %arg7[%c24, %c0_22] : memref<72x384xbf16, #tpu.memory_space<vmem>>, vector<4x384xbf16>
    tpu.vector_store %arg7[%c24, %c0_22], %17 {strides = array<i32>} : memref<72x384xbf16, #tpu.memory_space<vmem>>, vector<4x384xbf16>,
    %c28 = arith.constant 28 : index
    %c0_23 = arith.constant 0 : index
    %19 = vector.load %arg7[%c28, %c0_23] : memref<72x384xbf16, #tpu.memory_space<vmem>>, vector<4x384xbf16>
    tpu.vector_store %arg7[%c28, %c0_23], %3 {strides = array<i32>} : memref<72x384xbf16, #tpu.memory_space<vmem>>, vector<4x384xbf16>,
    %c0_24 = arith.constant 0 : index
    %c1_25 = arith.constant 1 : index
    %c0_26 = arith.constant 0 : index
    %c128 = arith.constant 128 : index
    %20 = vector.load %arg2[%c0_24, %c1_25, %c0_26, %c128] : memref<1x8x4x640xbf16, #tpu.memory_space<vmem>>, vector<1x1x4x384xbf16>
    %21 = vector.shape_cast %20 : vector<1x1x4x384xbf16> to vector<4x384xbf16>
    %c32 = arith.constant 32 : index
    %c0_27 = arith.constant 0 : index
    %22 = vector.load %arg7[%c32, %c0_27] : memref<72x384xbf16, #tpu.memory_space<vmem>>, vector<4x384xbf16>
    tpu.vector_store %arg7[%c32, %c0_27], %21 {strides = array<i32>} : memref<72x384xbf16, #tpu.memory_space<vmem>>, vector<4x384xbf16>,
    %c36 = arith.constant 36 : index
    %c0_28 = arith.constant 0 : index
    %23 = vector.load %arg7[%c36, %c0_28] : memref<72x384xbf16, #tpu.memory_space<vmem>>, vector<4x384xbf16>
    tpu.vector_store %arg7[%c36, %c0_28], %3 {strides = array<i32>} : memref<72x384xbf16, #tpu.memory_space<vmem>>, vector<4x384xbf16>,
    %c0_29 = arith.constant 0 : index
    %c1_30 = arith.constant 1 : index
    %c0_31 = arith.constant 0 : index
    %c129 = arith.constant 129 : index
    %24 = vector.load %arg2[%c0_29, %c1_30, %c0_31, %c129] : memref<1x8x4x640xbf16, #tpu.memory_space<vmem>>, vector<1x1x4x384xbf16>
    %25 = vector.shape_cast %24 : vector<1x1x4x384xbf16> to vector<4x384xbf16>
    %c40 = arith.constant 40 : index
    %c0_32 = arith.constant 0 : index
    %26 = vector.load %arg7[%c40, %c0_32] : memref<72x384xbf16, #tpu.memory_space<vmem>>, vector<4x384xbf16>
    tpu.vector_store %arg7[%c40, %c0_32], %25 {strides = array<i32>} : memref<72x384xbf16, #tpu.memory_space<vmem>>, vector<4x384xbf16>,
    %c44 = arith.constant 44 : index
    %c0_33 = arith.constant 0 : index
    %27 = vector.load %arg7[%c44, %c0_33] : memref<72x384xbf16, #tpu.memory_space<vmem>>, vector<4x384xbf16>
    tpu.vector_store %arg7[%c44, %c0_33], %3 {strides = array<i32>} : memref<72x384xbf16, #tpu.memory_space<vmem>>, vector<4x384xbf16>,
    %c0_34 = arith.constant 0 : index
    %c1_35 = arith.constant 1 : index
    %c0_36 = arith.constant 0 : index
    %c145 = arith.constant 145 : index
    %28 = vector.load %arg2[%c0_34, %c1_35, %c0_36, %c145] : memref<1x8x4x640xbf16, #tpu.memory_space<vmem>>, vector<1x1x4x384xbf16>
    %29 = vector.shape_cast %28 : vector<1x1x4x384xbf16> to vector<4x384xbf16>
    %c48 = arith.constant 48 : index
    %c0_37 = arith.constant 0 : index
    %30 = vector.load %arg7[%c48, %c0_37] : memref<72x384xbf16, #tpu.memory_space<vmem>>, vector<4x384xbf16>
    tpu.vector_store %arg7[%c48, %c0_37], %29 {strides = array<i32>} : memref<72x384xbf16, #tpu.memory_space<vmem>>, vector<4x384xbf16>,
    %c52 = arith.constant 52 : index
    %c0_38 = arith.constant 0 : index
    %31 = vector.load %arg7[%c52, %c0_38] : memref<72x384xbf16, #tpu.memory_space<vmem>>, vector<4x384xbf16>
    tpu.vector_store %arg7[%c52, %c0_38], %3 {strides = array<i32>} : memref<72x384xbf16, #tpu.memory_space<vmem>>, vector<4x384xbf16>,
    %c0_39 = arith.constant 0 : index
    %c1_40 = arith.constant 1 : index
    %c0_41 = arith.constant 0 : index
    %c146 = arith.constant 146 : index
    %32 = vector.load %arg2[%c0_39, %c1_40, %c0_41, %c146] : memref<1x8x4x640xbf16, #tpu.memory_space<vmem>>, vector<1x1x4x384xbf16>
    %33 = vector.shape_cast %32 : vector<1x1x4x384xbf16> to vector<4x384xbf16>
    %c56 = arith.constant 56 : index
    %c0_42 = arith.constant 0 : index
    %34 = vector.load %arg7[%c56, %c0_42] : memref<72x384xbf16, #tpu.memory_space<vmem>>, vector<4x384xbf16>
    tpu.vector_store %arg7[%c56, %c0_42], %33 {strides = array<i32>} : memref<72x384xbf16, #tpu.memory_space<vmem>>, vector<4x384xbf16>,
    %c60 = arith.constant 60 : index
    %c0_43 = arith.constant 0 : index
    %35 = vector.load %arg7[%c60, %c0_43] : memref<72x384xbf16, #tpu.memory_space<vmem>>, vector<4x384xbf16>
    tpu.vector_store %arg7[%c60, %c0_43], %3 {strides = array<i32>} : memref<72x384xbf16, #tpu.memory_space<vmem>>, vector<4x384xbf16>,
    %c0_44 = arith.constant 0 : index
    %c1_45 = arith.constant 1 : index
    %c0_46 = arith.constant 0 : index
    %c147 = arith.constant 147 : index
    %36 = vector.load %arg2[%c0_44, %c1_45, %c0_46, %c147] : memref<1x8x4x640xbf16, #tpu.memory_space<vmem>>, vector<1x1x4x384xbf16>
    %37 = vector.shape_cast %36 : vector<1x1x4x384xbf16> to vector<4x384xbf16>
    %c64 = arith.constant 64 : index
    %c0_47 = arith.constant 0 : index
    %38 = vector.load %arg7[%c64, %c0_47] : memref<72x384xbf16, #tpu.memory_space<vmem>>, vector<4x384xbf16>
    tpu.vector_store %arg7[%c64, %c0_47], %37 {strides = array<i32>} : memref<72x384xbf16, #tpu.memory_space<vmem>>, vector<4x384xbf16>,
    %c68 = arith.constant 68 : index
    %c0_48 = arith.constant 0 : index
    %39 = vector.load %arg7[%c68, %c0_48] : memref<72x384xbf16, #tpu.memory_space<vmem>>, vector<4x384xbf16>
    tpu.vector_store %arg7[%c68, %c0_48], %3 {strides = array<i32>} : memref<72x384xbf16, #tpu.memory_space<vmem>>, vector<4x384xbf16>,
    %c0_49 = arith.constant 0 : index
    %c0_50 = arith.constant 0 : index
    %c0_51 = arith.constant 0 : index
    %40 = vector.load %arg3[%c0_49, %c0_50, %c0_51] : memref<7x8x72xbf16, #tpu.memory_space<vmem>>, vector<1x8x72xbf16>
    %41 = vector.shape_cast %40 : vector<1x8x72xbf16> to vector<8x72xbf16>
    %c0_52 = arith.constant 0 : index
    %c0_53 = arith.constant 0 : index
    %42 = vector.load %arg7[%c0_52, %c0_53] : memref<72x384xbf16, #tpu.memory_space<vmem>>, vector<72x384xbf16>
    %cst_54 = arith.constant dense<0.000000e+00> : vector<8x384xf32>
    %43 = tpu.matmul %41, %42, %cst_54 {dimension_numbers = #tpu.dot_dimension_numbers<[1], [0], [0], [1], [0, 0, 1, 1], [], []>} : vector<8x72xbf16>, vector<72x384xbf16>, vector<8x384xf32> -> vector<8x384xf32>
    %cst_55 = arith.constant 0.000000e+00 : f32
    %44 = vector.broadcast %cst_55 : f32 to vector<8x384xf32>
    %45 = arith.maximumf %43, %44 : vector<8x384xf32>
    %46 = vector.extract_strided_slice %45 {offsets = [0, 0], sizes = [4, 384], strides = [1, 1]} : vector<8x384xf32> to vector<4x384xf32>
    %c0_56 = arith.constant 0 : index
    %c0_57 = arith.constant 0 : index
    %c0_58 = arith.constant 0 : index
    %c0_59 = arith.constant 0 : index
    %47 = vector.load %arg4[%c0_56, %c0_57, %c0_58, %c0_59] : memref<1x7x4x384xf32, #tpu.memory_space<vmem>>, vector<1x1x4x384xf32>
    %48 = vector.shape_cast %47 : vector<1x1x4x384xf32> to vector<4x384xf32>
    %49 = vector.shape_cast %46 : vector<4x384xf32> to vector<1x1x4x384xf32>
    tpu.vector_store %arg4[%c0_56, %c0_57, %c0_58, %c0_59], %49 {strides = array<i32>} : memref<1x7x4x384xf32, #tpu.memory_space<vmem>>, vector<1x1x4x384xf32>,
    %50 = vector.extract_strided_slice %45 {offsets = [4, 0], sizes = [4, 384], strides = [1, 1]} : vector<8x384xf32> to vector<4x384xf32>
    %51 = vector.broadcast %2 : vector<1x384xf32> to vector<4x384xf32>
    %52 = arith.mulf %50, %51 : vector<4x384xf32>
    %53 = arith.truncf %52 : vector<4x384xf32> to vector<4x384xbf16>
    %c0_60 = arith.constant 0 : index
    %c128_61 = arith.constant 128 : index
    %54 = vector.load %arg6[%c0_60, %c128_61] : memref<4x640xbf16, #tpu.memory_space<vmem>>, vector<4x384xbf16>
    tpu.vector_store %arg6[%c0_60, %c128_61], %53 {strides = array<i32>} : memref<4x640xbf16, #tpu.memory_space<vmem>>, vector<4x384xbf16>,
    %c0_62 = arith.constant 0 : index
    %c2 = arith.constant 2 : index
    %c0_63 = arith.constant 0 : index
    %c109_64 = arith.constant 109 : index
    %55 = vector.load %arg2[%c0_62, %c2, %c0_63, %c109_64] : memref<1x8x4x640xbf16, #tpu.memory_space<vmem>>, vector<1x1x4x384xbf16>
    %56 = vector.shape_cast %55 : vector<1x1x4x384xbf16> to vector<4x384xbf16>
    %c0_65 = arith.constant 0 : index
    %c0_66 = arith.constant 0 : index
    %57 = vector.load %arg7[%c0_65, %c0_66] : memref<72x384xbf16, #tpu.memory_space<vmem>>, vector<4x384xbf16>
    tpu.vector_store %arg7[%c0_65, %c0_66], %56 {strides = array<i32>} : memref<72x384xbf16, #tpu.memory_space<vmem>>, vector<4x384xbf16>,
    %c0_67 = arith.constant 0 : index
    %c109_68 = arith.constant 109 : index
    %58 = vector.load %arg6[%c0_67, %c109_68] : memref<4x640xbf16, #tpu.memory_space<vmem>>, vector<4x384xbf16>
    %c4_69 = arith.constant 4 : index
    %c0_70 = arith.constant 0 : index
    %59 = vector.load %arg7[%c4_69, %c0_70] : memref<72x384xbf16, #tpu.memory_space<vmem>>, vector<4x384xbf16>
    tpu.vector_store %arg7[%c4_69, %c0_70], %58 {strides = array<i32>} : memref<72x384xbf16, #tpu.memory_space<vmem>>, vector<4x384xbf16>,
    %c0_71 = arith.constant 0 : index
    %c2_72 = arith.constant 2 : index
    %c0_73 = arith.constant 0 : index
    %c110_74 = arith.constant 110 : index
    %60 = vector.load %arg2[%c0_71, %c2_72, %c0_73, %c110_74] : memref<1x8x4x640xbf16, #tpu.memory_space<vmem>>, vector<1x1x4x384xbf16>
    %61 = vector.shape_cast %60 : vector<1x1x4x384xbf16> to vector<4x384xbf16>
    %c8_75 = arith.constant 8 : index
    %c0_76 = arith.constant 0 : index
    %62 = vector.load %arg7[%c8_75, %c0_76] : memref<72x384xbf16, #tpu.memory_space<vmem>>, vector<4x384xbf16>
    tpu.vector_store %arg7[%c8_75, %c0_76], %61 {strides = array<i32>} : memref<72x384xbf16, #tpu.memory_space<vmem>>, vector<4x384xbf16>,
    %c0_77 = arith.constant 0 : index
    %c110_78 = arith.constant 110 : index
    %63 = vector.load %arg6[%c0_77, %c110_78] : memref<4x640xbf16, #tpu.memory_space<vmem>>, vector<4x384xbf16>
    %c12_79 = arith.constant 12 : index
    %c0_80 = arith.constant 0 : index
    %64 = vector.load %arg7[%c12_79, %c0_80] : memref<72x384xbf16, #tpu.memory_space<vmem>>, vector<4x384xbf16>
    tpu.vector_store %arg7[%c12_79, %c0_80], %63 {strides = array<i32>} : memref<72x384xbf16, #tpu.memory_space<vmem>>, vector<4x384xbf16>,
    %c0_81 = arith.constant 0 : index
    %c2_82 = arith.constant 2 : index
    %c0_83 = arith.constant 0 : index
    %c111_84 = arith.constant 111 : index
    %65 = vector.load %arg2[%c0_81, %c2_82, %c0_83, %c111_84] : memref<1x8x4x640xbf16, #tpu.memory_space<vmem>>, vector<1x1x4x384xbf16>
    %66 = vector.shape_cast %65 : vector<1x1x4x384xbf16> to vector<4x384xbf16>
    %c16_85 = arith.constant 16 : index
    %c0_86 = arith.constant 0 : index
    %67 = vector.load %arg7[%c16_85, %c0_86] : memref<72x384xbf16, #tpu.memory_space<vmem>>, vector<4x384xbf16>
    tpu.vector_store %arg7[%c16_85, %c0_86], %66 {strides = array<i32>} : memref<72x384xbf16, #tpu.memory_space<vmem>>, vector<4x384xbf16>,
    %c0_87 = arith.constant 0 : index
    %c111_88 = arith.constant 111 : index
    %68 = vector.load %arg6[%c0_87, %c111_88] : memref<4x640xbf16, #tpu.memory_space<vmem>>, vector<4x384xbf16>
    %c20_89 = arith.constant 20 : index
    %c0_90 = arith.constant 0 : index
    %69 = vector.load %arg7[%c20_89, %c0_90] : memref<72x384xbf16, #tpu.memory_space<vmem>>, vector<4x384xbf16>
    tpu.vector_store %arg7[%c20_89, %c0_90], %68 {strides = array<i32>} : memref<72x384xbf16, #tpu.memory_space<vmem>>, vector<4x384xbf16>,
    %c0_91 = arith.constant 0 : index
    %c2_92 = arith.constant 2 : index
    %c0_93 = arith.constant 0 : index
    %c127_94 = arith.constant 127 : index
    %70 = vector.load %arg2[%c0_91, %c2_92, %c0_93, %c127_94] : memref<1x8x4x640xbf16, #tpu.memory_space<vmem>>, vector<1x1x4x384xbf16>
    %71 = vector.shape_cast %70 : vector<1x1x4x384xbf16> to vector<4x384xbf16>
    %c24_95 = arith.constant 24 : index
    %c0_96 = arith.constant 0 : index
    %72 = vector.load %arg7[%c24_95, %c0_96] : memref<72x384xbf16, #tpu.memory_space<vmem>>, vector<4x384xbf16>
    tpu.vector_store %arg7[%c24_95, %c0_96], %71 {strides = array<i32>} : memref<72x384xbf16, #tpu.memory_space<vmem>>, vector<4x384xbf16>,
    %c0_97 = arith.constant 0 : index
    %c127_98 = arith.constant 127 : index
    %73 = vector.load %arg6[%c0_97, %c127_98] : memref<4x640xbf16, #tpu.memory_space<vmem>>, vector<4x384xbf16>
    %c28_99 = arith.constant 28 : index
    %c0_100 = arith.constant 0 : index
    %74 = vector.load %arg7[%c28_99, %c0_100] : memref<72x384xbf16, #tpu.memory_space<vmem>>, vector<4x384xbf16>
    tpu.vector_store %arg7[%c28_99, %c0_100], %73 {strides = array<i32>} : memref<72x384xbf16, #tpu.memory_space<vmem>>, vector<4x384xbf16>,
    %c0_101 = arith.constant 0 : index
    %c2_102 = arith.constant 2 : index
    %c0_103 = arith.constant 0 : index
    %c128_104 = arith.constant 128 : index
    %75 = vector.load %arg2[%c0_101, %c2_102, %c0_103, %c128_104] : memref<1x8x4x640xbf16, #tpu.memory_space<vmem>>, vector<1x1x4x384xbf16>
    %76 = vector.shape_cast %75 : vector<1x1x4x384xbf16> to vector<4x384xbf16>
    %c32_105 = arith.constant 32 : index
    %c0_106 = arith.constant 0 : index
    %77 = vector.load %arg7[%c32_105, %c0_106] : memref<72x384xbf16, #tpu.memory_space<vmem>>, vector<4x384xbf16>
    tpu.vector_store %arg7[%c32_105, %c0_106], %76 {strides = array<i32>} : memref<72x384xbf16, #tpu.memory_space<vmem>>, vector<4x384xbf16>,
    %c0_107 = arith.constant 0 : index
    %c128_108 = arith.constant 128 : index
    %78 = vector.load %arg6[%c0_107, %c128_108] : memref<4x640xbf16, #tpu.memory_space<vmem>>, vector<4x384xbf16>
    %c36_109 = arith.constant 36 : index
    %c0_110 = arith.constant 0 : index
    %79 = vector.load %arg7[%c36_109, %c0_110] : memref<72x384xbf16, #tpu.memory_space<vmem>>, vector<4x384xbf16>
    tpu.vector_store %arg7[%c36_109, %c0_110], %78 {strides = array<i32>} : memref<72x384xbf16, #tpu.memory_space<vmem>>, vector<4x384xbf16>,
    %c0_111 = arith.constant 0 : index
    %c2_112 = arith.constant 2 : index
    %c0_113 = arith.constant 0 : index
    %c129_114 = arith.constant 129 : index
    %80 = vector.load %arg2[%c0_111, %c2_112, %c0_113, %c129_114] : memref<1x8x4x640xbf16, #tpu.memory_space<vmem>>, vector<1x1x4x384xbf16>
    %81 = vector.shape_cast %80 : vector<1x1x4x384xbf16> to vector<4x384xbf16>
    %c40_115 = arith.constant 40 : index
    %c0_116 = arith.constant 0 : index
    %82 = vector.load %arg7[%c40_115, %c0_116] : memref<72x384xbf16, #tpu.memory_space<vmem>>, vector<4x384xbf16>
    tpu.vector_store %arg7[%c40_115, %c0_116], %81 {strides = array<i32>} : memref<72x384xbf16, #tpu.memory_space<vmem>>, vector<4x384xbf16>,
    %c0_117 = arith.constant 0 : index
    %c129_118 = arith.constant 129 : index
    %83 = vector.load %arg6[%c0_117, %c129_118] : memref<4x640xbf16, #tpu.memory_space<vmem>>, vector<4x384xbf16>
    %c44_119 = arith.constant 44 : index
    %c0_120 = arith.constant 0 : index
    %84 = vector.load %arg7[%c44_119, %c0_120] : memref<72x384xbf16, #tpu.memory_space<vmem>>, vector<4x384xbf16>
    tpu.vector_store %arg7[%c44_119, %c0_120], %83 {strides = array<i32>} : memref<72x384xbf16, #tpu.memory_space<vmem>>, vector<4x384xbf16>,
    %c0_121 = arith.constant 0 : index
    %c2_122 = arith.constant 2 : index
    %c0_123 = arith.constant 0 : index
    %c145_124 = arith.constant 145 : index
    %85 = vector.load %arg2[%c0_121, %c2_122, %c0_123, %c145_124] : memref<1x8x4x640xbf16, #tpu.memory_space<vmem>>, vector<1x1x4x384xbf16>
    %86 = vector.shape_cast %85 : vector<1x1x4x384xbf16> to vector<4x384xbf16>
    %c48_125 = arith.constant 48 : index
    %c0_126 = arith.constant 0 : index
    %87 = vector.load %arg7[%c48_125, %c0_126] : memref<72x384xbf16, #tpu.memory_space<vmem>>, vector<4x384xbf16>
    tpu.vector_store %arg7[%c48_125, %c0_126], %86 {strides = array<i32>} : memref<72x384xbf16, #tpu.memory_space<vmem>>, vector<4x384xbf16>,
    %c0_127 = arith.constant 0 : index
    %c145_128 = arith.constant 145 : index
    %88 = vector.load %arg6[%c0_127, %c145_128] : memref<4x640xbf16, #tpu.memory_space<vmem>>, vector<4x384xbf16>
    %c52_129 = arith.constant 52 : index
    %c0_130 = arith.constant 0 : index
    %89 = vector.load %arg7[%c52_129, %c0_130] : memref<72x384xbf16, #tpu.memory_space<vmem>>, vector<4x384xbf16>
    tpu.vector_store %arg7[%c52_129, %c0_130], %88 {strides = array<i32>} : memref<72x384xbf16, #tpu.memory_space<vmem>>, vector<4x384xbf16>,
    %c0_131 = arith.constant 0 : index
    %c2_132 = arith.constant 2 : index
    %c0_133 = arith.constant 0 : index
    %c146_134 = arith.constant 146 : index
    %90 = vector.load %arg2[%c0_131, %c2_132, %c0_133, %c146_134] : memref<1x8x4x640xbf16, #tpu.memory_space<vmem>>, vector<1x1x4x384xbf16>
    %91 = vector.shape_cast %90 : vector<1x1x4x384xbf16> to vector<4x384xbf16>
    %c56_135 = arith.constant 56 : index
    %c0_136 = arith.constant 0 : index
    %92 = vector.load %arg7[%c56_135, %c0_136] : memref<72x384xbf16, #tpu.memory_space<vmem>>, vector<4x384xbf16>
    tpu.vector_store %arg7[%c56_135, %c0_136], %91 {strides = array<i32>} : memref<72x384xbf16, #tpu.memory_space<vmem>>, vector<4x384xbf16>,
    %c0_137 = arith.constant 0 : index
    %c146_138 = arith.constant 146 : index
    %93 = vector.load %arg6[%c0_137, %c146_138] : memref<4x640xbf16, #tpu.memory_space<vmem>>, vector<4x384xbf16>
    %c60_139 = arith.constant 60 : index
    %c0_140 = arith.constant 0 : index
    %94 = vector.load %arg7[%c60_139, %c0_140] : memref<72x384xbf16, #tpu.memory_space<vmem>>, vector<4x384xbf16>
    tpu.vector_store %arg7[%c60_139, %c0_140], %93 {strides = array<i32>} : memref<72x384xbf16, #tpu.memory_space<vmem>>, vector<4x384xbf16>,
    %c0_141 = arith.constant 0 : index
    %c2_142 = arith.constant 2 : index
    %c0_143 = arith.constant 0 : index
    %c147_144 = arith.constant 147 : index
    %95 = vector.load %arg2[%c0_141, %c2_142, %c0_143, %c147_144] : memref<1x8x4x640xbf16, #tpu.memory_space<vmem>>, vector<1x1x4x384xbf16>
    %96 = vector.shape_cast %95 : vector<1x1x4x384xbf16> to vector<4x384xbf16>
    %c64_145 = arith.constant 64 : index
    %c0_146 = arith.constant 0 : index
    %97 = vector.load %arg7[%c64_145, %c0_146] : memref<72x384xbf16, #tpu.memory_space<vmem>>, vector<4x384xbf16>
    tpu.vector_store %arg7[%c64_145, %c0_146], %96 {strides = array<i32>} : memref<72x384xbf16, #tpu.memory_space<vmem>>, vector<4x384xbf16>,
    %c0_147 = arith.constant 0 : index
    %c147_148 = arith.constant 147 : index
    %98 = vector.load %arg6[%c0_147, %c147_148] : memref<4x640xbf16, #tpu.memory_space<vmem>>, vector<4x384xbf16>
    %c68_149 = arith.constant 68 : index
    %c0_150 = arith.constant 0 : index
    %99 = vector.load %arg7[%c68_149, %c0_150] : memref<72x384xbf16, #tpu.memory_space<vmem>>, vector<4x384xbf16>
    tpu.vector_store %arg7[%c68_149, %c0_150], %98 {strides = array<i32>} : memref<72x384xbf16, #tpu.memory_space<vmem>>, vector<4x384xbf16>,
    %c1_151 = arith.constant 1 : index
    %c0_152 = arith.constant 0 : index
    %c0_153 = arith.constant 0 : index
    %100 = vector.load %arg3[%c1_151, %c0_152, %c0_153] : memref<7x8x72xbf16, #tpu.memory_space<vmem>>, vector<1x8x72xbf16>
    %101 = vector.shape_cast %100 : vector<1x8x72xbf16> to vector<8x72xbf16>
    %c0_154 = arith.constant 0 : index
    %c0_155 = arith.constant 0 : index
    %102 = vector.load %arg7[%c0_154, %c0_155] : memref<72x384xbf16, #tpu.memory_space<vmem>>, vector<72x384xbf16>
    %cst_156 = arith.constant dense<0.000000e+00> : vector<8x384xf32>
    %103 = tpu.matmul %101, %102, %cst_156 {dimension_numbers = #tpu.dot_dimension_numbers<[1], [0], [0], [1], [0, 0, 1, 1], [], []>} : vector<8x72xbf16>, vector<72x384xbf16>, vector<8x384xf32> -> vector<8x384xf32>
    %cst_157 = arith.constant 0.000000e+00 : f32
    %104 = vector.broadcast %cst_157 : f32 to vector<8x384xf32>
    %105 = arith.maximumf %103, %104 : vector<8x384xf32>
    %106 = vector.extract_strided_slice %105 {offsets = [0, 0], sizes = [4, 384], strides = [1, 1]} : vector<8x384xf32> to vector<4x384xf32>
    %c0_158 = arith.constant 0 : index
    %c1_159 = arith.constant 1 : index
    %c0_160 = arith.constant 0 : index
    %c0_161 = arith.constant 0 : index
    %107 = vector.load %arg4[%c0_158, %c1_159, %c0_160, %c0_161] : memref<1x7x4x384xf32, #tpu.memory_space<vmem>>, vector<1x1x4x384xf32>
    %108 = vector.shape_cast %107 : vector<1x1x4x384xf32> to vector<4x384xf32>
    %109 = vector.shape_cast %106 : vector<4x384xf32> to vector<1x1x4x384xf32>
    tpu.vector_store %arg4[%c0_158, %c1_159, %c0_160, %c0_161], %109 {strides = array<i32>} : memref<1x7x4x384xf32, #tpu.memory_space<vmem>>, vector<1x1x4x384xf32>,
    %110 = vector.extract_strided_slice %105 {offsets = [4, 0], sizes = [4, 384], strides = [1, 1]} : vector<8x384xf32> to vector<4x384xf32>
    %111 = vector.broadcast %2 : vector<1x384xf32> to vector<4x384xf32>
    %112 = arith.mulf %110, %111 : vector<4x384xf32>
    %113 = arith.truncf %112 : vector<4x384xf32> to vector<4x384xbf16>
    %c0_162 = arith.constant 0 : index
    %c128_163 = arith.constant 128 : index
    %114 = vector.load %arg6[%c0_162, %c128_163] : memref<4x640xbf16, #tpu.memory_space<vmem>>, vector<4x384xbf16>
    tpu.vector_store %arg6[%c0_162, %c128_163], %113 {strides = array<i32>} : memref<4x640xbf16, #tpu.memory_space<vmem>>, vector<4x384xbf16>,
    %c0_164 = arith.constant 0 : index
    %c3 = arith.constant 3 : index
    %c0_165 = arith.constant 0 : index
    %c109_166 = arith.constant 109 : index
    %115 = vector.load %arg2[%c0_164, %c3, %c0_165, %c109_166] : memref<1x8x4x640xbf16, #tpu.memory_space<vmem>>, vector<1x1x4x384xbf16>
    %116 = vector.shape_cast %115 : vector<1x1x4x384xbf16> to vector<4x384xbf16>
    %c0_167 = arith.constant 0 : index
    %c0_168 = arith.constant 0 : index
    %117 = vector.load %arg7[%c0_167, %c0_168] : memref<72x384xbf16, #tpu.memory_space<vmem>>, vector<4x384xbf16>
    tpu.vector_store %arg7[%c0_167, %c0_168], %116 {strides = array<i32>} : memref<72x384xbf16, #tpu.memory_space<vmem>>, vector<4x384xbf16>,
    %c0_169 = arith.constant 0 : index
    %c109_170 = arith.constant 109 : index
    %118 = vector.load %arg6[%c0_169, %c109_170] : memref<4x640xbf16, #tpu.memory_space<vmem>>, vector<4x384xbf16>
    %c4_171 = arith.constant 4 : index
    %c0_172 = arith.constant 0 : index
    %119 = vector.load %arg7[%c4_171, %c0_172] : memref<72x384xbf16, #tpu.memory_space<vmem>>, vector<4x384xbf16>
    tpu.vector_store %arg7[%c4_171, %c0_172], %118 {strides = array<i32>} : memref<72x384xbf16, #tpu.memory_space<vmem>>, vector<4x384xbf16>,
    %c0_173 = arith.constant 0 : index
    %c3_174 = arith.constant 3 : index
    %c0_175 = arith.constant 0 : index
    %c110_176 = arith.constant 110 : index
    %120 = vector.load %arg2[%c0_173, %c3_174, %c0_175, %c110_176] : memref<1x8x4x640xbf16, #tpu.memory_space<vmem>>, vector<1x1x4x384xbf16>
    %121 = vector.shape_cast %120 : vector<1x1x4x384xbf16> to vector<4x384xbf16>
    %c8_177 = arith.constant 8 : index
    %c0_178 = arith.constant 0 : index
    %122 = vector.load %arg7[%c8_177, %c0_178] : memref<72x384xbf16, #tpu.memory_space<vmem>>, vector<4x384xbf16>
    tpu.vector_store %arg7[%c8_177, %c0_178], %121 {strides = array<i32>} : memref<72x384xbf16, #tpu.memory_space<vmem>>, vector<4x384xbf16>,
    %c0_179 = arith.constant 0 : index
    %c110_180 = arith.constant 110 : index
    %123 = vector.load %arg6[%c0_179, %c110_180] : memref<4x640xbf16, #tpu.memory_space<vmem>>, vector<4x384xbf16>
    %c12_181 = arith.constant 12 : index
    %c0_182 = arith.constant 0 : index
    %124 = vector.load %arg7[%c12_181, %c0_182] : memref<72x384xbf16, #tpu.memory_space<vmem>>, vector<4x384xbf16>
    tpu.vector_store %arg7[%c12_181, %c0_182], %123 {strides = array<i32>} : memref<72x384xbf16, #tpu.memory_space<vmem>>, vector<4x384xbf16>,
    %c0_183 = arith.constant 0 : index
    %c3_184 = arith.constant 3 : index
    %c0_185 = arith.constant 0 : index
    %c111_186 = arith.constant 111 : index
    %125 = vector.load %arg2[%c0_183, %c3_184, %c0_185, %c111_186] : memref<1x8x4x640xbf16, #tpu.memory_space<vmem>>, vector<1x1x4x384xbf16>
    %126 = vector.shape_cast %125 : vector<1x1x4x384xbf16> to vector<4x384xbf16>
    %c16_187 = arith.constant 16 : index
    %c0_188 = arith.constant 0 : index
    %127 = vector.load %arg7[%c16_187, %c0_188] : memref<72x384xbf16, #tpu.memory_space<vmem>>, vector<4x384xbf16>
    tpu.vector_store %arg7[%c16_187, %c0_188], %126 {strides = array<i32>} : memref<72x384xbf16, #tpu.memory_space<vmem>>, vector<4x384xbf16>,
    %c0_189 = arith.constant 0 : index
    %c111_190 = arith.constant 111 : index
    %128 = vector.load %arg6[%c0_189, %c111_190] : memref<4x640xbf16, #tpu.memory_space<vmem>>, vector<4x384xbf16>
    %c20_191 = arith.constant 20 : index
    %c0_192 = arith.constant 0 : index
    %129 = vector.load %arg7[%c20_191, %c0_192] : memref<72x384xbf16, #tpu.memory_space<vmem>>, vector<4x384xbf16>
    tpu.vector_store %arg7[%c20_191, %c0_192], %128 {strides = array<i32>} : memref<72x384xbf16, #tpu.memory_space<vmem>>, vector<4x384xbf16>,
    %c0_193 = arith.constant 0 : index
    %c3_194 = arith.constant 3 : index
    %c0_195 = arith.constant 0 : index
    %c127_196 = arith.constant 127 : index
    %130 = vector.load %arg2[%c0_193, %c3_194, %c0_195, %c127_196] : memref<1x8x4x640xbf16, #tpu.memory_space<vmem>>, vector<1x1x4x384xbf16>
    %131 = vector.shape_cast %130 : vector<1x1x4x384xbf16> to vector<4x384xbf16>
    %c24_197 = arith.constant 24 : index
    %c0_198 = arith.constant 0 : index
    %132 = vector.load %arg7[%c24_197, %c0_198] : memref<72x384xbf16, #tpu.memory_space<vmem>>, vector<4x384xbf16>
    tpu.vector_store %arg7[%c24_197, %c0_198], %131 {strides = array<i32>} : memref<72x384xbf16, #tpu.memory_space<vmem>>, vector<4x384xbf16>,
    %c0_199 = arith.constant 0 : index
    %c127_200 = arith.constant 127 : index
    %133 = vector.load %arg6[%c0_199, %c127_200] : memref<4x640xbf16, #tpu.memory_space<vmem>>, vector<4x384xbf16>
    %c28_201 = arith.constant 28 : index
    %c0_202 = arith.constant 0 : index
    %134 = vector.load %arg7[%c28_201, %c0_202] : memref<72x384xbf16, #tpu.memory_space<vmem>>, vector<4x384xbf16>
    tpu.vector_store %arg7[%c28_201, %c0_202], %133 {strides = array<i32>} : memref<72x384xbf16, #tpu.memory_space<vmem>>, vector<4x384xbf16>,
    %c0_203 = arith.constant 0 : index
    %c3_204 = arith.constant 3 : index
    %c0_205 = arith.constant 0 : index
    %c128_206 = arith.constant 128 : index
    %135 = vector.load %arg2[%c0_203, %c3_204, %c0_205, %c128_206] : memref<1x8x4x640xbf16, #tpu.memory_space<vmem>>, vector<1x1x4x384xbf16>
    %136 = vector.shape_cast %135 : vector<1x1x4x384xbf16> to vector<4x384xbf16>
    %c32_207 = arith.constant 32 : index
    %c0_208 = arith.constant 0 : index
    %137 = vector.load %arg7[%c32_207, %c0_208] : memref<72x384xbf16, #tpu.memory_space<vmem>>, vector<4x384xbf16>
    tpu.vector_store %arg7[%c32_207, %c0_208], %136 {strides = array<i32>} : memref<72x384xbf16, #tpu.memory_space<vmem>>, vector<4x384xbf16>,
    %c0_209 = arith.constant 0 : index
    %c128_210 = arith.constant 128 : index
    %138 = vector.load %arg6[%c0_209, %c128_210] : memref<4x640xbf16, #tpu.memory_space<vmem>>, vector<4x384xbf16>
    %c36_211 = arith.constant 36 : index
    %c0_212 = arith.constant 0 : index
    %139 = vector.load %arg7[%c36_211, %c0_212] : memref<72x384xbf16, #tpu.memory_space<vmem>>, vector<4x384xbf16>
    tpu.vector_store %arg7[%c36_211, %c0_212], %138 {strides = array<i32>} : memref<72x384xbf16, #tpu.memory_space<vmem>>, vector<4x384xbf16>,
    %c0_213 = arith.constant 0 : index
    %c3_214 = arith.constant 3 : index
    %c0_215 = arith.constant 0 : index
    %c129_216 = arith.constant 129 : index
    %140 = vector.load %arg2[%c0_213, %c3_214, %c0_215, %c129_216] : memref<1x8x4x640xbf16, #tpu.memory_space<vmem>>, vector<1x1x4x384xbf16>
    %141 = vector.shape_cast %140 : vector<1x1x4x384xbf16> to vector<4x384xbf16>
    %c40_217 = arith.constant 40 : index
    %c0_218 = arith.constant 0 : index
    %142 = vector.load %arg7[%c40_217, %c0_218] : memref<72x384xbf16, #tpu.memory_space<vmem>>, vector<4x384xbf16>
    tpu.vector_store %arg7[%c40_217, %c0_218], %141 {strides = array<i32>} : memref<72x384xbf16, #tpu.memory_space<vmem>>, vector<4x384xbf16>,
    %c0_219 = arith.constant 0 : index
    %c129_220 = arith.constant 129 : index
    %143 = vector.load %arg6[%c0_219, %c129_220] : memref<4x640xbf16, #tpu.memory_space<vmem>>, vector<4x384xbf16>
    %c44_221 = arith.constant 44 : index
    %c0_222 = arith.constant 0 : index
    %144 = vector.load %arg7[%c44_221, %c0_222] : memref<72x384xbf16, #tpu.memory_space<vmem>>, vector<4x384xbf16>
    tpu.vector_store %arg7[%c44_221, %c0_222], %143 {strides = array<i32>} : memref<72x384xbf16, #tpu.memory_space<vmem>>, vector<4x384xbf16>,
    %c0_223 = arith.constant 0 : index
    %c3_224 = arith.constant 3 : index
    %c0_225 = arith.constant 0 : index
    %c145_226 = arith.constant 145 : index
    %145 = vector.load %arg2[%c0_223, %c3_224, %c0_225, %c145_226] : memref<1x8x4x640xbf16, #tpu.memory_space<vmem>>, vector<1x1x4x384xbf16>
    %146 = vector.shape_cast %145 : vector<1x1x4x384xbf16> to vector<4x384xbf16>
    %c48_227 = arith.constant 48 : index
    %c0_228 = arith.constant 0 : index
    %147 = vector.load %arg7[%c48_227, %c0_228] : memref<72x384xbf16, #tpu.memory_space<vmem>>, vector<4x384xbf16>
    tpu.vector_store %arg7[%c48_227, %c0_228], %146 {strides = array<i32>} : memref<72x384xbf16, #tpu.memory_space<vmem>>, vector<4x384xbf16>,
    %c0_229 = arith.constant 0 : index
    %c145_230 = arith.constant 145 : index
    %148 = vector.load %arg6[%c0_229, %c145_230] : memref<4x640xbf16, #tpu.memory_space<vmem>>, vector<4x384xbf16>
    %c52_231 = arith.constant 52 : index
    %c0_232 = arith.constant 0 : index
    %149 = vector.load %arg7[%c52_231, %c0_232] : memref<72x384xbf16, #tpu.memory_space<vmem>>, vector<4x384xbf16>
    tpu.vector_store %arg7[%c52_231, %c0_232], %148 {strides = array<i32>} : memref<72x384xbf16, #tpu.memory_space<vmem>>, vector<4x384xbf16>,
    %c0_233 = arith.constant 0 : index
    %c3_234 = arith.constant 3 : index
    %c0_235 = arith.constant 0 : index
    %c146_236 = arith.constant 146 : index
    %150 = vector.load %arg2[%c0_233, %c3_234, %c0_235, %c146_236] : memref<1x8x4x640xbf16, #tpu.memory_space<vmem>>, vector<1x1x4x384xbf16>
    %151 = vector.shape_cast %150 : vector<1x1x4x384xbf16> to vector<4x384xbf16>
    %c56_237 = arith.constant 56 : index
    %c0_238 = arith.constant 0 : index
    %152 = vector.load %arg7[%c56_237, %c0_238] : memref<72x384xbf16, #tpu.memory_space<vmem>>, vector<4x384xbf16>
    tpu.vector_store %arg7[%c56_237, %c0_238], %151 {strides = array<i32>} : memref<72x384xbf16, #tpu.memory_space<vmem>>, vector<4x384xbf16>,
    %c0_239 = arith.constant 0 : index
    %c146_240 = arith.constant 146 : index
    %153 = vector.load %arg6[%c0_239, %c146_240] : memref<4x640xbf16, #tpu.memory_space<vmem>>, vector<4x384xbf16>
    %c60_241 = arith.constant 60 : index
    %c0_242 = arith.constant 0 : index
    %154 = vector.load %arg7[%c60_241, %c0_242] : memref<72x384xbf16, #tpu.memory_space<vmem>>, vector<4x384xbf16>
    tpu.vector_store %arg7[%c60_241, %c0_242], %153 {strides = array<i32>} : memref<72x384xbf16, #tpu.memory_space<vmem>>, vector<4x384xbf16>,
    %c0_243 = arith.constant 0 : index
    %c3_244 = arith.constant 3 : index
    %c0_245 = arith.constant 0 : index
    %c147_246 = arith.constant 147 : index
    %155 = vector.load %arg2[%c0_243, %c3_244, %c0_245, %c147_246] : memref<1x8x4x640xbf16, #tpu.memory_space<vmem>>, vector<1x1x4x384xbf16>
    %156 = vector.shape_cast %155 : vector<1x1x4x384xbf16> to vector<4x384xbf16>
    %c64_247 = arith.constant 64 : index
    %c0_248 = arith.constant 0 : index
    %157 = vector.load %arg7[%c64_247, %c0_248] : memref<72x384xbf16, #tpu.memory_space<vmem>>, vector<4x384xbf16>
    tpu.vector_store %arg7[%c64_247, %c0_248], %156 {strides = array<i32>} : memref<72x384xbf16, #tpu.memory_space<vmem>>, vector<4x384xbf16>,
    %c0_249 = arith.constant 0 : index
    %c147_250 = arith.constant 147 : index
    %158 = vector.load %arg6[%c0_249, %c147_250] : memref<4x640xbf16, #tpu.memory_space<vmem>>, vector<4x384xbf16>
    %c68_251 = arith.constant 68 : index
    %c0_252 = arith.constant 0 : index
    %159 = vector.load %arg7[%c68_251, %c0_252] : memref<72x384xbf16, #tpu.memory_space<vmem>>, vector<4x384xbf16>
    tpu.vector_store %arg7[%c68_251, %c0_252], %158 {strides = array<i32>} : memref<72x384xbf16, #tpu.memory_space<vmem>>, vector<4x384xbf16>,
    %c2_253 = arith.constant 2 : index
    %c0_254 = arith.constant 0 : index
    %c0_255 = arith.constant 0 : index
    %160 = vector.load %arg3[%c2_253, %c0_254, %c0_255] : memref<7x8x72xbf16, #tpu.memory_space<vmem>>, vector<1x8x72xbf16>
    %161 = vector.shape_cast %160 : vector<1x8x72xbf16> to vector<8x72xbf16>
    %c0_256 = arith.constant 0 : index
    %c0_257 = arith.constant 0 : index
    %162 = vector.load %arg7[%c0_256, %c0_257] : memref<72x384xbf16, #tpu.memory_space<vmem>>, vector<72x384xbf16>
    %cst_258 = arith.constant dense<0.000000e+00> : vector<8x384xf32>
    %163 = tpu.matmul %161, %162, %cst_258 {dimension_numbers = #tpu.dot_dimension_numbers<[1], [0], [0], [1], [0, 0, 1, 1], [], []>} : vector<8x72xbf16>, vector<72x384xbf16>, vector<8x384xf32> -> vector<8x384xf32>
    %cst_259 = arith.constant 0.000000e+00 : f32
    %164 = vector.broadcast %cst_259 : f32 to vector<8x384xf32>
    %165 = arith.maximumf %163, %164 : vector<8x384xf32>
    %166 = vector.extract_strided_slice %165 {offsets = [0, 0], sizes = [4, 384], strides = [1, 1]} : vector<8x384xf32> to vector<4x384xf32>
    %c0_260 = arith.constant 0 : index
    %c2_261 = arith.constant 2 : index
    %c0_262 = arith.constant 0 : index
    %c0_263 = arith.constant 0 : index
    %167 = vector.load %arg4[%c0_260, %c2_261, %c0_262, %c0_263] : memref<1x7x4x384xf32, #tpu.memory_space<vmem>>, vector<1x1x4x384xf32>
    %168 = vector.shape_cast %167 : vector<1x1x4x384xf32> to vector<4x384xf32>
    %169 = vector.shape_cast %166 : vector<4x384xf32> to vector<1x1x4x384xf32>
    tpu.vector_store %arg4[%c0_260, %c2_261, %c0_262, %c0_263], %169 {strides = array<i32>} : memref<1x7x4x384xf32, #tpu.memory_space<vmem>>, vector<1x1x4x384xf32>,
    %170 = vector.extract_strided_slice %165 {offsets = [4, 0], sizes = [4, 384], strides = [1, 1]} : vector<8x384xf32> to vector<4x384xf32>
    %171 = vector.broadcast %2 : vector<1x384xf32> to vector<4x384xf32>
    %172 = arith.mulf %170, %171 : vector<4x384xf32>
    %173 = arith.truncf %172 : vector<4x384xf32> to vector<4x384xbf16>
    %c0_264 = arith.constant 0 : index
    %c128_265 = arith.constant 128 : index
    %174 = vector.load %arg6[%c0_264, %c128_265] : memref<4x640xbf16, #tpu.memory_space<vmem>>, vector<4x384xbf16>
    tpu.vector_store %arg6[%c0_264, %c128_265], %173 {strides = array<i32>} : memref<4x640xbf16, #tpu.memory_space<vmem>>, vector<4x384xbf16>,
    %c0_266 = arith.constant 0 : index
    %c4_267 = arith.constant 4 : index
    %c0_268 = arith.constant 0 : index
    %c109_269 = arith.constant 109 : index
    %175 = vector.load %arg2[%c0_266, %c4_267, %c0_268, %c109_269] : memref<1x8x4x640xbf16, #tpu.memory_space<vmem>>, vector<1x1x4x384xbf16>
    %176 = vector.shape_cast %175 : vector<1x1x4x384xbf16> to vector<4x384xbf16>
    %c0_270 = arith.constant 0 : index
    %c0_271 = arith.constant 0 : index
    %177 = vector.load %arg7[%c0_270, %c0_271] : memref<72x384xbf16, #tpu.memory_space<vmem>>, vector<4x384xbf16>
    tpu.vector_store %arg7[%c0_270, %c0_271], %176 {strides = array<i32>} : memref<72x384xbf16, #tpu.memory_space<vmem>>, vector<4x384xbf16>,
    %c0_272 = arith.constant 0 : index
    %c109_273 = arith.constant 109 : index
    %178 = vector.load %arg6[%c0_272, %c109_273] : memref<4x640xbf16, #tpu.memory_space<vmem>>, vector<4x384xbf16>
    %c4_274 = arith.constant 4 : index
    %c0_275 = arith.constant 0 : index
    %179 = vector.load %arg7[%c4_274, %c0_275] : memref<72x384xbf16, #tpu.memory_space<vmem>>, vector<4x384xbf16>
    tpu.vector_store %arg7[%c4_274, %c0_275], %178 {strides = array<i32>} : memref<72x384xbf16, #tpu.memory_space<vmem>>, vector<4x384xbf16>,
    %c0_276 = arith.constant 0 : index
    %c4_277 = arith.constant 4 : index
    %c0_278 = arith.constant 0 : index
    %c110_279 = arith.constant 110 : index
    %180 = vector.load %arg2[%c0_276, %c4_277, %c0_278, %c110_279] : memref<1x8x4x640xbf16, #tpu.memory_space<vmem>>, vector<1x1x4x384xbf16>
    %181 = vector.shape_cast %180 : vector<1x1x4x384xbf16> to vector<4x384xbf16>
    %c8_280 = arith.constant 8 : index
    %c0_281 = arith.constant 0 : index
    %182 = vector.load %arg7[%c8_280, %c0_281] : memref<72x384xbf16, #tpu.memory_space<vmem>>, vector<4x384xbf16>
    tpu.vector_store %arg7[%c8_280, %c0_281], %181 {strides = array<i32>} : memref<72x384xbf16, #tpu.memory_space<vmem>>, vector<4x384xbf16>,
    %c0_282 = arith.constant 0 : index
    %c110_283 = arith.constant 110 : index
    %183 = vector.load %arg6[%c0_282, %c110_283] : memref<4x640xbf16, #tpu.memory_space<vmem>>, vector<4x384xbf16>
    %c12_284 = arith.constant 12 : index
    %c0_285 = arith.constant 0 : index
    %184 = vector.load %arg7[%c12_284, %c0_285] : memref<72x384xbf16, #tpu.memory_space<vmem>>, vector<4x384xbf16>
    tpu.vector_store %arg7[%c12_284, %c0_285], %183 {strides = array<i32>} : memref<72x384xbf16, #tpu.memory_space<vmem>>, vector<4x384xbf16>,
    %c0_286 = arith.constant 0 : index
    %c4_287 = arith.constant 4 : index
    %c0_288 = arith.constant 0 : index
    %c111_289 = arith.constant 111 : index
    %185 = vector.load %arg2[%c0_286, %c4_287, %c0_288, %c111_289] : memref<1x8x4x640xbf16, #tpu.memory_space<vmem>>, vector<1x1x4x384xbf16>
    %186 = vector.shape_cast %185 : vector<1x1x4x384xbf16> to vector<4x384xbf16>
    %c16_290 = arith.constant 16 : index
    %c0_291 = arith.constant 0 : index
    %187 = vector.load %arg7[%c16_290, %c0_291] : memref<72x384xbf16, #tpu.memory_space<vmem>>, vector<4x384xbf16>
    tpu.vector_store %arg7[%c16_290, %c0_291], %186 {strides = array<i32>} : memref<72x384xbf16, #tpu.memory_space<vmem>>, vector<4x384xbf16>,
    %c0_292 = arith.constant 0 : index
    %c111_293 = arith.constant 111 : index
    %188 = vector.load %arg6[%c0_292, %c111_293] : memref<4x640xbf16, #tpu.memory_space<vmem>>, vector<4x384xbf16>
    %c20_294 = arith.constant 20 : index
    %c0_295 = arith.constant 0 : index
    %189 = vector.load %arg7[%c20_294, %c0_295] : memref<72x384xbf16, #tpu.memory_space<vmem>>, vector<4x384xbf16>
    tpu.vector_store %arg7[%c20_294, %c0_295], %188 {strides = array<i32>} : memref<72x384xbf16, #tpu.memory_space<vmem>>, vector<4x384xbf16>,
    %c0_296 = arith.constant 0 : index
    %c4_297 = arith.constant 4 : index
    %c0_298 = arith.constant 0 : index
    %c127_299 = arith.constant 127 : index
    %190 = vector.load %arg2[%c0_296, %c4_297, %c0_298, %c127_299] : memref<1x8x4x640xbf16, #tpu.memory_space<vmem>>, vector<1x1x4x384xbf16>
    %191 = vector.shape_cast %190 : vector<1x1x4x384xbf16> to vector<4x384xbf16>
    %c24_300 = arith.constant 24 : index
    %c0_301 = arith.constant 0 : index
    %192 = vector.load %arg7[%c24_300, %c0_301] : memref<72x384xbf16, #tpu.memory_space<vmem>>, vector<4x384xbf16>
    tpu.vector_store %arg7[%c24_300, %c0_301], %191 {strides = array<i32>} : memref<72x384xbf16, #tpu.memory_space<vmem>>, vector<4x384xbf16>,
    %c0_302 = arith.constant 0 : index
    %c127_303 = arith.constant 127 : index
    %193 = vector.load %arg6[%c0_302, %c127_303] : memref<4x640xbf16, #tpu.memory_space<vmem>>, vector<4x384xbf16>
    %c28_304 = arith.constant 28 : index
    %c0_305 = arith.constant 0 : index
    %194 = vector.load %arg7[%c28_304, %c0_305] : memref<72x384xbf16, #tpu.memory_space<vmem>>, vector<4x384xbf16>
    tpu.vector_store %arg7[%c28_304, %c0_305], %193 {strides = array<i32>} : memref<72x384xbf16, #tpu.memory_space<vmem>>, vector<4x384xbf16>,
    %c0_306 = arith.constant 0 : index
    %c4_307 = arith.constant 4 : index
    %c0_308 = arith.constant 0 : index
    %c128_309 = arith.constant 128 : index
    %195 = vector.load %arg2[%c0_306, %c4_307, %c0_308, %c128_309] : memref<1x8x4x640xbf16, #tpu.memory_space<vmem>>, vector<1x1x4x384xbf16>
    %196 = vector.shape_cast %195 : vector<1x1x4x384xbf16> to vector<4x384xbf16>
    %c32_310 = arith.constant 32 : index
    %c0_311 = arith.constant 0 : index
    %197 = vector.load %arg7[%c32_310, %c0_311] : memref<72x384xbf16, #tpu.memory_space<vmem>>, vector<4x384xbf16>
    tpu.vector_store %arg7[%c32_310, %c0_311], %196 {strides = array<i32>} : memref<72x384xbf16, #tpu.memory_space<vmem>>, vector<4x384xbf16>,
    %c0_312 = arith.constant 0 : index
    %c128_313 = arith.constant 128 : index
    %198 = vector.load %arg6[%c0_312, %c128_313] : memref<4x640xbf16, #tpu.memory_space<vmem>>, vector<4x384xbf16>
    %c36_314 = arith.constant 36 : index
    %c0_315 = arith.constant 0 : index
    %199 = vector.load %arg7[%c36_314, %c0_315] : memref<72x384xbf16, #tpu.memory_space<vmem>>, vector<4x384xbf16>
    tpu.vector_store %arg7[%c36_314, %c0_315], %198 {strides = array<i32>} : memref<72x384xbf16, #tpu.memory_space<vmem>>, vector<4x384xbf16>,
    %c0_316 = arith.constant 0 : index
    %c4_317 = arith.constant 4 : index
    %c0_318 = arith.constant 0 : index
    %c129_319 = arith.constant 129 : index
    %200 = vector.load %arg2[%c0_316, %c4_317, %c0_318, %c129_319] : memref<1x8x4x640xbf16, #tpu.memory_space<vmem>>, vector<1x1x4x384xbf16>
    %201 = vector.shape_cast %200 : vector<1x1x4x384xbf16> to vector<4x384xbf16>
    %c40_320 = arith.constant 40 : index
    %c0_321 = arith.constant 0 : index
    %202 = vector.load %arg7[%c40_320, %c0_321] : memref<72x384xbf16, #tpu.memory_space<vmem>>, vector<4x384xbf16>
    tpu.vector_store %arg7[%c40_320, %c0_321], %201 {strides = array<i32>} : memref<72x384xbf16, #tpu.memory_space<vmem>>, vector<4x384xbf16>,
    %c0_322 = arith.constant 0 : index
    %c129_323 = arith.constant 129 : index
    %203 = vector.load %arg6[%c0_322, %c129_323] : memref<4x640xbf16, #tpu.memory_space<vmem>>, vector<4x384xbf16>
    %c44_324 = arith.constant 44 : index
    %c0_325 = arith.constant 0 : index
    %204 = vector.load %arg7[%c44_324, %c0_325] : memref<72x384xbf16, #tpu.memory_space<vmem>>, vector<4x384xbf16>
    tpu.vector_store %arg7[%c44_324, %c0_325], %203 {strides = array<i32>} : memref<72x384xbf16, #tpu.memory_space<vmem>>, vector<4x384xbf16>,
    %c0_326 = arith.constant 0 : index
    %c4_327 = arith.constant 4 : index
    %c0_328 = arith.constant 0 : index
    %c145_329 = arith.constant 145 : index
    %205 = vector.load %arg2[%c0_326, %c4_327, %c0_328, %c145_329] : memref<1x8x4x640xbf16, #tpu.memory_space<vmem>>, vector<1x1x4x384xbf16>
    %206 = vector.shape_cast %205 : vector<1x1x4x384xbf16> to vector<4x384xbf16>
    %c48_330 = arith.constant 48 : index
    %c0_331 = arith.constant 0 : index
    %207 = vector.load %arg7[%c48_330, %c0_331] : memref<72x384xbf16, #tpu.memory_space<vmem>>, vector<4x384xbf16>
    tpu.vector_store %arg7[%c48_330, %c0_331], %206 {strides = array<i32>} : memref<72x384xbf16, #tpu.memory_space<vmem>>, vector<4x384xbf16>,
    %c0_332 = arith.constant 0 : index
    %c145_333 = arith.constant 145 : index
    %208 = vector.load %arg6[%c0_332, %c145_333] : memref<4x640xbf16, #tpu.memory_space<vmem>>, vector<4x384xbf16>
    %c52_334 = arith.constant 52 : index
    %c0_335 = arith.constant 0 : index
    %209 = vector.load %arg7[%c52_334, %c0_335] : memref<72x384xbf16, #tpu.memory_space<vmem>>, vector<4x384xbf16>
    tpu.vector_store %arg7[%c52_334, %c0_335], %208 {strides = array<i32>} : memref<72x384xbf16, #tpu.memory_space<vmem>>, vector<4x384xbf16>,
    %c0_336 = arith.constant 0 : index
    %c4_337 = arith.constant 4 : index
    %c0_338 = arith.constant 0 : index
    %c146_339 = arith.constant 146 : index
    %210 = vector.load %arg2[%c0_336, %c4_337, %c0_338, %c146_339] : memref<1x8x4x640xbf16, #tpu.memory_space<vmem>>, vector<1x1x4x384xbf16>
    %211 = vector.shape_cast %210 : vector<1x1x4x384xbf16> to vector<4x384xbf16>
    %c56_340 = arith.constant 56 : index
    %c0_341 = arith.constant 0 : index
    %212 = vector.load %arg7[%c56_340, %c0_341] : memref<72x384xbf16, #tpu.memory_space<vmem>>, vector<4x384xbf16>
    tpu.vector_store %arg7[%c56_340, %c0_341], %211 {strides = array<i32>} : memref<72x384xbf16, #tpu.memory_space<vmem>>, vector<4x384xbf16>,
    %c0_342 = arith.constant 0 : index
    %c146_343 = arith.constant 146 : index
    %213 = vector.load %arg6[%c0_342, %c146_343] : memref<4x640xbf16, #tpu.memory_space<vmem>>, vector<4x384xbf16>
    %c60_344 = arith.constant 60 : index
    %c0_345 = arith.constant 0 : index
    %214 = vector.load %arg7[%c60_344, %c0_345] : memref<72x384xbf16, #tpu.memory_space<vmem>>, vector<4x384xbf16>
    tpu.vector_store %arg7[%c60_344, %c0_345], %213 {strides = array<i32>} : memref<72x384xbf16, #tpu.memory_space<vmem>>, vector<4x384xbf16>,
    %c0_346 = arith.constant 0 : index
    %c4_347 = arith.constant 4 : index
    %c0_348 = arith.constant 0 : index
    %c147_349 = arith.constant 147 : index
    %215 = vector.load %arg2[%c0_346, %c4_347, %c0_348, %c147_349] : memref<1x8x4x640xbf16, #tpu.memory_space<vmem>>, vector<1x1x4x384xbf16>
    %216 = vector.shape_cast %215 : vector<1x1x4x384xbf16> to vector<4x384xbf16>
    %c64_350 = arith.constant 64 : index
    %c0_351 = arith.constant 0 : index
    %217 = vector.load %arg7[%c64_350, %c0_351] : memref<72x384xbf16, #tpu.memory_space<vmem>>, vector<4x384xbf16>
    tpu.vector_store %arg7[%c64_350, %c0_351], %216 {strides = array<i32>} : memref<72x384xbf16, #tpu.memory_space<vmem>>, vector<4x384xbf16>,
    %c0_352 = arith.constant 0 : index
    %c147_353 = arith.constant 147 : index
    %218 = vector.load %arg6[%c0_352, %c147_353] : memref<4x640xbf16, #tpu.memory_space<vmem>>, vector<4x384xbf16>
    %c68_354 = arith.constant 68 : index
    %c0_355 = arith.constant 0 : index
    %219 = vector.load %arg7[%c68_354, %c0_355] : memref<72x384xbf16, #tpu.memory_space<vmem>>, vector<4x384xbf16>
    tpu.vector_store %arg7[%c68_354, %c0_355], %218 {strides = array<i32>} : memref<72x384xbf16, #tpu.memory_space<vmem>>, vector<4x384xbf16>,
    %c3_356 = arith.constant 3 : index
    %c0_357 = arith.constant 0 : index
    %c0_358 = arith.constant 0 : index
    %220 = vector.load %arg3[%c3_356, %c0_357, %c0_358] : memref<7x8x72xbf16, #tpu.memory_space<vmem>>, vector<1x8x72xbf16>
    %221 = vector.shape_cast %220 : vector<1x8x72xbf16> to vector<8x72xbf16>
    %c0_359 = arith.constant 0 : index
    %c0_360 = arith.constant 0 : index
    %222 = vector.load %arg7[%c0_359, %c0_360] : memref<72x384xbf16, #tpu.memory_space<vmem>>, vector<72x384xbf16>
    %cst_361 = arith.constant dense<0.000000e+00> : vector<8x384xf32>
    %223 = tpu.matmul %221, %222, %cst_361 {dimension_numbers = #tpu.dot_dimension_numbers<[1], [0], [0], [1], [0, 0, 1, 1], [], []>} : vector<8x72xbf16>, vector<72x384xbf16>, vector<8x384xf32> -> vector<8x384xf32>
    %cst_362 = arith.constant 0.000000e+00 : f32
    %224 = vector.broadcast %cst_362 : f32 to vector<8x384xf32>
    %225 = arith.maximumf %223, %224 : vector<8x384xf32>
    %226 = vector.extract_strided_slice %225 {offsets = [0, 0], sizes = [4, 384], strides = [1, 1]} : vector<8x384xf32> to vector<4x384xf32>
    %c0_363 = arith.constant 0 : index
    %c3_364 = arith.constant 3 : index
    %c0_365 = arith.constant 0 : index
    %c0_366 = arith.constant 0 : index
    %227 = vector.load %arg4[%c0_363, %c3_364, %c0_365, %c0_366] : memref<1x7x4x384xf32, #tpu.memory_space<vmem>>, vector<1x1x4x384xf32>
    %228 = vector.shape_cast %227 : vector<1x1x4x384xf32> to vector<4x384xf32>
    %229 = vector.shape_cast %226 : vector<4x384xf32> to vector<1x1x4x384xf32>
    tpu.vector_store %arg4[%c0_363, %c3_364, %c0_365, %c0_366], %229 {strides = array<i32>} : memref<1x7x4x384xf32, #tpu.memory_space<vmem>>, vector<1x1x4x384xf32>,
    %230 = vector.extract_strided_slice %225 {offsets = [4, 0], sizes = [4, 384], strides = [1, 1]} : vector<8x384xf32> to vector<4x384xf32>
    %231 = vector.broadcast %2 : vector<1x384xf32> to vector<4x384xf32>
    %232 = arith.mulf %230, %231 : vector<4x384xf32>
    %233 = arith.truncf %232 : vector<4x384xf32> to vector<4x384xbf16>
    %c0_367 = arith.constant 0 : index
    %c128_368 = arith.constant 128 : index
    %234 = vector.load %arg6[%c0_367, %c128_368] : memref<4x640xbf16, #tpu.memory_space<vmem>>, vector<4x384xbf16>
    tpu.vector_store %arg6[%c0_367, %c128_368], %233 {strides = array<i32>} : memref<4x640xbf16, #tpu.memory_space<vmem>>, vector<4x384xbf16>,
    %c0_369 = arith.constant 0 : index
    %c5 = arith.constant 5 : index
    %c0_370 = arith.constant 0 : index
    %c109_371 = arith.constant 109 : index
    %235 = vector.load %arg2[%c0_369, %c5, %c0_370, %c109_371] : memref<1x8x4x640xbf16, #tpu.memory_space<vmem>>, vector<1x1x4x384xbf16>
    %236 = vector.shape_cast %235 : vector<1x1x4x384xbf16> to vector<4x384xbf16>
    %c0_372 = arith.constant 0 : index
    %c0_373 = arith.constant 0 : index
    %237 = vector.load %arg7[%c0_372, %c0_373] : memref<72x384xbf16, #tpu.memory_space<vmem>>, vector<4x384xbf16>
    tpu.vector_store %arg7[%c0_372, %c0_373], %236 {strides = array<i32>} : memref<72x384xbf16, #tpu.memory_space<vmem>>, vector<4x384xbf16>,
    %c0_374 = arith.constant 0 : index
    %c109_375 = arith.constant 109 : index
    %238 = vector.load %arg6[%c0_374, %c109_375] : memref<4x640xbf16, #tpu.memory_space<vmem>>, vector<4x384xbf16>
    %c4_376 = arith.constant 4 : index
    %c0_377 = arith.constant 0 : index
    %239 = vector.load %arg7[%c4_376, %c0_377] : memref<72x384xbf16, #tpu.memory_space<vmem>>, vector<4x384xbf16>
    tpu.vector_store %arg7[%c4_376, %c0_377], %238 {strides = array<i32>} : memref<72x384xbf16, #tpu.memory_space<vmem>>, vector<4x384xbf16>,
    %c0_378 = arith.constant 0 : index
    %c5_379 = arith.constant 5 : index
    %c0_380 = arith.constant 0 : index
    %c110_381 = arith.constant 110 : index
    %240 = vector.load %arg2[%c0_378, %c5_379, %c0_380, %c110_381] : memref<1x8x4x640xbf16, #tpu.memory_space<vmem>>, vector<1x1x4x384xbf16>
    %241 = vector.shape_cast %240 : vector<1x1x4x384xbf16> to vector<4x384xbf16>
    %c8_382 = arith.constant 8 : index
    %c0_383 = arith.constant 0 : index
    %242 = vector.load %arg7[%c8_382, %c0_383] : memref<72x384xbf16, #tpu.memory_space<vmem>>, vector<4x384xbf16>
    tpu.vector_store %arg7[%c8_382, %c0_383], %241 {strides = array<i32>} : memref<72x384xbf16, #tpu.memory_space<vmem>>, vector<4x384xbf16>,
    %c0_384 = arith.constant 0 : index
    %c110_385 = arith.constant 110 : index
    %243 = vector.load %arg6[%c0_384, %c110_385] : memref<4x640xbf16, #tpu.memory_space<vmem>>, vector<4x384xbf16>
    %c12_386 = arith.constant 12 : index
    %c0_387 = arith.constant 0 : index
    %244 = vector.load %arg7[%c12_386, %c0_387] : memref<72x384xbf16, #tpu.memory_space<vmem>>, vector<4x384xbf16>
    tpu.vector_store %arg7[%c12_386, %c0_387], %243 {strides = array<i32>} : memref<72x384xbf16, #tpu.memory_space<vmem>>, vector<4x384xbf16>,
    %c0_388 = arith.constant 0 : index
    %c5_389 = arith.constant 5 : index
    %c0_390 = arith.constant 0 : index
    %c111_391 = arith.constant 111 : index
    %245 = vector.load %arg2[%c0_388, %c5_389, %c0_390, %c111_391] : memref<1x8x4x640xbf16, #tpu.memory_space<vmem>>, vector<1x1x4x384xbf16>
    %246 = vector.shape_cast %245 : vector<1x1x4x384xbf16> to vector<4x384xbf16>
    %c16_392 = arith.constant 16 : index
    %c0_393 = arith.constant 0 : index
    %247 = vector.load %arg7[%c16_392, %c0_393] : memref<72x384xbf16, #tpu.memory_space<vmem>>, vector<4x384xbf16>
    tpu.vector_store %arg7[%c16_392, %c0_393], %246 {strides = array<i32>} : memref<72x384xbf16, #tpu.memory_space<vmem>>, vector<4x384xbf16>,
    %c0_394 = arith.constant 0 : index
    %c111_395 = arith.constant 111 : index
    %248 = vector.load %arg6[%c0_394, %c111_395] : memref<4x640xbf16, #tpu.memory_space<vmem>>, vector<4x384xbf16>
    %c20_396 = arith.constant 20 : index
    %c0_397 = arith.constant 0 : index
    %249 = vector.load %arg7[%c20_396, %c0_397] : memref<72x384xbf16, #tpu.memory_space<vmem>>, vector<4x384xbf16>
    tpu.vector_store %arg7[%c20_396, %c0_397], %248 {strides = array<i32>} : memref<72x384xbf16, #tpu.memory_space<vmem>>, vector<4x384xbf16>,
    %c0_398 = arith.constant 0 : index
    %c5_399 = arith.constant 5 : index
    %c0_400 = arith.constant 0 : index
    %c127_401 = arith.constant 127 : index
    %250 = vector.load %arg2[%c0_398, %c5_399, %c0_400, %c127_401] : memref<1x8x4x640xbf16, #tpu.memory_space<vmem>>, vector<1x1x4x384xbf16>
    %251 = vector.shape_cast %250 : vector<1x1x4x384xbf16> to vector<4x384xbf16>
    %c24_402 = arith.constant 24 : index
    %c0_403 = arith.constant 0 : index
    %252 = vector.load %arg7[%c24_402, %c0_403] : memref<72x384xbf16, #tpu.memory_space<vmem>>, vector<4x384xbf16>
    tpu.vector_store %arg7[%c24_402, %c0_403], %251 {strides = array<i32>} : memref<72x384xbf16, #tpu.memory_space<vmem>>, vector<4x384xbf16>,
    %c0_404 = arith.constant 0 : index
    %c127_405 = arith.constant 127 : index
    %253 = vector.load %arg6[%c0_404, %c127_405] : memref<4x640xbf16, #tpu.memory_space<vmem>>, vector<4x384xbf16>
    %c28_406 = arith.constant 28 : index
    %c0_407 = arith.constant 0 : index
    %254 = vector.load %arg7[%c28_406, %c0_407] : memref<72x384xbf16, #tpu.memory_space<vmem>>, vector<4x384xbf16>
    tpu.vector_store %arg7[%c28_406, %c0_407], %253 {strides = array<i32>} : memref<72x384xbf16, #tpu.memory_space<vmem>>, vector<4x384xbf16>,
    %c0_408 = arith.constant 0 : index
    %c5_409 = arith.constant 5 : index
    %c0_410 = arith.constant 0 : index
    %c128_411 = arith.constant 128 : index
    %255 = vector.load %arg2[%c0_408, %c5_409, %c0_410, %c128_411] : memref<1x8x4x640xbf16, #tpu.memory_space<vmem>>, vector<1x1x4x384xbf16>
    %256 = vector.shape_cast %255 : vector<1x1x4x384xbf16> to vector<4x384xbf16>
    %c32_412 = arith.constant 32 : index
    %c0_413 = arith.constant 0 : index
    %257 = vector.load %arg7[%c32_412, %c0_413] : memref<72x384xbf16, #tpu.memory_space<vmem>>, vector<4x384xbf16>
    tpu.vector_store %arg7[%c32_412, %c0_413], %256 {strides = array<i32>} : memref<72x384xbf16, #tpu.memory_space<vmem>>, vector<4x384xbf16>,
    %c0_414 = arith.constant 0 : index
    %c128_415 = arith.constant 128 : index
    %258 = vector.load %arg6[%c0_414, %c128_415] : memref<4x640xbf16, #tpu.memory_space<vmem>>, vector<4x384xbf16>
    %c36_416 = arith.constant 36 : index
    %c0_417 = arith.constant 0 : index
    %259 = vector.load %arg7[%c36_416, %c0_417] : memref<72x384xbf16, #tpu.memory_space<vmem>>, vector<4x384xbf16>
    tpu.vector_store %arg7[%c36_416, %c0_417], %258 {strides = array<i32>} : memref<72x384xbf16, #tpu.memory_space<vmem>>, vector<4x384xbf16>,
    %c0_418 = arith.constant 0 : index
    %c5_419 = arith.constant 5 : index
    %c0_420 = arith.constant 0 : index
    %c129_421 = arith.constant 129 : index
    %260 = vector.load %arg2[%c0_418, %c5_419, %c0_420, %c129_421] : memref<1x8x4x640xbf16, #tpu.memory_space<vmem>>, vector<1x1x4x384xbf16>
    %261 = vector.shape_cast %260 : vector<1x1x4x384xbf16> to vector<4x384xbf16>
    %c40_422 = arith.constant 40 : index
    %c0_423 = arith.constant 0 : index
    %262 = vector.load %arg7[%c40_422, %c0_423] : memref<72x384xbf16, #tpu.memory_space<vmem>>, vector<4x384xbf16>
    tpu.vector_store %arg7[%c40_422, %c0_423], %261 {strides = array<i32>} : memref<72x384xbf16, #tpu.memory_space<vmem>>, vector<4x384xbf16>,
    %c0_424 = arith.constant 0 : index
    %c129_425 = arith.constant 129 : index
    %263 = vector.load %arg6[%c0_424, %c129_425] : memref<4x640xbf16, #tpu.memory_space<vmem>>, vector<4x384xbf16>
    %c44_426 = arith.constant 44 : index
    %c0_427 = arith.constant 0 : index
    %264 = vector.load %arg7[%c44_426, %c0_427] : memref<72x384xbf16, #tpu.memory_space<vmem>>, vector<4x384xbf16>
    tpu.vector_store %arg7[%c44_426, %c0_427], %263 {strides = array<i32>} : memref<72x384xbf16, #tpu.memory_space<vmem>>, vector<4x384xbf16>,
    %c0_428 = arith.constant 0 : index
    %c5_429 = arith.constant 5 : index
    %c0_430 = arith.constant 0 : index
    %c145_431 = arith.constant 145 : index
    %265 = vector.load %arg2[%c0_428, %c5_429, %c0_430, %c145_431] : memref<1x8x4x640xbf16, #tpu.memory_space<vmem>>, vector<1x1x4x384xbf16>
    %266 = vector.shape_cast %265 : vector<1x1x4x384xbf16> to vector<4x384xbf16>
    %c48_432 = arith.constant 48 : index
    %c0_433 = arith.constant 0 : index
    %267 = vector.load %arg7[%c48_432, %c0_433] : memref<72x384xbf16, #tpu.memory_space<vmem>>, vector<4x384xbf16>
    tpu.vector_store %arg7[%c48_432, %c0_433], %266 {strides = array<i32>} : memref<72x384xbf16, #tpu.memory_space<vmem>>, vector<4x384xbf16>,
    %c0_434 = arith.constant 0 : index
    %c145_435 = arith.constant 145 : index
    %268 = vector.load %arg6[%c0_434, %c145_435] : memref<4x640xbf16, #tpu.memory_space<vmem>>, vector<4x384xbf16>
    %c52_436 = arith.constant 52 : index
    %c0_437 = arith.constant 0 : index
    %269 = vector.load %arg7[%c52_436, %c0_437] : memref<72x384xbf16, #tpu.memory_space<vmem>>, vector<4x384xbf16>
    tpu.vector_store %arg7[%c52_436, %c0_437], %268 {strides = array<i32>} : memref<72x384xbf16, #tpu.memory_space<vmem>>, vector<4x384xbf16>,
    %c0_438 = arith.constant 0 : index
    %c5_439 = arith.constant 5 : index
    %c0_440 = arith.constant 0 : index
    %c146_441 = arith.constant 146 : index
    %270 = vector.load %arg2[%c0_438, %c5_439, %c0_440, %c146_441] : memref<1x8x4x640xbf16, #tpu.memory_space<vmem>>, vector<1x1x4x384xbf16>
    %271 = vector.shape_cast %270 : vector<1x1x4x384xbf16> to vector<4x384xbf16>
    %c56_442 = arith.constant 56 : index
    %c0_443 = arith.constant 0 : index
    %272 = vector.load %arg7[%c56_442, %c0_443] : memref<72x384xbf16, #tpu.memory_space<vmem>>, vector<4x384xbf16>
    tpu.vector_store %arg7[%c56_442, %c0_443], %271 {strides = array<i32>} : memref<72x384xbf16, #tpu.memory_space<vmem>>, vector<4x384xbf16>,
    %c0_444 = arith.constant 0 : index
    %c146_445 = arith.constant 146 : index
    %273 = vector.load %arg6[%c0_444, %c146_445] : memref<4x640xbf16, #tpu.memory_space<vmem>>, vector<4x384xbf16>
    %c60_446 = arith.constant 60 : index
    %c0_447 = arith.constant 0 : index
    %274 = vector.load %arg7[%c60_446, %c0_447] : memref<72x384xbf16, #tpu.memory_space<vmem>>, vector<4x384xbf16>
    tpu.vector_store %arg7[%c60_446, %c0_447], %273 {strides = array<i32>} : memref<72x384xbf16, #tpu.memory_space<vmem>>, vector<4x384xbf16>,
    %c0_448 = arith.constant 0 : index
    %c5_449 = arith.constant 5 : index
    %c0_450 = arith.constant 0 : index
    %c147_451 = arith.constant 147 : index
    %275 = vector.load %arg2[%c0_448, %c5_449, %c0_450, %c147_451] : memref<1x8x4x640xbf16, #tpu.memory_space<vmem>>, vector<1x1x4x384xbf16>
    %276 = vector.shape_cast %275 : vector<1x1x4x384xbf16> to vector<4x384xbf16>
    %c64_452 = arith.constant 64 : index
    %c0_453 = arith.constant 0 : index
    %277 = vector.load %arg7[%c64_452, %c0_453] : memref<72x384xbf16, #tpu.memory_space<vmem>>, vector<4x384xbf16>
    tpu.vector_store %arg7[%c64_452, %c0_453], %276 {strides = array<i32>} : memref<72x384xbf16, #tpu.memory_space<vmem>>, vector<4x384xbf16>,
    %c0_454 = arith.constant 0 : index
    %c147_455 = arith.constant 147 : index
    %278 = vector.load %arg6[%c0_454, %c147_455] : memref<4x640xbf16, #tpu.memory_space<vmem>>, vector<4x384xbf16>
    %c68_456 = arith.constant 68 : index
    %c0_457 = arith.constant 0 : index
    %279 = vector.load %arg7[%c68_456, %c0_457] : memref<72x384xbf16, #tpu.memory_space<vmem>>, vector<4x384xbf16>
    tpu.vector_store %arg7[%c68_456, %c0_457], %278 {strides = array<i32>} : memref<72x384xbf16, #tpu.memory_space<vmem>>, vector<4x384xbf16>,
    %c4_458 = arith.constant 4 : index
    %c0_459 = arith.constant 0 : index
    %c0_460 = arith.constant 0 : index
    %280 = vector.load %arg3[%c4_458, %c0_459, %c0_460] : memref<7x8x72xbf16, #tpu.memory_space<vmem>>, vector<1x8x72xbf16>
    %281 = vector.shape_cast %280 : vector<1x8x72xbf16> to vector<8x72xbf16>
    %c0_461 = arith.constant 0 : index
    %c0_462 = arith.constant 0 : index
    %282 = vector.load %arg7[%c0_461, %c0_462] : memref<72x384xbf16, #tpu.memory_space<vmem>>, vector<72x384xbf16>
    %cst_463 = arith.constant dense<0.000000e+00> : vector<8x384xf32>
    %283 = tpu.matmul %281, %282, %cst_463 {dimension_numbers = #tpu.dot_dimension_numbers<[1], [0], [0], [1], [0, 0, 1, 1], [], []>} : vector<8x72xbf16>, vector<72x384xbf16>, vector<8x384xf32> -> vector<8x384xf32>
    %cst_464 = arith.constant 0.000000e+00 : f32
    %284 = vector.broadcast %cst_464 : f32 to vector<8x384xf32>
    %285 = arith.maximumf %283, %284 : vector<8x384xf32>
    %286 = vector.extract_strided_slice %285 {offsets = [0, 0], sizes = [4, 384], strides = [1, 1]} : vector<8x384xf32> to vector<4x384xf32>
    %c0_465 = arith.constant 0 : index
    %c4_466 = arith.constant 4 : index
    %c0_467 = arith.constant 0 : index
    %c0_468 = arith.constant 0 : index
    %287 = vector.load %arg4[%c0_465, %c4_466, %c0_467, %c0_468] : memref<1x7x4x384xf32, #tpu.memory_space<vmem>>, vector<1x1x4x384xf32>
    %288 = vector.shape_cast %287 : vector<1x1x4x384xf32> to vector<4x384xf32>
    %289 = vector.shape_cast %286 : vector<4x384xf32> to vector<1x1x4x384xf32>
    tpu.vector_store %arg4[%c0_465, %c4_466, %c0_467, %c0_468], %289 {strides = array<i32>} : memref<1x7x4x384xf32, #tpu.memory_space<vmem>>, vector<1x1x4x384xf32>,
    %290 = vector.extract_strided_slice %285 {offsets = [4, 0], sizes = [4, 384], strides = [1, 1]} : vector<8x384xf32> to vector<4x384xf32>
    %291 = vector.broadcast %2 : vector<1x384xf32> to vector<4x384xf32>
    %292 = arith.mulf %290, %291 : vector<4x384xf32>
    %293 = arith.truncf %292 : vector<4x384xf32> to vector<4x384xbf16>
    %c0_469 = arith.constant 0 : index
    %c128_470 = arith.constant 128 : index
    %294 = vector.load %arg6[%c0_469, %c128_470] : memref<4x640xbf16, #tpu.memory_space<vmem>>, vector<4x384xbf16>
    tpu.vector_store %arg6[%c0_469, %c128_470], %293 {strides = array<i32>} : memref<4x640xbf16, #tpu.memory_space<vmem>>, vector<4x384xbf16>,
    %c0_471 = arith.constant 0 : index
    %c6 = arith.constant 6 : index
    %c0_472 = arith.constant 0 : index
    %c109_473 = arith.constant 109 : index
    %295 = vector.load %arg2[%c0_471, %c6, %c0_472, %c109_473] : memref<1x8x4x640xbf16, #tpu.memory_space<vmem>>, vector<1x1x4x384xbf16>
    %296 = vector.shape_cast %295 : vector<1x1x4x384xbf16> to vector<4x384xbf16>
    %c0_474 = arith.constant 0 : index
    %c0_475 = arith.constant 0 : index
    %297 = vector.load %arg7[%c0_474, %c0_475] : memref<72x384xbf16, #tpu.memory_space<vmem>>, vector<4x384xbf16>
    tpu.vector_store %arg7[%c0_474, %c0_475], %296 {strides = array<i32>} : memref<72x384xbf16, #tpu.memory_space<vmem>>, vector<4x384xbf16>,
    %c0_476 = arith.constant 0 : index
    %c109_477 = arith.constant 109 : index
    %298 = vector.load %arg6[%c0_476, %c109_477] : memref<4x640xbf16, #tpu.memory_space<vmem>>, vector<4x384xbf16>
    %c4_478 = arith.constant 4 : index
    %c0_479 = arith.constant 0 : index
    %299 = vector.load %arg7[%c4_478, %c0_479] : memref<72x384xbf16, #tpu.memory_space<vmem>>, vector<4x384xbf16>
    tpu.vector_store %arg7[%c4_478, %c0_479], %298 {strides = array<i32>} : memref<72x384xbf16, #tpu.memory_space<vmem>>, vector<4x384xbf16>,
    %c0_480 = arith.constant 0 : index
    %c6_481 = arith.constant 6 : index
    %c0_482 = arith.constant 0 : index
    %c110_483 = arith.constant 110 : index
    %300 = vector.load %arg2[%c0_480, %c6_481, %c0_482, %c110_483] : memref<1x8x4x640xbf16, #tpu.memory_space<vmem>>, vector<1x1x4x384xbf16>
    %301 = vector.shape_cast %300 : vector<1x1x4x384xbf16> to vector<4x384xbf16>
    %c8_484 = arith.constant 8 : index
    %c0_485 = arith.constant 0 : index
    %302 = vector.load %arg7[%c8_484, %c0_485] : memref<72x384xbf16, #tpu.memory_space<vmem>>, vector<4x384xbf16>
    tpu.vector_store %arg7[%c8_484, %c0_485], %301 {strides = array<i32>} : memref<72x384xbf16, #tpu.memory_space<vmem>>, vector<4x384xbf16>,
    %c0_486 = arith.constant 0 : index
    %c110_487 = arith.constant 110 : index
    %303 = vector.load %arg6[%c0_486, %c110_487] : memref<4x640xbf16, #tpu.memory_space<vmem>>, vector<4x384xbf16>
    %c12_488 = arith.constant 12 : index
    %c0_489 = arith.constant 0 : index
    %304 = vector.load %arg7[%c12_488, %c0_489] : memref<72x384xbf16, #tpu.memory_space<vmem>>, vector<4x384xbf16>
    tpu.vector_store %arg7[%c12_488, %c0_489], %303 {strides = array<i32>} : memref<72x384xbf16, #tpu.memory_space<vmem>>, vector<4x384xbf16>,
    %c0_490 = arith.constant 0 : index
    %c6_491 = arith.constant 6 : index
    %c0_492 = arith.constant 0 : index
    %c111_493 = arith.constant 111 : index
    %305 = vector.load %arg2[%c0_490, %c6_491, %c0_492, %c111_493] : memref<1x8x4x640xbf16, #tpu.memory_space<vmem>>, vector<1x1x4x384xbf16>
    %306 = vector.shape_cast %305 : vector<1x1x4x384xbf16> to vector<4x384xbf16>
    %c16_494 = arith.constant 16 : index
    %c0_495 = arith.constant 0 : index
    %307 = vector.load %arg7[%c16_494, %c0_495] : memref<72x384xbf16, #tpu.memory_space<vmem>>, vector<4x384xbf16>
    tpu.vector_store %arg7[%c16_494, %c0_495], %306 {strides = array<i32>} : memref<72x384xbf16, #tpu.memory_space<vmem>>, vector<4x384xbf16>,
    %c0_496 = arith.constant 0 : index
    %c111_497 = arith.constant 111 : index
    %308 = vector.load %arg6[%c0_496, %c111_497] : memref<4x640xbf16, #tpu.memory_space<vmem>>, vector<4x384xbf16>
    %c20_498 = arith.constant 20 : index
    %c0_499 = arith.constant 0 : index
    %309 = vector.load %arg7[%c20_498, %c0_499] : memref<72x384xbf16, #tpu.memory_space<vmem>>, vector<4x384xbf16>
    tpu.vector_store %arg7[%c20_498, %c0_499], %308 {strides = array<i32>} : memref<72x384xbf16, #tpu.memory_space<vmem>>, vector<4x384xbf16>,
    %c0_500 = arith.constant 0 : index
    %c6_501 = arith.constant 6 : index
    %c0_502 = arith.constant 0 : index
    %c127_503 = arith.constant 127 : index
    %310 = vector.load %arg2[%c0_500, %c6_501, %c0_502, %c127_503] : memref<1x8x4x640xbf16, #tpu.memory_space<vmem>>, vector<1x1x4x384xbf16>
    %311 = vector.shape_cast %310 : vector<1x1x4x384xbf16> to vector<4x384xbf16>
    %c24_504 = arith.constant 24 : index
    %c0_505 = arith.constant 0 : index
    %312 = vector.load %arg7[%c24_504, %c0_505] : memref<72x384xbf16, #tpu.memory_space<vmem>>, vector<4x384xbf16>
    tpu.vector_store %arg7[%c24_504, %c0_505], %311 {strides = array<i32>} : memref<72x384xbf16, #tpu.memory_space<vmem>>, vector<4x384xbf16>,
    %c0_506 = arith.constant 0 : index
    %c127_507 = arith.constant 127 : index
    %313 = vector.load %arg6[%c0_506, %c127_507] : memref<4x640xbf16, #tpu.memory_space<vmem>>, vector<4x384xbf16>
    %c28_508 = arith.constant 28 : index
    %c0_509 = arith.constant 0 : index
    %314 = vector.load %arg7[%c28_508, %c0_509] : memref<72x384xbf16, #tpu.memory_space<vmem>>, vector<4x384xbf16>
    tpu.vector_store %arg7[%c28_508, %c0_509], %313 {strides = array<i32>} : memref<72x384xbf16, #tpu.memory_space<vmem>>, vector<4x384xbf16>,
    %c0_510 = arith.constant 0 : index
    %c6_511 = arith.constant 6 : index
    %c0_512 = arith.constant 0 : index
    %c128_513 = arith.constant 128 : index
    %315 = vector.load %arg2[%c0_510, %c6_511, %c0_512, %c128_513] : memref<1x8x4x640xbf16, #tpu.memory_space<vmem>>, vector<1x1x4x384xbf16>
    %316 = vector.shape_cast %315 : vector<1x1x4x384xbf16> to vector<4x384xbf16>
    %c32_514 = arith.constant 32 : index
    %c0_515 = arith.constant 0 : index
    %317 = vector.load %arg7[%c32_514, %c0_515] : memref<72x384xbf16, #tpu.memory_space<vmem>>, vector<4x384xbf16>
    tpu.vector_store %arg7[%c32_514, %c0_515], %316 {strides = array<i32>} : memref<72x384xbf16, #tpu.memory_space<vmem>>, vector<4x384xbf16>,
    %c0_516 = arith.constant 0 : index
    %c128_517 = arith.constant 128 : index
    %318 = vector.load %arg6[%c0_516, %c128_517] : memref<4x640xbf16, #tpu.memory_space<vmem>>, vector<4x384xbf16>
    %c36_518 = arith.constant 36 : index
    %c0_519 = arith.constant 0 : index
    %319 = vector.load %arg7[%c36_518, %c0_519] : memref<72x384xbf16, #tpu.memory_space<vmem>>, vector<4x384xbf16>
    tpu.vector_store %arg7[%c36_518, %c0_519], %318 {strides = array<i32>} : memref<72x384xbf16, #tpu.memory_space<vmem>>, vector<4x384xbf16>,
    %c0_520 = arith.constant 0 : index
    %c6_521 = arith.constant 6 : index
    %c0_522 = arith.constant 0 : index
    %c129_523 = arith.constant 129 : index
    %320 = vector.load %arg2[%c0_520, %c6_521, %c0_522, %c129_523] : memref<1x8x4x640xbf16, #tpu.memory_space<vmem>>, vector<1x1x4x384xbf16>
    %321 = vector.shape_cast %320 : vector<1x1x4x384xbf16> to vector<4x384xbf16>
    %c40_524 = arith.constant 40 : index
    %c0_525 = arith.constant 0 : index
    %322 = vector.load %arg7[%c40_524, %c0_525] : memref<72x384xbf16, #tpu.memory_space<vmem>>, vector<4x384xbf16>
    tpu.vector_store %arg7[%c40_524, %c0_525], %321 {strides = array<i32>} : memref<72x384xbf16, #tpu.memory_space<vmem>>, vector<4x384xbf16>,
    %c0_526 = arith.constant 0 : index
    %c129_527 = arith.constant 129 : index
    %323 = vector.load %arg6[%c0_526, %c129_527] : memref<4x640xbf16, #tpu.memory_space<vmem>>, vector<4x384xbf16>
    %c44_528 = arith.constant 44 : index
    %c0_529 = arith.constant 0 : index
    %324 = vector.load %arg7[%c44_528, %c0_529] : memref<72x384xbf16, #tpu.memory_space<vmem>>, vector<4x384xbf16>
    tpu.vector_store %arg7[%c44_528, %c0_529], %323 {strides = array<i32>} : memref<72x384xbf16, #tpu.memory_space<vmem>>, vector<4x384xbf16>,
    %c0_530 = arith.constant 0 : index
    %c6_531 = arith.constant 6 : index
    %c0_532 = arith.constant 0 : index
    %c145_533 = arith.constant 145 : index
    %325 = vector.load %arg2[%c0_530, %c6_531, %c0_532, %c145_533] : memref<1x8x4x640xbf16, #tpu.memory_space<vmem>>, vector<1x1x4x384xbf16>
    %326 = vector.shape_cast %325 : vector<1x1x4x384xbf16> to vector<4x384xbf16>
    %c48_534 = arith.constant 48 : index
    %c0_535 = arith.constant 0 : index
    %327 = vector.load %arg7[%c48_534, %c0_535] : memref<72x384xbf16, #tpu.memory_space<vmem>>, vector<4x384xbf16>
    tpu.vector_store %arg7[%c48_534, %c0_535], %326 {strides = array<i32>} : memref<72x384xbf16, #tpu.memory_space<vmem>>, vector<4x384xbf16>,
    %c0_536 = arith.constant 0 : index
    %c145_537 = arith.constant 145 : index
    %328 = vector.load %arg6[%c0_536, %c145_537] : memref<4x640xbf16, #tpu.memory_space<vmem>>, vector<4x384xbf16>
    %c52_538 = arith.constant 52 : index
    %c0_539 = arith.constant 0 : index
    %329 = vector.load %arg7[%c52_538, %c0_539] : memref<72x384xbf16, #tpu.memory_space<vmem>>, vector<4x384xbf16>
    tpu.vector_store %arg7[%c52_538, %c0_539], %328 {strides = array<i32>} : memref<72x384xbf16, #tpu.memory_space<vmem>>, vector<4x384xbf16>,
    %c0_540 = arith.constant 0 : index
    %c6_541 = arith.constant 6 : index
    %c0_542 = arith.constant 0 : index
    %c146_543 = arith.constant 146 : index
    %330 = vector.load %arg2[%c0_540, %c6_541, %c0_542, %c146_543] : memref<1x8x4x640xbf16, #tpu.memory_space<vmem>>, vector<1x1x4x384xbf16>
    %331 = vector.shape_cast %330 : vector<1x1x4x384xbf16> to vector<4x384xbf16>
    %c56_544 = arith.constant 56 : index
    %c0_545 = arith.constant 0 : index
    %332 = vector.load %arg7[%c56_544, %c0_545] : memref<72x384xbf16, #tpu.memory_space<vmem>>, vector<4x384xbf16>
    tpu.vector_store %arg7[%c56_544, %c0_545], %331 {strides = array<i32>} : memref<72x384xbf16, #tpu.memory_space<vmem>>, vector<4x384xbf16>,
    %c0_546 = arith.constant 0 : index
    %c146_547 = arith.constant 146 : index
    %333 = vector.load %arg6[%c0_546, %c146_547] : memref<4x640xbf16, #tpu.memory_space<vmem>>, vector<4x384xbf16>
    %c60_548 = arith.constant 60 : index
    %c0_549 = arith.constant 0 : index
    %334 = vector.load %arg7[%c60_548, %c0_549] : memref<72x384xbf16, #tpu.memory_space<vmem>>, vector<4x384xbf16>
    tpu.vector_store %arg7[%c60_548, %c0_549], %333 {strides = array<i32>} : memref<72x384xbf16, #tpu.memory_space<vmem>>, vector<4x384xbf16>,
    %c0_550 = arith.constant 0 : index
    %c6_551 = arith.constant 6 : index
    %c0_552 = arith.constant 0 : index
    %c147_553 = arith.constant 147 : index
    %335 = vector.load %arg2[%c0_550, %c6_551, %c0_552, %c147_553] : memref<1x8x4x640xbf16, #tpu.memory_space<vmem>>, vector<1x1x4x384xbf16>
    %336 = vector.shape_cast %335 : vector<1x1x4x384xbf16> to vector<4x384xbf16>
    %c64_554 = arith.constant 64 : index
    %c0_555 = arith.constant 0 : index
    %337 = vector.load %arg7[%c64_554, %c0_555] : memref<72x384xbf16, #tpu.memory_space<vmem>>, vector<4x384xbf16>
    tpu.vector_store %arg7[%c64_554, %c0_555], %336 {strides = array<i32>} : memref<72x384xbf16, #tpu.memory_space<vmem>>, vector<4x384xbf16>,
    %c0_556 = arith.constant 0 : index
    %c147_557 = arith.constant 147 : index
    %338 = vector.load %arg6[%c0_556, %c147_557] : memref<4x640xbf16, #tpu.memory_space<vmem>>, vector<4x384xbf16>
    %c68_558 = arith.constant 68 : index
    %c0_559 = arith.constant 0 : index
    %339 = vector.load %arg7[%c68_558, %c0_559] : memref<72x384xbf16, #tpu.memory_space<vmem>>, vector<4x384xbf16>
    tpu.vector_store %arg7[%c68_558, %c0_559], %338 {strides = array<i32>} : memref<72x384xbf16, #tpu.memory_space<vmem>>, vector<4x384xbf16>,
    %c5_560 = arith.constant 5 : index
    %c0_561 = arith.constant 0 : index
    %c0_562 = arith.constant 0 : index
    %340 = vector.load %arg3[%c5_560, %c0_561, %c0_562] : memref<7x8x72xbf16, #tpu.memory_space<vmem>>, vector<1x8x72xbf16>
    %341 = vector.shape_cast %340 : vector<1x8x72xbf16> to vector<8x72xbf16>
    %c0_563 = arith.constant 0 : index
    %c0_564 = arith.constant 0 : index
    %342 = vector.load %arg7[%c0_563, %c0_564] : memref<72x384xbf16, #tpu.memory_space<vmem>>, vector<72x384xbf16>
    %cst_565 = arith.constant dense<0.000000e+00> : vector<8x384xf32>
    %343 = tpu.matmul %341, %342, %cst_565 {dimension_numbers = #tpu.dot_dimension_numbers<[1], [0], [0], [1], [0, 0, 1, 1], [], []>} : vector<8x72xbf16>, vector<72x384xbf16>, vector<8x384xf32> -> vector<8x384xf32>
    %cst_566 = arith.constant 0.000000e+00 : f32
    %344 = vector.broadcast %cst_566 : f32 to vector<8x384xf32>
    %345 = arith.maximumf %343, %344 : vector<8x384xf32>
    %346 = vector.extract_strided_slice %345 {offsets = [0, 0], sizes = [4, 384], strides = [1, 1]} : vector<8x384xf32> to vector<4x384xf32>
    %c0_567 = arith.constant 0 : index
    %c5_568 = arith.constant 5 : index
    %c0_569 = arith.constant 0 : index
    %c0_570 = arith.constant 0 : index
    %347 = vector.load %arg4[%c0_567, %c5_568, %c0_569, %c0_570] : memref<1x7x4x384xf32, #tpu.memory_space<vmem>>, vector<1x1x4x384xf32>
    %348 = vector.shape_cast %347 : vector<1x1x4x384xf32> to vector<4x384xf32>
    %349 = vector.shape_cast %346 : vector<4x384xf32> to vector<1x1x4x384xf32>
    tpu.vector_store %arg4[%c0_567, %c5_568, %c0_569, %c0_570], %349 {strides = array<i32>} : memref<1x7x4x384xf32, #tpu.memory_space<vmem>>, vector<1x1x4x384xf32>,
    %350 = vector.extract_strided_slice %345 {offsets = [4, 0], sizes = [4, 384], strides = [1, 1]} : vector<8x384xf32> to vector<4x384xf32>
    %351 = vector.broadcast %2 : vector<1x384xf32> to vector<4x384xf32>
    %352 = arith.mulf %350, %351 : vector<4x384xf32>
    %353 = arith.truncf %352 : vector<4x384xf32> to vector<4x384xbf16>
    %c0_571 = arith.constant 0 : index
    %c128_572 = arith.constant 128 : index
    %354 = vector.load %arg6[%c0_571, %c128_572] : memref<4x640xbf16, #tpu.memory_space<vmem>>, vector<4x384xbf16>
    tpu.vector_store %arg6[%c0_571, %c128_572], %353 {strides = array<i32>} : memref<4x640xbf16, #tpu.memory_space<vmem>>, vector<4x384xbf16>,
    %c0_573 = arith.constant 0 : index
    %c7 = arith.constant 7 : index
    %c0_574 = arith.constant 0 : index
    %c109_575 = arith.constant 109 : index
    %355 = vector.load %arg2[%c0_573, %c7, %c0_574, %c109_575] : memref<1x8x4x640xbf16, #tpu.memory_space<vmem>>, vector<1x1x4x384xbf16>
    %356 = vector.shape_cast %355 : vector<1x1x4x384xbf16> to vector<4x384xbf16>
    %c0_576 = arith.constant 0 : index
    %c0_577 = arith.constant 0 : index
    %357 = vector.load %arg7[%c0_576, %c0_577] : memref<72x384xbf16, #tpu.memory_space<vmem>>, vector<4x384xbf16>
    tpu.vector_store %arg7[%c0_576, %c0_577], %356 {strides = array<i32>} : memref<72x384xbf16, #tpu.memory_space<vmem>>, vector<4x384xbf16>,
    %c0_578 = arith.constant 0 : index
    %c109_579 = arith.constant 109 : index
    %358 = vector.load %arg6[%c0_578, %c109_579] : memref<4x640xbf16, #tpu.memory_space<vmem>>, vector<4x384xbf16>
    %c4_580 = arith.constant 4 : index
    %c0_581 = arith.constant 0 : index
    %359 = vector.load %arg7[%c4_580, %c0_581] : memref<72x384xbf16, #tpu.memory_space<vmem>>, vector<4x384xbf16>
    tpu.vector_store %arg7[%c4_580, %c0_581], %358 {strides = array<i32>} : memref<72x384xbf16, #tpu.memory_space<vmem>>, vector<4x384xbf16>,
    %c0_582 = arith.constant 0 : index
    %c7_583 = arith.constant 7 : index
    %c0_584 = arith.constant 0 : index
    %c110_585 = arith.constant 110 : index
    %360 = vector.load %arg2[%c0_582, %c7_583, %c0_584, %c110_585] : memref<1x8x4x640xbf16, #tpu.memory_space<vmem>>, vector<1x1x4x384xbf16>
    %361 = vector.shape_cast %360 : vector<1x1x4x384xbf16> to vector<4x384xbf16>
    %c8_586 = arith.constant 8 : index
    %c0_587 = arith.constant 0 : index
    %362 = vector.load %arg7[%c8_586, %c0_587] : memref<72x384xbf16, #tpu.memory_space<vmem>>, vector<4x384xbf16>
    tpu.vector_store %arg7[%c8_586, %c0_587], %361 {strides = array<i32>} : memref<72x384xbf16, #tpu.memory_space<vmem>>, vector<4x384xbf16>,
    %c0_588 = arith.constant 0 : index
    %c110_589 = arith.constant 110 : index
    %363 = vector.load %arg6[%c0_588, %c110_589] : memref<4x640xbf16, #tpu.memory_space<vmem>>, vector<4x384xbf16>
    %c12_590 = arith.constant 12 : index
    %c0_591 = arith.constant 0 : index
    %364 = vector.load %arg7[%c12_590, %c0_591] : memref<72x384xbf16, #tpu.memory_space<vmem>>, vector<4x384xbf16>
    tpu.vector_store %arg7[%c12_590, %c0_591], %363 {strides = array<i32>} : memref<72x384xbf16, #tpu.memory_space<vmem>>, vector<4x384xbf16>,
    %c0_592 = arith.constant 0 : index
    %c7_593 = arith.constant 7 : index
    %c0_594 = arith.constant 0 : index
    %c111_595 = arith.constant 111 : index
    %365 = vector.load %arg2[%c0_592, %c7_593, %c0_594, %c111_595] : memref<1x8x4x640xbf16, #tpu.memory_space<vmem>>, vector<1x1x4x384xbf16>
    %366 = vector.shape_cast %365 : vector<1x1x4x384xbf16> to vector<4x384xbf16>
    %c16_596 = arith.constant 16 : index
    %c0_597 = arith.constant 0 : index
    %367 = vector.load %arg7[%c16_596, %c0_597] : memref<72x384xbf16, #tpu.memory_space<vmem>>, vector<4x384xbf16>
    tpu.vector_store %arg7[%c16_596, %c0_597], %366 {strides = array<i32>} : memref<72x384xbf16, #tpu.memory_space<vmem>>, vector<4x384xbf16>,
    %c0_598 = arith.constant 0 : index
    %c111_599 = arith.constant 111 : index
    %368 = vector.load %arg6[%c0_598, %c111_599] : memref<4x640xbf16, #tpu.memory_space<vmem>>, vector<4x384xbf16>
    %c20_600 = arith.constant 20 : index
    %c0_601 = arith.constant 0 : index
    %369 = vector.load %arg7[%c20_600, %c0_601] : memref<72x384xbf16, #tpu.memory_space<vmem>>, vector<4x384xbf16>
    tpu.vector_store %arg7[%c20_600, %c0_601], %368 {strides = array<i32>} : memref<72x384xbf16, #tpu.memory_space<vmem>>, vector<4x384xbf16>,
    %c0_602 = arith.constant 0 : index
    %c7_603 = arith.constant 7 : index
    %c0_604 = arith.constant 0 : index
    %c127_605 = arith.constant 127 : index
    %370 = vector.load %arg2[%c0_602, %c7_603, %c0_604, %c127_605] : memref<1x8x4x640xbf16, #tpu.memory_space<vmem>>, vector<1x1x4x384xbf16>
    %371 = vector.shape_cast %370 : vector<1x1x4x384xbf16> to vector<4x384xbf16>
    %c24_606 = arith.constant 24 : index
    %c0_607 = arith.constant 0 : index
    %372 = vector.load %arg7[%c24_606, %c0_607] : memref<72x384xbf16, #tpu.memory_space<vmem>>, vector<4x384xbf16>
    tpu.vector_store %arg7[%c24_606, %c0_607], %371 {strides = array<i32>} : memref<72x384xbf16, #tpu.memory_space<vmem>>, vector<4x384xbf16>,
    %c0_608 = arith.constant 0 : index
    %c127_609 = arith.constant 127 : index
    %373 = vector.load %arg6[%c0_608, %c127_609] : memref<4x640xbf16, #tpu.memory_space<vmem>>, vector<4x384xbf16>
    %c28_610 = arith.constant 28 : index
    %c0_611 = arith.constant 0 : index
    %374 = vector.load %arg7[%c28_610, %c0_611] : memref<72x384xbf16, #tpu.memory_space<vmem>>, vector<4x384xbf16>
    tpu.vector_store %arg7[%c28_610, %c0_611], %373 {strides = array<i32>} : memref<72x384xbf16, #tpu.memory_space<vmem>>, vector<4x384xbf16>,
    %c0_612 = arith.constant 0 : index
    %c7_613 = arith.constant 7 : index
    %c0_614 = arith.constant 0 : index
    %c128_615 = arith.constant 128 : index
    %375 = vector.load %arg2[%c0_612, %c7_613, %c0_614, %c128_615] : memref<1x8x4x640xbf16, #tpu.memory_space<vmem>>, vector<1x1x4x384xbf16>
    %376 = vector.shape_cast %375 : vector<1x1x4x384xbf16> to vector<4x384xbf16>
    %c32_616 = arith.constant 32 : index
    %c0_617 = arith.constant 0 : index
    %377 = vector.load %arg7[%c32_616, %c0_617] : memref<72x384xbf16, #tpu.memory_space<vmem>>, vector<4x384xbf16>
    tpu.vector_store %arg7[%c32_616, %c0_617], %376 {strides = array<i32>} : memref<72x384xbf16, #tpu.memory_space<vmem>>, vector<4x384xbf16>,
    %c0_618 = arith.constant 0 : index
    %c128_619 = arith.constant 128 : index
    %378 = vector.load %arg6[%c0_618, %c128_619] : memref<4x640xbf16, #tpu.memory_space<vmem>>, vector<4x384xbf16>
    %c36_620 = arith.constant 36 : index
    %c0_621 = arith.constant 0 : index
    %379 = vector.load %arg7[%c36_620, %c0_621] : memref<72x384xbf16, #tpu.memory_space<vmem>>, vector<4x384xbf16>
    tpu.vector_store %arg7[%c36_620, %c0_621], %378 {strides = array<i32>} : memref<72x384xbf16, #tpu.memory_space<vmem>>, vector<4x384xbf16>,
    %c0_622 = arith.constant 0 : index
    %c7_623 = arith.constant 7 : index
    %c0_624 = arith.constant 0 : index
    %c129_625 = arith.constant 129 : index
    %380 = vector.load %arg2[%c0_622, %c7_623, %c0_624, %c129_625] : memref<1x8x4x640xbf16, #tpu.memory_space<vmem>>, vector<1x1x4x384xbf16>
    %381 = vector.shape_cast %380 : vector<1x1x4x384xbf16> to vector<4x384xbf16>
    %c40_626 = arith.constant 40 : index
    %c0_627 = arith.constant 0 : index
    %382 = vector.load %arg7[%c40_626, %c0_627] : memref<72x384xbf16, #tpu.memory_space<vmem>>, vector<4x384xbf16>
    tpu.vector_store %arg7[%c40_626, %c0_627], %381 {strides = array<i32>} : memref<72x384xbf16, #tpu.memory_space<vmem>>, vector<4x384xbf16>,
    %c0_628 = arith.constant 0 : index
    %c129_629 = arith.constant 129 : index
    %383 = vector.load %arg6[%c0_628, %c129_629] : memref<4x640xbf16, #tpu.memory_space<vmem>>, vector<4x384xbf16>
    %c44_630 = arith.constant 44 : index
    %c0_631 = arith.constant 0 : index
    %384 = vector.load %arg7[%c44_630, %c0_631] : memref<72x384xbf16, #tpu.memory_space<vmem>>, vector<4x384xbf16>
    tpu.vector_store %arg7[%c44_630, %c0_631], %383 {strides = array<i32>} : memref<72x384xbf16, #tpu.memory_space<vmem>>, vector<4x384xbf16>,
    %c0_632 = arith.constant 0 : index
    %c7_633 = arith.constant 7 : index
    %c0_634 = arith.constant 0 : index
    %c145_635 = arith.constant 145 : index
    %385 = vector.load %arg2[%c0_632, %c7_633, %c0_634, %c145_635] : memref<1x8x4x640xbf16, #tpu.memory_space<vmem>>, vector<1x1x4x384xbf16>
    %386 = vector.shape_cast %385 : vector<1x1x4x384xbf16> to vector<4x384xbf16>
    %c48_636 = arith.constant 48 : index
    %c0_637 = arith.constant 0 : index
    %387 = vector.load %arg7[%c48_636, %c0_637] : memref<72x384xbf16, #tpu.memory_space<vmem>>, vector<4x384xbf16>
    tpu.vector_store %arg7[%c48_636, %c0_637], %386 {strides = array<i32>} : memref<72x384xbf16, #tpu.memory_space<vmem>>, vector<4x384xbf16>,
    %c0_638 = arith.constant 0 : index
    %c145_639 = arith.constant 145 : index
    %388 = vector.load %arg6[%c0_638, %c145_639] : memref<4x640xbf16, #tpu.memory_space<vmem>>, vector<4x384xbf16>
    %c52_640 = arith.constant 52 : index
    %c0_641 = arith.constant 0 : index
    %389 = vector.load %arg7[%c52_640, %c0_641] : memref<72x384xbf16, #tpu.memory_space<vmem>>, vector<4x384xbf16>
    tpu.vector_store %arg7[%c52_640, %c0_641], %388 {strides = array<i32>} : memref<72x384xbf16, #tpu.memory_space<vmem>>, vector<4x384xbf16>,
    %c0_642 = arith.constant 0 : index
    %c7_643 = arith.constant 7 : index
    %c0_644 = arith.constant 0 : index
    %c146_645 = arith.constant 146 : index
    %390 = vector.load %arg2[%c0_642, %c7_643, %c0_644, %c146_645] : memref<1x8x4x640xbf16, #tpu.memory_space<vmem>>, vector<1x1x4x384xbf16>
    %391 = vector.shape_cast %390 : vector<1x1x4x384xbf16> to vector<4x384xbf16>
    %c56_646 = arith.constant 56 : index
    %c0_647 = arith.constant 0 : index
    %392 = vector.load %arg7[%c56_646, %c0_647] : memref<72x384xbf16, #tpu.memory_space<vmem>>, vector<4x384xbf16>
    tpu.vector_store %arg7[%c56_646, %c0_647], %391 {strides = array<i32>} : memref<72x384xbf16, #tpu.memory_space<vmem>>, vector<4x384xbf16>,
    %c0_648 = arith.constant 0 : index
    %c146_649 = arith.constant 146 : index
    %393 = vector.load %arg6[%c0_648, %c146_649] : memref<4x640xbf16, #tpu.memory_space<vmem>>, vector<4x384xbf16>
    %c60_650 = arith.constant 60 : index
    %c0_651 = arith.constant 0 : index
    %394 = vector.load %arg7[%c60_650, %c0_651] : memref<72x384xbf16, #tpu.memory_space<vmem>>, vector<4x384xbf16>
    tpu.vector_store %arg7[%c60_650, %c0_651], %393 {strides = array<i32>} : memref<72x384xbf16, #tpu.memory_space<vmem>>, vector<4x384xbf16>,
    %c0_652 = arith.constant 0 : index
    %c7_653 = arith.constant 7 : index
    %c0_654 = arith.constant 0 : index
    %c147_655 = arith.constant 147 : index
    %395 = vector.load %arg2[%c0_652, %c7_653, %c0_654, %c147_655] : memref<1x8x4x640xbf16, #tpu.memory_space<vmem>>, vector<1x1x4x384xbf16>
    %396 = vector.shape_cast %395 : vector<1x1x4x384xbf16> to vector<4x384xbf16>
    %c64_656 = arith.constant 64 : index
    %c0_657 = arith.constant 0 : index
    %397 = vector.load %arg7[%c64_656, %c0_657] : memref<72x384xbf16, #tpu.memory_space<vmem>>, vector<4x384xbf16>
    tpu.vector_store %arg7[%c64_656, %c0_657], %396 {strides = array<i32>} : memref<72x384xbf16, #tpu.memory_space<vmem>>, vector<4x384xbf16>,
    %c0_658 = arith.constant 0 : index
    %c147_659 = arith.constant 147 : index
    %398 = vector.load %arg6[%c0_658, %c147_659] : memref<4x640xbf16, #tpu.memory_space<vmem>>, vector<4x384xbf16>
    %c68_660 = arith.constant 68 : index
    %c0_661 = arith.constant 0 : index
    %399 = vector.load %arg7[%c68_660, %c0_661] : memref<72x384xbf16, #tpu.memory_space<vmem>>, vector<4x384xbf16>
    tpu.vector_store %arg7[%c68_660, %c0_661], %398 {strides = array<i32>} : memref<72x384xbf16, #tpu.memory_space<vmem>>, vector<4x384xbf16>,
    %c6_662 = arith.constant 6 : index
    %c0_663 = arith.constant 0 : index
    %c0_664 = arith.constant 0 : index
    %400 = vector.load %arg3[%c6_662, %c0_663, %c0_664] : memref<7x8x72xbf16, #tpu.memory_space<vmem>>, vector<1x8x72xbf16>
    %401 = vector.shape_cast %400 : vector<1x8x72xbf16> to vector<8x72xbf16>
    %c0_665 = arith.constant 0 : index
    %c0_666 = arith.constant 0 : index
    %402 = vector.load %arg7[%c0_665, %c0_666] : memref<72x384xbf16, #tpu.memory_space<vmem>>, vector<72x384xbf16>
    %cst_667 = arith.constant dense<0.000000e+00> : vector<8x384xf32>
    %403 = tpu.matmul %401, %402, %cst_667 {dimension_numbers = #tpu.dot_dimension_numbers<[1], [0], [0], [1], [0, 0, 1, 1], [], []>} : vector<8x72xbf16>, vector<72x384xbf16>, vector<8x384xf32> -> vector<8x384xf32>
    %cst_668 = arith.constant 0.000000e+00 : f32
    %404 = vector.broadcast %cst_668 : f32 to vector<8x384xf32>
    %405 = arith.maximumf %403, %404 : vector<8x384xf32>
    %406 = vector.extract_strided_slice %405 {offsets = [0, 0], sizes = [4, 384], strides = [1, 1]} : vector<8x384xf32> to vector<4x384xf32>
    %c0_669 = arith.constant 0 : index
    %c6_670 = arith.constant 6 : index
    %c0_671 = arith.constant 0 : index
    %c0_672 = arith.constant 0 : index
    %407 = vector.load %arg4[%c0_669, %c6_670, %c0_671, %c0_672] : memref<1x7x4x384xf32, #tpu.memory_space<vmem>>, vector<1x1x4x384xf32>
    %408 = vector.shape_cast %407 : vector<1x1x4x384xf32> to vector<4x384xf32>
    %409 = vector.shape_cast %406 : vector<4x384xf32> to vector<1x1x4x384xf32>
    tpu.vector_store %arg4[%c0_669, %c6_670, %c0_671, %c0_672], %409 {strides = array<i32>} : memref<1x7x4x384xf32, #tpu.memory_space<vmem>>, vector<1x1x4x384xf32>,
    %410 = vector.extract_strided_slice %405 {offsets = [4, 0], sizes = [4, 384], strides = [1, 1]} : vector<8x384xf32> to vector<4x384xf32>
    %c0_673 = arith.constant 0 : index
    %c0_674 = arith.constant 0 : index
    %c0_675 = arith.constant 0 : index
    %411 = vector.load %arg5[%c0_673, %c0_674, %c0_675] : memref<1x4x384xf32, #tpu.memory_space<vmem>>, vector<1x4x384xf32>
    %412 = vector.shape_cast %411 : vector<1x4x384xf32> to vector<4x384xf32>
    %413 = vector.shape_cast %410 : vector<4x384xf32> to vector<1x4x384xf32>
    tpu.vector_store %arg5[%c0_673, %c0_674, %c0_675], %413 {strides = array<i32>} : memref<1x4x384xf32, #tpu.memory_space<vmem>>, vector<1x4x384xf32>,
    return
  }
  func.func @transform_0(%arg0: i32) -> (i32, i32) {
    %c0_i32 = arith.constant 0 : i32
    %c0_i32_0 = arith.constant 0 : i32
    %c0_i32_1 = arith.constant 0 : i32
    return %c0_i32, %c0_i32_0 : i32, i32
  }
  func.func @transform_1(%arg0: i32) -> (i32, i32, i32, i32) {
    %c0_i32 = arith.constant 0 : i32
    %c0_i32_0 = arith.constant 0 : i32
    %c0_i32_1 = arith.constant 0 : i32
    %c0_i32_2 = arith.constant 0 : i32
    return %arg0, %c0_i32, %c0_i32_0, %c0_i32_1 : i32, i32, i32, i32
  }
  func.func @transform_2(%arg0: i32) -> (i32, i32, i32) {
    %c0_i32 = arith.constant 0 : i32
    %c0_i32_0 = arith.constant 0 : i32
    %c0_i32_1 = arith.constant 0 : i32
    %c0_i32_2 = arith.constant 0 : i32
    return %c0_i32, %c0_i32_0, %c0_i32_1 : i32, i32, i32
  }
  func.func @transform_3(%arg0: i32) -> (i32, i32, i32, i32) {
    %c0_i32 = arith.constant 0 : i32
    %c0_i32_0 = arith.constant 0 : i32
    %c0_i32_1 = arith.constant 0 : i32
    %c0_i32_2 = arith.constant 0 : i32
    return %arg0, %c0_i32, %c0_i32_0, %c0_i32_1 : i32, i32, i32, i32
  }
  func.func @transform_4(%arg0: i32) -> (i32, i32, i32) {
    %c0_i32 = arith.constant 0 : i32
    %c0_i32_0 = arith.constant 0 : i32
    %c0_i32_1 = arith.constant 0 : i32
    return %arg0, %c0_i32, %c0_i32_0 : i32, i32, i32
  }
}

</mosaic_0001>

<bundles_post_ra>
// kernel: _lambda_.1
= control target key start
LH: loop header
LB: loop body
LE: loop exit
PB: predicated region body
PF: predicated region fallthrough
CT: control target
= control target key end

     0   :  { %s4357_s15 = smov 0   ;;  %s5328_s0 = inlined_call_operand.vmem [shape: f32[1,384], index: 0, kind: input, shape index: {}]   ;;  %s5329_s1 = inlined_call_operand.vmem [shape: bf16[2,8,4,640], index: 1, kind: input, shape index: {}]   ;;  %s5330_s2 = inlined_call_operand.vmem [shape: bf16[7,8,72], index: 2, kind: input, shape index: {}]   ;;  %s5331_s3 = inlined_call_operand.vmem [shape: f32[2,7,4,384], index: 3, kind: output, shape index: {0}]   ;;  %s5332_s4 = inlined_call_operand.vmem [shape: f32[2,4,384], index: 4, kind: output, shape index: {1}]  }
   0x1 LB: > { %s3763_s16 = sadd.s32 4294967295, %s4321_s15   ;;  %p3767_p0 = scmp.ge.s32.totalorder %s4321_s15, 1  ;;  %s4321_s15 = sphi %s4357_s15, %s15_s15  }
   0x2   : > { %p165_p1 = scmp.lt.s32.totalorder %s4321_s15, 3 }
   0x4   : > { %p166_p2 = pnand %p3767_p0, %p165_p1 }
   0x5   : > { %p196_p3 = scmp.lt.s32.totalorder (!%p166_p2), %s3763_s16, 1  ;;  %s4323_s21 = smov (!%p166_p2), 17  }
   0x6   : > { %169 = sbr.rel (%p166_p2) target bundleno = 3076 (0xc04), region = 32  ;;  %s4324_s22 = smov (!%p166_p2), 1  }
   0x7   : > { %s4325_s23 = smov (!%p166_p2), 127   ;;  %s4326_s24 = smov (!%p166_p2), 111  }
   0x8   : > { %s4327_s25 = smov (!%p166_p2), 110   ;;  %s4328_s26 = smov (!%p166_p2), 18  }
   0x9   : > { %s4329_s27 = smov (!%p166_p2), 19   ;;  %s4330_s28 = smov (!%p166_p2), 109  }
   0xb   : > { %s5334_s16 = smov (!%p196_p3, %s3763_s16), 1  ;;  %v4331_v20 = vmov 0   ;;  %vm300_vm0 = vcmask 7168   ;;  %vm277_vm1 = vcmask 138240   ;;  %vm334_vm2 = vcmask 1039360  }
   0xc   : > { %s4295_s17 = smul.u32 80, %s5334_s16  ;;  %285 = vst [vmem:[#allocation3 + $0x20] sm:$0xc] %v4331_v20  ;;  %vm229_vm3 = vcmask 1043456   ;;  %vm357_vm4 = vcmask 908288   ;;  %vm254_vm5 = vcmask 146432  }
   0xd   : > { %212 = vst [vmem:[#allocation2] sm:$0xff] %v4331_v20  ;;  %vm380_vm6 = vcmask 900096   ;;  %vm231_vm7 = vcmask 154624   ;;  %vm403_vm8 = vcmask 891904   ;;  %vm503_vm9 = vcmask 588800   ;;  %s4296_s5 = smul.u32 84, %s5334_s16 }
   0xe   : > { %s4371_s20 = scalar_lea.vmem %s5329_s1, %s4295_s17  ;;  %213 = vst [vmem:[#allocation2 + $0x8] sm:$0x3] %v4331_v20 }
   0xf   : > { %v3771_v0 = vld [vmem:[%s4371_s20 + $0xa] sm:$0xff]  ;;  %238 = vst [vmem:[#allocation3] sm:$0xcc] %v4331_v20  ;;  %s4464_s10 = scalar_lea.vmem %s5331_s3, %s4296_s5 }
  0x10   : > { %218 = vst [vmem:[#allocation1] ss:$2 sm:$0xff] %v3771_v0  ;;  %v3775_v7 = vld [vmem:[%s4371_s20 + $0xc] sm:$0x3f] }
  0x11   : > { %v3776_v10 = vld [vmem:[%s4371_s20 + $0xc] sm:$0xff]  ;;  %239 = vst [vmem:[#allocation3 + $0x8] sm:$0xc] %v4331_v20 }
  0x12   : > { %261 = vst [vmem:[#allocation3 + $0xc] sm:$0xcc] %v4331_v20 }
  0x13   : > { %262 = vst [vmem:[#allocation3 + $0x14] sm:$0xc] %v4331_v20 }
  0x14   : > { %284 = vst [vmem:[#allocation3 + $0x18] sm:$0xcc] %v4331_v20 }
  0x15   : > { %307 = vst [vmem:[#allocation3 + $0x24] sm:$0xcc] %v4331_v20 }
  0x16   : > { %308 = vst [vmem:[#allocation3 + $0x2c] sm:$0xc] %v4331_v20 }
  0x17   : > { %v219_v1 = vld.sshfl [vmem:[#allocation1] sm:$0xff pattern:$0x75643120]  ;;  %v221_v2 = vld.sshfl [vmem:[#allocation1 + $0x8] sm:$0xff pattern:$0x75643120] }
  0x18   : > { %242 = vst [vmem:[#allocation1] ss:$2 sm:$0xff] %v3771_v0 }
  0x19   : > { %318 = vst [vmem:[#allocation3 + $0x30] sm:$0xcc] %v4331_v20 }
  0x1a   : > { %319 = vst [vmem:[#allocation3 + $0x38] sm:$0xc] %v4331_v20 }
  0x1b   : > { %341 = vst [vmem:[#allocation3 + $0x3c] sm:$0xcc] %v4331_v20 }
  0x1c   : > { %342 = vst [vmem:[#allocation3 + $0x44] sm:$0xc] %v4331_v20 }
  0x1d   : > { %364 = vst [vmem:[#allocation3 + $0x48] sm:$0xcc] %v4331_v20 }
  0x1e   : > { %365 = vst [vmem:[#allocation3 + $0x50] sm:$0xc] %v4331_v20 }
  0x1f   : > { %v4374_v3 = vld.sshfl [vmem:[#allocation1] sm:$0xff pattern:$0x75643120]  ;;  %v245_v4 = vld.sshfl [vmem:[#allocation1 + $0x8] sm:$0xff pattern:$0x75643120] }
  0x20   : > { %265 = vst [vmem:[#allocation1] ss:$2 sm:$0xff] %v3771_v0 }
  0x21   : > { %387 = vst [vmem:[#allocation3 + $0x54] sm:$0xcc] %v4331_v20 }
  0x22   : > { %388 = vst [vmem:[#allocation3 + $0x5c] sm:$0xc] %v4331_v20 }
  0x23   : > { %410 = vst [vmem:[#allocation3 + $0x60] sm:$0xcc] %v4331_v20 }
  0x24   : > { %411 = vst [vmem:[#allocation3 + $0x68] sm:$0xc] %v4331_v20 }
  0x27   : > { %v268_v5 = vld.sshfl [vmem:[#allocation1 + $0x8] sm:$0xff pattern:$0x75643120]  ;;  %v4376_v6 = vld.sshfl [vmem:[#allocation1] sm:$0xff pattern:$0x75643120] }
  0x28   : > { %272 = vrot.lane.b32.xlu1 %v268_v5, %s4323_s21  ;;  %288 = vst [vmem:[#allocation1] ss:$2 sm:$0xff] %v3771_v0 }
  0x2f   : > { %v289_v8 = vld.sshfl [vmem:[#allocation1] sm:$0xff pattern:$0x75643120]  ;;  %v291_v9 = vld.sshfl [vmem:[#allocation1 + $0x8] sm:$0xff pattern:$0x75643120] }
  0x30   : > { %311 = vst [vmem:[#allocation1] ss:$2 sm:$0xff] %v3775_v7  ;;  %295 = vrot.lane.b32.xlu2 %v291_v9, %s4324_s22 }
  0x37   : > { %v312_v11 = vld.sshfl [vmem:[#allocation1] sm:$0xff pattern:$0x75643120]  ;;  %v313_v12 = vld.sshfl [vmem:[#allocation1 + $0x8] sm:$0xff pattern:$0x75643120] }
  0x38   : > { %322 = vst [vmem:[#allocation1] ss:$2 sm:$0xff] %v3776_v10 }
  0x39   : > { %316 = vst [vmem:[#allocation3 + $0x30] sm:$0x33] %v312_v11 }
  0x3a   : > { %317 = vst [vmem:[#allocation3 + $0x38] sm:$0x3] %v313_v12 }
  0x3f   : > { %v323_v13 = vld.sshfl [vmem:[#allocation1] sm:$0xff pattern:$0x75643120]  ;;  %v325_v14 = vld.sshfl [vmem:[#allocation1 + $0x8] sm:$0xff pattern:$0x75643120] }
  0x40   : > { %345 = vst [vmem:[#allocation1] ss:$2 sm:$0xff] %v3776_v10  ;;  %329 = vrot.lane.b32.xlu2 %v325_v14, %s4325_s23 }
  0x47   : > { %v348_v15 = vld.sshfl [vmem:[#allocation1 + $0x8] sm:$0xff pattern:$0x75643120]  ;;  %v346_v16 = vld.sshfl [vmem:[#allocation1] sm:$0xff pattern:$0x75643120] }
  0x48   : > { %352 = vrot.lane.b32.xlu1 %v348_v15, %s4326_s24  ;;  %368 = vst [vmem:[#allocation1] ss:$2 sm:$0xff] %v3776_v10  ;;  %350 = vrot.lane.b32.xlu2 %v346_v16, %s4326_s24  ;;  %v3814_v15 = vld [vmem:[#allocation3 + $0x38] sm:$0xf] }
  0x4f   : > { %v371_v17 = vld.sshfl [vmem:[#allocation1 + $0x8] sm:$0xff pattern:$0x75643120]  ;;  %v369_v18 = vld.sshfl [vmem:[#allocation1] sm:$0xff pattern:$0x75643120] }
  0x50   : > { %375 = vrot.lane.b32.xlu1 %v371_v17, %s4327_s25  ;;  %373 = vrot.lane.b32.xlu0 %v369_v18, %s4327_s25  ;;  %391 = vst [vmem:[#allocation1] ss:$2 sm:$0xff] %v3776_v10 }
  0x51   : > { %249 = vrot.lane.b32.xlu2 %v245_v4, %s4328_s26 }
  0x57   : > { %v394_v19 = vld.sshfl [vmem:[#allocation1 + $0x8] sm:$0xff pattern:$0x75643120]  ;;  %v392_v21 = vld.sshfl [vmem:[#allocation1] sm:$0xff pattern:$0x75643120] }
  0x58   : > { %225 = vrot.lane.b32.xlu1 %v221_v2, %s4329_s27  ;;  %398 = vrot.lane.b32.xlu0 %v394_v19, %s4330_s28 }
  0x59   : > { %223 = vrot.lane.b32.xlu2 %v219_v1, %s4329_s27 }
  0x60   : > { %293 = vrot.lane.b32.xlu1 %v289_v8, %s4324_s22  ;;  %396 = vrot.lane.b32.xlu0 %v392_v21, %s4330_s28 }
  0x68   : > { %327 = vrot.lane.b32.xlu0 %v323_v13, %s4325_s23 }
  0x70   : > { %270 = vrot.lane.b32.xlu0 %v4376_v6, %s4323_s21 }
  0x78   : > { %247 = vrot.lane.b32.xlu0 %v4374_v3, %s4328_s26 }
  0x8a   : > { %v296_v22 = vpop.permute.xlu2 %295 }
  0x8b   : > { %v298_v23 = vrot.slane %v296_v22, 4 }
  0x8d   : > { %v302_v24 = vsel %vm300_vm0, %v296_v22, %v298_v23 }
  0x8e   : > { %306 = vst [vmem:[#allocation3 + $0x2c] sm:$0x3] %v302_v24 }
  0x95   : > { %v4216_v19 = vld [vmem:[#allocation3 + $0x28] sm:$0xf0] }
  0x9a   : > { %v4399_v25 = vpop.permute.xlu1 %272  ;;  %v4401_v26 = vpop.permute.xlu2 %329 }
  0x9b   : > { %v275_v27 = vrot.slane %v4399_v25, 4  ;;  %v332_v28 = vrot.slane %v4401_v26, 4 }
  0x9d   : > { %v279_v29 = vsel %vm277_vm1, %v4399_v25, %v275_v27  ;;  %v336_v30 = vsel %vm334_vm2, %v4401_v26, %v332_v28 }
  0x9e   : > { %283 = vst [vmem:[#allocation3 + $0x20] sm:$0x3] %v279_v29 }
  0x9f   : > { %340 = vst [vmem:[#allocation3 + $0x44] sm:$0x3] %v336_v30 }
  0xa2   : > { %v351_v31 = vpop.permute.xlu2 %350 }
  0xa3   : > { %v354_v32 = vrot.slane %v351_v31, 4 }
  0xa5   : > { %v3802_v18 = vld [vmem:[#allocation3 + $0x20] sm:$0xf] }
  0xa6   : > { %v4219_v11 = vld [vmem:[#allocation3 + $0x40] sm:$0xf0] }
  0xa7   : > { %v3815_v21 = vor.u32 %v4219_v11, %v3814_v15 }
  0xab   : > { %v4413_v35 = vpop.permute.xlu2 %249 }
  0xac   : > { %v252_v39 = vrot.slane %v4413_v35, 4 }
  0xae   : > { %v256_v40 = vsel %vm254_vm5, %v4413_v35, %v252_v39 }
  0xaf   : > { %260 = vst [vmem:[#allocation3 + $0x14] sm:$0x3] %v256_v40 }
  0xb3   : > { %v224_v48 = vpop.permute.xlu2 %223 }
  0xb4   : > { %v227_v49 = vrot.slane %v224_v48, 4 }
  0xba   : > { %v353_v33 = vpop.permute.xlu1 %352 }
  0xbb   : > { %v355_v34 = vrot.slane %v353_v33, 4 }
  0xbd   : > { %v359_v36 = vsel %vm357_vm4, %v353_v33, %v355_v34  ;;  %v356_v37 = vsel %vm229_vm3, %v354_v32, %v355_v34  ;;  %v4213_v34 = vld [vmem:[#allocation3 + $0x10] sm:$0xf0] }
  0xbe   : > { %363 = vst [vmem:[#allocation3 + $0x50] sm:$0x3] %v359_v36  ;;  %v358_v38 = vsel %vm357_vm4, %v351_v31, %v356_v37 }
  0xbf   : > { %362 = vst [vmem:[#allocation3 + $0x48] sm:$0x33] %v358_v38  ;;  %v3803_v38 = vor.u32 %v4216_v19, %v3802_v18 }
  0xc2   : > { %v376_v41 = vpop.permute.xlu1 %375  ;;  %v374_v42 = vpop.permute.xlu0 %373 }
  0xc3   : > { %v378_v43 = vrot.slane %v376_v41, 4  ;;  %v377_v44 = vrot.slane %v374_v42, 4 }
  0xc5   : > { %v382_v45 = vsel %vm380_vm6, %v376_v41, %v378_v43  ;;  %v379_v46 = vsel %vm229_vm3, %v377_v44, %v378_v43  ;;  %v3826_v6 = vld [vmem:[#allocation3 + $0x50] sm:$0xf] }
  0xc6   : > { %386 = vst [vmem:[#allocation3 + $0x5c] sm:$0x3] %v382_v45  ;;  %v381_v47 = vsel %vm380_vm6, %v374_v42, %v379_v46  ;;  %v4220_v24 = vld [vmem:[#allocation3 + $0x4c] sm:$0xf]  ;;  %v3818_v26 = vld [vmem:[#allocation3 + $0x48] sm:$0xf] }
  0xc7   : > { %385 = vst [vmem:[#allocation3 + $0x54] sm:$0x33] %v381_v47  ;;  %v3806_v42 = vld [vmem:[#allocation3 + $0x30] sm:$0xf]  ;;  %v4217_v46 = vld [vmem:[#allocation3 + $0x34] sm:$0xf] }
  0xca   : > { %v226_v50 = vpop.permute.xlu1 %225  ;;  %v399_v51 = vpop.permute.xlu0 %398 }
  0xcb   : > { %v228_v52 = vrot.slane %v226_v50, 4  ;;  %v401_v53 = vrot.slane %v399_v51, 4 }
  0xcd   : > { %v233_v54 = vsel %vm231_vm7, %v226_v50, %v228_v52  ;;  %v405_v55 = vsel %vm403_vm8, %v399_v51, %v401_v53  ;;  %v230_v56 = vsel %vm229_vm3, %v227_v49, %v228_v52  ;;  %v4222_v7 = vld [vmem:[#allocation3 + $0x58] sm:$0xf0]  ;;  %v412_v49 = vld [vmem:[%s5330_s2] sm:$0xf] }
  0xce   : > { %237 = vst [vmem:[#allocation3 + $0x8] sm:$0x3] %v233_v54  ;;  %v232_v57 = vsel %vm231_vm7, %v224_v48, %v230_v56  ;;  %v3827_v13 = vor.u32 %v4222_v7, %v3826_v6  ;;  %v4221_v30 = vld [vmem:[#allocation3 + $0x50] sm:$0xf0] }
  0xcf   : > { %409 = vst [vmem:[#allocation3 + $0x68] sm:$0x3] %v405_v55  ;;  %v3819_v40 = vor.u32 %v4221_v30, %v3818_v26 }
  0xd0   : > { %236 = vst [vmem:[#allocation3] sm:$0x33] %v232_v57 }
  0xd2   : > { %v294_v58 = vpop.permute.xlu1 %293  ;;  %v397_v59 = vpop.permute.xlu0 %396 }
  0xd3   : > { %v297_v60 = vrot.slane %v294_v58, 4  ;;  %v400_v61 = vrot.slane %v397_v59, 4 }
  0xd5   : > { %v299_v62 = vsel %vm229_vm3, %v297_v60, %v298_v23  ;;  %v402_v63 = vsel %vm229_vm3, %v400_v61, %v401_v53  ;;  %v3790_v33 = vld [vmem:[#allocation3 + $0x8] sm:$0xf] }
  0xd6   : > { %v430_v0 = vld [vmem:[#allocation3 + $0x68] sm:$0xf]  ;;  %v301_v1 = vsel %vm300_vm0, %v294_v58, %v299_v62  ;;  %v404_v2 = vsel %vm403_vm8, %v397_v59, %v402_v63  ;;  %v3791_v45 = vor.u32 %v4213_v34, %v3790_v33  ;;  %v214_v62 = vld [vmem:[%s5328_s0] sm:$0x7] }
  0xd7   : > { %305 = vst [vmem:[#allocation3 + $0x24] sm:$0x33] %v301_v1  ;;  %v475_v3 = vunpack.c.l.b16 %v430_v0  ;;  %v4211_v58 = vld [vmem:[#allocation3 + $0x4] sm:$0xf]  ;;  %v3782_v59 = vld [vmem:[#allocation3] sm:$0xf] }
  0xd8   : > { %408 = vst [vmem:[#allocation3 + $0x60] sm:$0x33] %v404_v2  ;;  %v4459_v63 = vperm.slane %v214_v62, 2 }
  0xd9   : > { %v490_v4 = vpack.c.b16 %v475_v3, %v475_v3 }
  0xda   : > { %v328_v5 = vpop.permute.xlu0 %327 }
  0xdb   : > { %v331_v8 = vrot.slane %v328_v5, 4  ;;  %v515_v9 = vsel %vm229_vm3, %v490_v4, 0  ;;  %v4468_v4 = vperm.slane %v214_v62, 0 }
  0xdc   : > { %546 = vmatpush.bf16.msra.mxu2 %v515_v9 }
  0xdd   : > { %v333_v10 = vsel %vm229_vm3, %v331_v8, %v332_v28  ;;  %v3820_v28 = vld [vmem:[#allocation3 + $0x54] sm:$0xf0] }
  0xde   : > { %v335_v12 = vsel %vm334_vm2, %v328_v5, %v333_v10  ;;  %v3823_v41 = vor.u32 %v4220_v24, %v3820_v28  ;;  %v3796_v50 = vld [vmem:[#allocation3 + $0x24] sm:$0xf0]  ;;  %v4215_v52 = vld [vmem:[#allocation3 + $0x20] sm:$0xf0]  ;;  %v4470_v5 = vperm.slane %v214_v62, 1 }
  0xdf   : > { %v429_v14 = vld [vmem:[#allocation3 + $0x60] sm:$0xff]  ;;  %339 = vst [vmem:[#allocation3 + $0x3c] sm:$0x33] %v335_v12 }
  0xe0   : > { %547 = vmatpush.bf16.msra.mxu2 %v3827_v13  ;;  %v473_v16 = vunpack.c.l.b16 %v429_v14  ;;  %v474_v17 = vunpack.c.h.b16 %v429_v14 }
  0xe2   : > { %v271_v20 = vpop.permute.xlu0 %270  ;;  %v488_v22 = vpack.c.b16 %v473_v16, %v473_v16  ;;  %v489_v23 = vpack.c.b16 %v474_v17, %v474_v17  ;;  %v3831_v16 = vld [vmem:[%s4371_s20 + $0x14] sm:$0xff] }
  0xe3   : > { %v274_v29 = vrot.slane %v271_v20, 4 }
  0xe4   : > { %548 = vmatpush.bf16.msra.mxu2 %v3815_v21  ;;  %v509_v31 = vsel %vm229_vm3, %v488_v22, 0  ;;  %v512_v32 = vsel %vm229_vm3, %v489_v23, 0 }
  0xe5   : > { %v276_v36 = vsel %vm229_vm3, %v274_v29, %v275_v27  ;;  %520 = vmatpush.bf16.msra.mxu0 %v509_v31  ;;  %533 = vmatpush.bf16.msra.mxu1 %v512_v32 }
  0xe6   : > { %v278_v37 = vsel %vm277_vm1, %v271_v20, %v276_v36  ;;  %v3808_v43 = vld [vmem:[#allocation3 + $0x3c] sm:$0xf0]  ;;  %v4218_v44 = vld [vmem:[#allocation3 + $0x38] sm:$0xf0] }
  0xe7   : > { %282 = vst [vmem:[#allocation3 + $0x18] sm:$0x33] %v278_v37  ;;  %v3807_v48 = vor.u32 %v4218_v44, %v3806_v42  ;;  %v3811_v27 = vor.u32 %v4217_v46, %v3808_v43 }
  0xe8   : > { %549 = vmatpush.bf16.msra.mxu2 %v3803_v38  ;;  %v3835_v38 = vld [vmem:[%s4371_s20 + $0x16] sm:$0x3f] }
  0xe9   : > { %521 = vmatpush.bf16.msra.mxu0 %v3819_v40  ;;  %534 = vmatpush.bf16.msra.mxu1 %v3823_v41 }
  0xea   : > { %v248_v47 = vpop.permute.xlu0 %247 }
  0xeb   : > { %v251_v25 = vrot.slane %v248_v47, 4 }
  0xec   : > { %550 = vmatpush.bf16.msra.mxu2 %v3791_v45  ;;  %v3836_v45 = vld [vmem:[%s4371_s20 + $0x16] sm:$0xff] }
  0xed   : > { %v253_v51 = vsel %vm229_vm3, %v251_v25, %v252_v39  ;;  %522 = vmatpush.bf16.msra.mxu0 %v3807_v48  ;;  %535 = vmatpush.bf16.msra.mxu1 %v3811_v27 }
  0xee   : > { %v4214_v53 = vld [vmem:[#allocation3 + $0x1c] sm:$0xf]  ;;  %v3794_v54 = vld [vmem:[#allocation3 + $0x18] sm:$0xf]  ;;  %v255_v55 = vsel %vm254_vm5, %v248_v47, %v253_v51 }
  0xef   : > { %259 = vst [vmem:[#allocation3 + $0xc] sm:$0x33] %v255_v55  ;;  %3830 = vmatmul.msk.bf16.vlgmr.msra.gmra.mxu2 %vm503_vm9, %v412_v49  ;;  %v3795_v56 = vor.u32 %v4215_v52, %v3794_v54  ;;  %v3799_v57 = vor.u32 %v4214_v53, %v3796_v50 }
  0xf1   : > { %523 = vmatpush.bf16.msra.mxu0 %v3795_v56  ;;  %536 = vmatpush.bf16.msra.mxu1 %v3799_v57 }
  0xf6   : > { %v3784_v35 = vld [vmem:[#allocation3 + $0xc] sm:$0xf0]  ;;  %v4212_v60 = vld [vmem:[#allocation3 + $0x8] sm:$0xf0] }
  0xf7   : > { %v3783_v39 = vor.u32 %v4212_v60, %v3782_v59  ;;  %v3787_v61 = vor.u32 %v4211_v58, %v3784_v35 }
  0xf9   : > { %524 = vmatpush.bf16.msra.mxu0 %v3783_v39  ;;  %537 = vmatpush.bf16.msra.mxu1 %v3787_v61 }
  0xfc   : > { %3828 = vmatmul.msk.bf16.vlgmr.msra.gmra.mxu0 %vm503_vm9, %v412_v49  ;;  %3829 = vmatmul.msk.bf16.vlgmr.msra.gmra.mxu1 %vm503_vm9, %v412_v49 }
 0x172   : > { %v552_v0 = vpop.f32.mrf.mxu2 }
 0x173   : > { %v558_v1 = vmax.f32 %v552_v0, 0.0 }
 0x175   : > { %565 = vst [vmem:[%s4464_s10 + $0x8] sm:$0xf] %v558_v1  ;;  %v575_v2 = vmul.f32 %v4459_v63, %v558_v1 }
 0x177   : > { %v577_v3 = vpack.c.bf16 %v575_v2, %v575_v2 }
 0x179   : > { %581 = vst.sshfl [vmem:[#allocation1 + $0x8] sm:$0xff pattern:$0x75643120] %v577_v3  ;;  %v526_v6 = vpop.f32.mrf.mxu0  ;;  %v539_v7 = vpop.f32.mrf.mxu1 }
 0x17a   : > { %v556_v8 = vmax.f32 %v526_v6, 0.0  ;;  %v557_v9 = vmax.f32 %v539_v7, 0.0  ;;  %v554_v10 = vpop.f32.mrf.mxu2 }
 0x17c   : > { %v573_v11 = vmul.f32 %v4468_v4, %v556_v8  ;;  %v561_v12 = vrot.slane %v557_v9, 4  ;;  %v574_v13 = vmul.f32 %v4470_v5, %v557_v9 }
 0x17e   : > { %v562_v14 = vsel %vm229_vm3, %v556_v8, %v561_v12  ;;  %v576_v15 = vpack.c.bf16 %v574_v13, %v573_v11 }
 0x17f   : > { %564 = vst [vmem:[%s4464_s10] sm:$0xff] %v562_v14 }
 0x180   : > { %579 = vst.sshfl [vmem:[#allocation1] sm:$0xff pattern:$0x75643120] %v576_v15 }
 0x181   : > { %589 = vst [vmem:[#allocation1] ss:$2 sm:$0xff] %v3831_v16  ;;  %v528_v17 = vpop.f32.mrf.mxu0  ;;  %v541_v18 = vpop.f32.mrf.mxu1 }
 0x187   : > { %v583_v19 = vld [vmem:[#allocation1 + $0x1] ss:$2 sm:$0xff] }
 0x188   : > { %585 = vst [vmem:[#allocation2 + $0x2] sm:$0x3f] %v583_v19  ;;  %v4477_v20 = vld.sshfl [vmem:[#allocation1] sm:$0xff pattern:$0x75643120] }
 0x189   : > { %v4479_v21 = vld.sshfl [vmem:[#allocation1 + $0x8] sm:$0xff pattern:$0x75643120] }
 0x18f   : > { %v607_v22 = vld [vmem:[#allocation2] sm:$0xff] }
 0x190   : > { %610 = vst [vmem:[#allocation1 + $0x1] ss:$2 sm:$0xff] %v607_v22  ;;  %v760_v42 = vld [vmem:[#allocation2 + $0x2] sm:$0x3f] }
 0x191   : > { %v790_v25 = vld [vmem:[#allocation2 + $0x2] sm:$0xff] }
 0x197   : > { %v4481_v23 = vld.sshfl [vmem:[#allocation1] sm:$0xff pattern:$0x75643120]  ;;  %v4483_v24 = vld.sshfl [vmem:[#allocation1 + $0x8] sm:$0xff pattern:$0x75643120] }
 0x198   : > { %630 = vst [vmem:[#allocation1] ss:$2 sm:$0xff] %v3831_v16 }
 0x19f   : > { %v4485_v26 = vld.sshfl [vmem:[#allocation1] sm:$0xff pattern:$0x75643120]  ;;  %v4487_v29 = vld.sshfl [vmem:[#allocation1 + $0x8] sm:$0xff pattern:$0x75643120] }
 0x1a0   : > { %651 = vst [vmem:[#allocation1 + $0x1] ss:$2 sm:$0xff] %v607_v22 }
 0x1a7   : > { %v4489_v28 = vld.sshfl [vmem:[#allocation1] sm:$0xff pattern:$0x75643120]  ;;  %v4491_v30 = vld.sshfl [vmem:[#allocation1 + $0x8] sm:$0xff pattern:$0x75643120] }
 0x1a8   : > { %671 = vst [vmem:[#allocation1] ss:$2 sm:$0xff] %v3831_v16 }
 0x1af   : > { %v674_v31 = vld.sshfl [vmem:[#allocation1 + $0x8] sm:$0xff pattern:$0x75643120]  ;;  %v672_v32 = vld.sshfl [vmem:[#allocation1] sm:$0xff pattern:$0x75643120] }
 0x1b0   : > { %678 = vrot.lane.b32.xlu0 %v674_v31, %s4323_s21  ;;  %676 = vrot.lane.b32.xlu2 %v672_v32, %s4323_s21  ;;  %692 = vst [vmem:[#allocation1 + $0x1] ss:$2 sm:$0xff] %v607_v22 }
 0x1b7   : > { %v695_v33 = vld.sshfl [vmem:[#allocation1 + $0x8] sm:$0xff pattern:$0x75643120]  ;;  %v693_v34 = vld.sshfl [vmem:[#allocation1] sm:$0xff pattern:$0x75643120] }
 0x1b8   : > { %699 = vrot.lane.b32.xlu2 %v695_v33, %s4323_s21  ;;  %697 = vrot.lane.b32.xlu1 %v693_v34, %s4323_s21  ;;  %712 = vst [vmem:[#allocation1] ss:$2 sm:$0xff] %v3831_v16 }
 0x1bf   : > { %v715_v36 = vld.sshfl [vmem:[#allocation1 + $0x8] sm:$0xff pattern:$0x75643120]  ;;  %v713_v37 = vld.sshfl [vmem:[#allocation1] sm:$0xff pattern:$0x75643120] }
 0x1c0   : > { %719 = vrot.lane.b32.xlu1 %v715_v36, %s4324_s22  ;;  %717 = vrot.lane.b32.xlu0 %v713_v37, %s4324_s22  ;;  %733 = vst [vmem:[#allocation1 + $0x1] ss:$2 sm:$0xff] %v607_v22 }
 0x1c7   : > { %v734_v40 = vld.sshfl [vmem:[#allocation1] sm:$0xff pattern:$0x75643120]  ;;  %v4500_v41 = vld.sshfl [vmem:[#allocation1 + $0x8] sm:$0xff pattern:$0x75643120] }
 0x1c8   : > { %738 = vrot.lane.b32.xlu2 %v734_v40, %s4324_s22  ;;  %753 = vst [vmem:[#allocation1] ss:$2 sm:$0xff] %v3835_v38 }
 0x1cf   : > { %v754_v43 = vld.sshfl [vmem:[#allocation1] sm:$0xff pattern:$0x75643120]  ;;  %v755_v44 = vld.sshfl [vmem:[#allocation1 + $0x8] sm:$0xff pattern:$0x75643120] }
 0x1d0   : > { %763 = vst [vmem:[#allocation1 + $0x1] ss:$2 sm:$0xff] %v760_v42 }
 0x1d1   : > { %758 = vst [vmem:[#allocation3 + $0x30] sm:$0x33] %v754_v43 }
 0x1d2   : > { %759 = vst [vmem:[#allocation3 + $0x38] sm:$0x3] %v755_v44 }
 0x1d7   : > { %v764_v46 = vld.sshfl [vmem:[#allocation1] sm:$0xff pattern:$0x75643120]  ;;  %v765_v47 = vld.sshfl [vmem:[#allocation1 + $0x8] sm:$0xff pattern:$0x75643120] }
 0x1d8   : > { %768 = vst [vmem:[#allocation3 + $0x30] sm:$0xcc] %v764_v46 }
 0x1d9   : > { %769 = vst [vmem:[#allocation3 + $0x38] sm:$0xc] %v765_v47 }
 0x1da   : > { %772 = vst [vmem:[#allocation1] ss:$2 sm:$0xff] %v3836_v45 }
 0x1e1   : > { %v775_v48 = vld.sshfl [vmem:[#allocation1 + $0x8] sm:$0xff pattern:$0x75643120]  ;;  %v773_v27 = vld.sshfl [vmem:[#allocation1] sm:$0xff pattern:$0x75643120] }
 0x1e2   : > { %779 = vrot.lane.b32.xlu2 %v775_v48, %s4325_s23  ;;  %777 = vrot.lane.b32.xlu1 %v773_v27, %s4325_s23  ;;  %793 = vst [vmem:[#allocation1 + $0x1] ss:$2 sm:$0xff] %v790_v25 }
 0x1e9   : > { %v796_v49 = vld.sshfl [vmem:[#allocation1 + $0x8] sm:$0xff pattern:$0x75643120]  ;;  %v794_v50 = vld.sshfl [vmem:[#allocation1] sm:$0xff pattern:$0x75643120] }
 0x1ea   : > { %800 = vrot.lane.b32.xlu1 %v796_v49, %s4325_s23  ;;  %798 = vrot.lane.b32.xlu0 %v794_v50, %s4325_s23  ;;  %813 = vst [vmem:[#allocation1] ss:$2 sm:$0xff] %v3836_v45 }
 0x1f1   : > { %v816_v51 = vld.sshfl [vmem:[#allocation1 + $0x8] sm:$0xff pattern:$0x75643120]  ;;  %v814_v52 = vld.sshfl [vmem:[#allocation1] sm:$0xff pattern:$0x75643120] }
 0x1f2   : > { %820 = vrot.lane.b32.xlu0 %v816_v51, %s4326_s24  ;;  %818 = vrot.lane.b32.xlu2 %v814_v52, %s4326_s24  ;;  %834 = vst [vmem:[#allocation1 + $0x1] ss:$2 sm:$0xff] %v790_v25 }
 0x1f9   : > { %v837_v53 = vld.sshfl [vmem:[#allocation1 + $0x8] sm:$0xff pattern:$0x75643120]  ;;  %v835_v54 = vld.sshfl [vmem:[#allocation1] sm:$0xff pattern:$0x75643120] }
 0x1fa   : > { %841 = vrot.lane.b32.xlu2 %v837_v53, %s4326_s24  ;;  %839 = vrot.lane.b32.xlu1 %v835_v54, %s4326_s24  ;;  %854 = vst [vmem:[#allocation1] ss:$2 sm:$0xff] %v3836_v45 }
 0x201   : > { %v857_v55 = vld.sshfl [vmem:[#allocation1 + $0x8] sm:$0xff pattern:$0x75643120]  ;;  %v855_v56 = vld.sshfl [vmem:[#allocation1] sm:$0xff pattern:$0x75643120] }
 0x202   : > { %861 = vrot.lane.b32.xlu1 %v857_v55, %s4327_s25  ;;  %859 = vrot.lane.b32.xlu0 %v855_v56, %s4327_s25  ;;  %875 = vst [vmem:[#allocation1 + $0x1] ss:$2 sm:$0xff] %v790_v25 }
 0x209   : > { %v878_v57 = vld.sshfl [vmem:[#allocation1 + $0x8] sm:$0xff pattern:$0x75643120]  ;;  %v876_v58 = vld.sshfl [vmem:[#allocation1] sm:$0xff pattern:$0x75643120] }
 0x20a   : > { %882 = vrot.lane.b32.xlu0 %v878_v57, %s4327_s25  ;;  %880 = vrot.lane.b32.xlu2 %v876_v58, %s4327_s25  ;;  %v677_v59 = vpop.permute.xlu2 %676  ;;  %895 = vst [vmem:[#allocation1] ss:$2 sm:$0xff] %v3836_v45 }
 0x20b   : > { %v680_v3 = vrot.slane %v677_v59, 4 }
 0x211   : > { %v898_v35 = vld.sshfl [vmem:[#allocation1 + $0x8] sm:$0xff pattern:$0x75643120]  ;;  %v896_v60 = vld.sshfl [vmem:[#allocation1] sm:$0xff pattern:$0x75643120] }
 0x212   : > { %902 = vrot.lane.b32.xlu2 %v898_v35, %s4330_s28  ;;  %900 = vrot.lane.b32.xlu1 %v896_v60, %s4330_s28  ;;  %916 = vst [vmem:[#allocation1 + $0x1] ss:$2 sm:$0xff] %v790_v25  ;;  %v700_v39 = vpop.permute.xlu2 %699 }
 0x213   : > { %v702_v61 = vrot.slane %v700_v39, 4 }
 0x215   : > { %v705_v62 = vsel %vm277_vm1, %v700_v39, %v702_v61 }
 0x216   : > { %709 = vst [vmem:[#allocation3 + $0x20] sm:$0xc] %v705_v62 }
 0x219   : > { %v919_v0 = vld.sshfl [vmem:[#allocation1 + $0x8] sm:$0xff pattern:$0x75643120]  ;;  %v917_v1 = vld.sshfl [vmem:[#allocation1] sm:$0xff pattern:$0x75643120] }
 0x21a   : > { %596 = vrot.lane.b32.xlu2 %v4479_v21, %s4329_s27  ;;  %923 = vrot.lane.b32.xlu1 %v919_v0, %s4330_s28 }
 0x21b   : > { %921 = vrot.lane.b32.xlu0 %v917_v1, %s4330_s28 }
 0x222   : > { %635 = vrot.lane.b32.xlu2 %v4485_v26, %s4328_s26  ;;  %594 = vrot.lane.b32.xlu1 %v4477_v20, %s4329_s27  ;;  %v679_v2 = vpop.permute.xlu0 %678  ;;  %v4544_v18 = vpop.permute.xlu2 %738 }
 0x223   : > { %740 = vrot.lane.b32.xlu0 %v4500_v41, %s4324_s22  ;;  %v681_v6 = vrot.slane %v679_v2, 4 }
 0x225   : > { %v682_v7 = vsel %vm229_vm3, %v680_v3, %v681_v6  ;;  %v684_v8 = vsel %vm277_vm1, %v679_v2, %v681_v6 }
 0x226   : > { %v683_v9 = vsel %vm277_vm1, %v677_v59, %v682_v7  ;;  %688 = vst [vmem:[#allocation3 + $0x20] sm:$0x3] %v684_v8 }
 0x227   : > { %687 = vst [vmem:[#allocation3 + $0x18] sm:$0x33] %v683_v9 }
 0x22a   : > { %658 = vrot.lane.b32.xlu2 %v4491_v30, %s4328_s26  ;;  %617 = vrot.lane.b32.xlu1 %v4483_v24, %s4329_s27  ;;  %v698_v10 = vpop.permute.xlu1 %697 }
 0x22b   : > { %615 = vrot.lane.b32.xlu0 %v4481_v23, %s4329_s27  ;;  %v701_v11 = vrot.slane %v698_v10, 4 }
 0x22d   : > { %v703_v12 = vsel %vm229_vm3, %v701_v11, %v702_v61 }
 0x22e   : > { %v704_v13 = vsel %vm277_vm1, %v698_v10, %v703_v12 }
 0x22f   : > { %708 = vst [vmem:[#allocation3 + $0x18] sm:$0xcc] %v704_v13 }
 0x232   : > { %656 = vrot.lane.b32.xlu1 %v4489_v28, %s4328_s26  ;;  %v720_v14 = vpop.permute.xlu1 %719  ;;  %v718_v15 = vpop.permute.xlu0 %717 }
 0x233   : > { %637 = vrot.lane.b32.xlu0 %v4487_v29, %s4328_s26  ;;  %v722_v16 = vrot.slane %v720_v14, 4  ;;  %v721_v17 = vrot.slane %v718_v15, 4 }
 0x235   : > { %v725_v19 = vsel %vm300_vm0, %v720_v14, %v722_v16  ;;  %v723_v20 = vsel %vm229_vm3, %v721_v17, %v722_v16 }
 0x236   : > { %729 = vst [vmem:[#allocation3 + $0x2c] sm:$0x3] %v725_v19  ;;  %v724_v21 = vsel %vm300_vm0, %v718_v15, %v723_v20 }
 0x237   : > { %728 = vst [vmem:[#allocation3 + $0x24] sm:$0x33] %v724_v21 }
 0x23c   : > { %v780_v22 = vpop.permute.xlu2 %779 }
 0x23d   : > { %v782_v23 = vrot.slane %v780_v22, 4 }
 0x23f   : > { %v785_v24 = vsel %vm334_vm2, %v780_v22, %v782_v23 }
 0x240   : > { %789 = vst [vmem:[#allocation3 + $0x44] sm:$0x3] %v785_v24 }
 0x24c   : > { %v819_v26 = vpop.permute.xlu2 %818 }
 0x24d   : > { %v822_v46 = vrot.slane %v819_v26, 4 }
 0x254   : > { %v778_v28 = vpop.permute.xlu1 %777  ;;  %v842_v29 = vpop.permute.xlu2 %841 }
 0x255   : > { %v781_v30 = vrot.slane %v778_v28, 4  ;;  %v844_v31 = vrot.slane %v842_v29, 4 }
 0x257   : > { %v783_v32 = vsel %vm229_vm3, %v781_v30, %v782_v23  ;;  %v847_v33 = vsel %vm357_vm4, %v842_v29, %v844_v31  ;;  %v742_v30 = vrot.slane %v4544_v18, 4 }
 0x258   : > { %v784_v34 = vsel %vm334_vm2, %v778_v28, %v783_v32  ;;  %851 = vst [vmem:[#allocation3 + $0x50] sm:$0xc] %v847_v33 }
 0x259   : > { %788 = vst [vmem:[#allocation3 + $0x3c] sm:$0x33] %v784_v34 }
 0x25c   : > { %v801_v36 = vpop.permute.xlu1 %800  ;;  %v799_v37 = vpop.permute.xlu0 %798 }
 0x25d   : > { %v803_v38 = vrot.slane %v801_v36, 4  ;;  %v802_v40 = vrot.slane %v799_v37, 4 }
 0x25f   : > { %v806_v41 = vsel %vm334_vm2, %v801_v36, %v803_v38  ;;  %v804_v42 = vsel %vm229_vm3, %v802_v40, %v803_v38 }
 0x260   : > { %810 = vst [vmem:[#allocation3 + $0x44] sm:$0xc] %v806_v41  ;;  %v805_v43 = vsel %vm334_vm2, %v799_v37, %v804_v42 }
 0x261   : > { %809 = vst [vmem:[#allocation3 + $0x3c] sm:$0xcc] %v805_v43 }
 0x264   : > { %v821_v44 = vpop.permute.xlu0 %820  ;;  %v881_v45 = vpop.permute.xlu2 %880 }
 0x265   : > { %v823_v47 = vrot.slane %v821_v44, 4  ;;  %v884_v2 = vrot.slane %v881_v45, 4 }
 0x267   : > { %v824_v25 = vsel %vm229_vm3, %v822_v46, %v823_v47  ;;  %v826_v48 = vsel %vm357_vm4, %v821_v44, %v823_v47 }
 0x268   : > { %v825_v27 = vsel %vm357_vm4, %v819_v26, %v824_v25  ;;  %830 = vst [vmem:[#allocation3 + $0x50] sm:$0x3] %v826_v48 }
 0x269   : > { %829 = vst [vmem:[#allocation3 + $0x48] sm:$0x33] %v825_v27 }
 0x26c   : > { %v840_v49 = vpop.permute.xlu1 %839  ;;  %v903_v50 = vpop.permute.xlu2 %902 }
 0x26d   : > { %v843_v51 = vrot.slane %v840_v49, 4  ;;  %v905_v52 = vrot.slane %v903_v50, 4 }
 0x26f   : > { %v845_v53 = vsel %vm229_vm3, %v843_v51, %v844_v31  ;;  %v908_v54 = vsel %vm403_vm8, %v903_v50, %v905_v52  ;;  %v3887_v50 = vld [vmem:[#allocation3 + $0x50] sm:$0xf] }
 0x270   : > { %v846_v55 = vsel %vm357_vm4, %v840_v49, %v845_v53  ;;  %912 = vst [vmem:[#allocation3 + $0x68] sm:$0x3] %v908_v54 }
 0x271   : > { %850 = vst [vmem:[#allocation3 + $0x48] sm:$0xcc] %v846_v55 }
 0x274   : > { %v862_v56 = vpop.permute.xlu1 %861  ;;  %v860_v57 = vpop.permute.xlu0 %859 }
 0x275   : > { %v864_v58 = vrot.slane %v862_v56, 4  ;;  %v863_v59 = vrot.slane %v860_v57, 4  ;;  %v597_v35 = vpop.permute.xlu2 %596 }
 0x276   : > { %v599_v60 = vrot.slane %v597_v35, 4 }
 0x277   : > { %v867_v39 = vsel %vm380_vm6, %v862_v56, %v864_v58  ;;  %v865_v61 = vsel %vm229_vm3, %v863_v59, %v864_v58 }
 0x278   : > { %871 = vst [vmem:[#allocation3 + $0x5c] sm:$0x3] %v867_v39  ;;  %v866_v62 = vsel %vm380_vm6, %v860_v57, %v865_v61  ;;  %v602_v0 = vsel %vm231_vm7, %v597_v35, %v599_v60  ;;  %v4231_v57 = vld [vmem:[#allocation3 + $0x40] sm:$0xf0]  ;;  %v3879_v59 = vld [vmem:[#allocation3 + $0x48] sm:$0xf] }
 0x279   : > { %870 = vst [vmem:[#allocation3 + $0x54] sm:$0x33] %v866_v62  ;;  %v4232_v35 = vld [vmem:[#allocation3 + $0x4c] sm:$0xf]  ;;  %v3875_v62 = vld [vmem:[#allocation3 + $0x38] sm:$0xf] }
 0x27a   : > { %606 = vst [vmem:[#allocation3 + $0x8] sm:$0x3] %v602_v0  ;;  %v4230_v0 = vld [vmem:[#allocation3 + $0x38] sm:$0xf0] }
 0x27c   : > { %v883_v1 = vpop.permute.xlu0 %882 }
 0x27d   : > { %v885_v3 = vrot.slane %v883_v1, 4  ;;  %v4566_v6 = vpop.permute.xlu2 %635 }
 0x27f   : > { %v886_v7 = vsel %vm229_vm3, %v884_v2, %v885_v3  ;;  %v888_v8 = vsel %vm380_vm6, %v883_v1, %v885_v3  ;;  %v3869_v1 = vld [vmem:[#allocation3 + $0x3c] sm:$0xf0]  ;;  %v3876_v2 = vor.u32 %v4231_v57, %v3875_v62 }
 0x280   : > { %v887_v9 = vsel %vm380_vm6, %v881_v45, %v886_v7  ;;  %892 = vst [vmem:[#allocation3 + $0x5c] sm:$0xc] %v888_v8  ;;  %v3867_v7 = vld [vmem:[#allocation3 + $0x30] sm:$0xf]  ;;  %v4229_v8 = vld [vmem:[#allocation3 + $0x34] sm:$0xf] }
 0x281   : > { %891 = vst [vmem:[#allocation3 + $0x54] sm:$0xcc] %v887_v9 }
 0x284   : > { %v901_v10 = vpop.permute.xlu1 %900 }
 0x285   : > { %v4571_v11 = vpop.permute.xlu2 %658  ;;  %v904_v12 = vrot.slane %v901_v10, 4 }
 0x286   : > { %v661_v13 = vrot.slane %v4571_v11, 4 }
 0x287   : > { %v906_v14 = vsel %vm229_vm3, %v904_v12, %v905_v52  ;;  %v4234_v48 = vld [vmem:[#allocation3 + $0x58] sm:$0xf0] }
 0x288   : > { %v664_v15 = vsel %vm254_vm5, %v4571_v11, %v661_v13  ;;  %v907_v16 = vsel %vm403_vm8, %v901_v10, %v906_v14  ;;  %v4233_v51 = vld [vmem:[#allocation3 + $0x50] sm:$0xf0]  ;;  %v3881_v54 = vld [vmem:[#allocation3 + $0x54] sm:$0xf0]  ;;  %v3888_v56 = vor.u32 %v4234_v48, %v3887_v50  ;;  %v3868_v14 = vor.u32 %v4230_v0, %v3867_v7 }
 0x289   : > { %668 = vst [vmem:[#allocation3 + $0x14] sm:$0xc] %v664_v15  ;;  %v3880_v39 = vor.u32 %v4233_v51, %v3879_v59  ;;  %v3884_v61 = vor.u32 %v4232_v35, %v3881_v54  ;;  %v3872_v15 = vor.u32 %v4229_v8, %v3869_v1 }
 0x28a   : > { %911 = vst [vmem:[#allocation3 + $0x60] sm:$0x33] %v907_v16  ;;  %v3863_v16 = vld [vmem:[#allocation3 + $0x20] sm:$0xf] }
 0x28c   : > { %v924_v17 = vpop.permute.xlu1 %923 }
 0x28d   : > { %v926_v19 = vrot.slane %v924_v17, 4  ;;  %v922_v20 = vpop.permute.xlu0 %921 }
 0x28e   : > { %v925_v21 = vrot.slane %v922_v20, 4 }
 0x28f   : > { %v929_v22 = vsel %vm403_vm8, %v924_v17, %v926_v19  ;;  %v639_v17 = vrot.slane %v4566_v6, 4 }
 0x290   : > { %933 = vst [vmem:[#allocation3 + $0x68] sm:$0xc] %v929_v22  ;;  %v927_v23 = vsel %vm229_vm3, %v925_v21, %v926_v19 }
 0x291   : > { %v928_v24 = vsel %vm403_vm8, %v922_v20, %v927_v23 }
 0x292   : > { %932 = vst [vmem:[#allocation3 + $0x60] sm:$0xcc] %v928_v24 }
 0x294   : > { %v595_v26 = vpop.permute.xlu1 %594 }
 0x295   : > { %v598_v28 = vrot.slane %v595_v26, 4  ;;  %v741_v29 = vpop.permute.xlu0 %740 }
 0x296   : > { %v743_v31 = vrot.slane %v741_v29, 4 }
 0x297   : > { %v600_v32 = vsel %vm229_vm3, %v598_v28, %v599_v60  ;;  %v953_v33 = vld [vmem:[#allocation3 + $0x68] sm:$0xf] }
 0x298   : > { %v601_v34 = vsel %vm231_vm7, %v595_v26, %v600_v32  ;;  %v744_v36 = vsel %vm229_vm3, %v742_v30, %v743_v31  ;;  %v746_v37 = vsel %vm300_vm0, %v741_v29, %v743_v31  ;;  %v998_v38 = vunpack.c.l.b16 %v953_v33  ;;  %v3855_v29 = vld [vmem:[#allocation3 + $0x18] sm:$0xf]  ;;  %v4226_v30 = vld [vmem:[#allocation3 + $0x1c] sm:$0xf] }
 0x299   : > { %v952_v40 = vld [vmem:[#allocation3 + $0x60] sm:$0xff]  ;;  %605 = vst [vmem:[#allocation3] sm:$0x33] %v601_v34  ;;  %v745_v41 = vsel %vm300_vm0, %v4544_v18, %v744_v36 }
 0x29a   : > { %749 = vst [vmem:[#allocation3 + $0x24] sm:$0xcc] %v745_v41  ;;  %v1013_v42 = vpack.c.b16 %v998_v38, %v998_v38  ;;  %v996_v43 = vunpack.c.l.b16 %v952_v40  ;;  %v997_v44 = vunpack.c.h.b16 %v952_v40 }
 0x29b   : > { %750 = vst [vmem:[#allocation3 + $0x2c] sm:$0xc] %v746_v37 }
 0x29c   : > { %v618_v45 = vpop.permute.xlu1 %617  ;;  %v1036_v46 = vsel %vm229_vm3, %v1013_v42, 0  ;;  %v1011_v47 = vpack.c.b16 %v996_v43, %v996_v43  ;;  %v1012_v25 = vpack.c.b16 %v997_v44, %v997_v44 }
 0x29d   : > { %v620_v27 = vrot.slane %v618_v45, 4  ;;  %v616_v49 = vpop.permute.xlu0 %615  ;;  %1067 = vmatpush.bf16.msrb.mxu1 %v1036_v46 }
 0x29e   : > { %v619_v52 = vrot.slane %v616_v49, 4  ;;  %v1030_v53 = vsel %vm229_vm3, %v1011_v47, 0  ;;  %v1033_v18 = vsel %vm229_vm3, %v1012_v25, 0 }
 0x29f   : > { %v623_v55 = vsel %vm231_vm7, %v618_v45, %v620_v27  ;;  %1041 = vmatpush.bf16.msra.mxu3 %v1030_v53  ;;  %1054 = vmatpush.bf16.msrb.mxu0 %v1033_v18 }
 0x2a0   : > { %627 = vst [vmem:[#allocation3 + $0x8] sm:$0xc] %v623_v55  ;;  %v621_v58 = vsel %vm229_vm3, %v619_v52, %v620_v27  ;;  %v3894_v55 = vld [vmem:[%s4371_s20 + $0x1e] sm:$0xff] }
 0x2a1   : > { %v622_v60 = vsel %vm231_vm7, %v616_v49, %v621_v58  ;;  %1068 = vmatpush.bf16.msrb.mxu1 %v3888_v56  ;;  %v4227_v20 = vld [vmem:[#allocation3 + $0x20] sm:$0xf0]  ;;  %v3857_v21 = vld [vmem:[#allocation3 + $0x24] sm:$0xf0] }
 0x2a2   : > { %626 = vst [vmem:[#allocation3] sm:$0xcc] %v622_v60  ;;  %v4228_v9 = vld [vmem:[#allocation3 + $0x28] sm:$0xf0]  ;;  %v3856_v32 = vor.u32 %v4227_v20, %v3855_v29  ;;  %v3860_v11 = vor.u32 %v4226_v30, %v3857_v21 }
 0x2a3   : > { %1042 = vmatpush.bf16.msra.mxu3 %v3880_v39  ;;  %1055 = vmatpush.bf16.msrb.mxu0 %v3884_v61  ;;  %v3864_v23 = vor.u32 %v4228_v9, %v3863_v16  ;;  %v3899_v20 = vld [vmem:[%s4371_s20 + $0x20] sm:$0xff] }
 0x2a4   : > { %v657_v3 = vpop.permute.xlu1 %656 }
 0x2a5   : > { %v660_v10 = vrot.slane %v657_v3, 4  ;;  %v638_v12 = vpop.permute.xlu0 %637  ;;  %1069 = vmatpush.bf16.msrb.mxu1 %v3876_v2 }
 0x2a6   : > { %v640_v19 = vrot.slane %v638_v12, 4 }
 0x2a7   : > { %v662_v22 = vsel %vm229_vm3, %v660_v10, %v661_v13  ;;  %1043 = vmatpush.bf16.msra.mxu3 %v3868_v14  ;;  %1056 = vmatpush.bf16.msrb.mxu0 %v3872_v15  ;;  %v3851_v37 = vld [vmem:[#allocation3 + $0x8] sm:$0xf] }
 0x2a8   : > { %v663_v24 = vsel %vm254_vm5, %v657_v3, %v662_v22  ;;  %v641_v26 = vsel %vm229_vm3, %v639_v17, %v640_v19  ;;  %v643_v28 = vsel %vm254_vm5, %v638_v12, %v640_v19  ;;  %v3898_v12 = vld [vmem:[%s4371_s20 + $0x20] sm:$0x3f] }
 0x2a9   : > { %667 = vst [vmem:[#allocation3 + $0xc] sm:$0xcc] %v663_v24  ;;  %v642_v31 = vsel %vm254_vm5, %v4566_v6, %v641_v26  ;;  %1070 = vmatpush.bf16.msrb.mxu1 %v3864_v23  ;;  %v3843_v13 = vld [vmem:[#allocation3] sm:$0xf]  ;;  %v4223_v34 = vld [vmem:[#allocation3 + $0x4] sm:$0xf] }
 0x2aa   : > { %646 = vst [vmem:[#allocation3 + $0xc] sm:$0x33] %v642_v31  ;;  %v3840_v6 = vld [vmem:[%s5330_s2 + $0x4] sm:$0xf] }
 0x2ab   : > { %647 = vst [vmem:[#allocation3 + $0x14] sm:$0x3] %v643_v28  ;;  %1044 = vmatpush.bf16.msra.mxu3 %v3856_v32  ;;  %1057 = vmatpush.bf16.msrb.mxu0 %v3860_v11 }
 0x2b1   : > { %v4224_v33 = vld [vmem:[#allocation3 + $0x8] sm:$0xf0]  ;;  %v3845_v36 = vld [vmem:[#allocation3 + $0xc] sm:$0xf0] }
 0x2b2   : > { %v4225_v38 = vld [vmem:[#allocation3 + $0x10] sm:$0xf0]  ;;  %v3844_v40 = vor.u32 %v4224_v33, %v3843_v13  ;;  %v3848_v41 = vor.u32 %v4223_v34, %v3845_v36 }
 0x2b3   : > { %v3852_v42 = vor.u32 %v4225_v38, %v3851_v37 }
 0x2b4   : > { %1045 = vmatpush.bf16.msra.mxu3 %v3844_v40  ;;  %1058 = vmatpush.bf16.msrb.mxu0 %v3848_v41 }
 0x2b5   : > { %1071 = vmatpush.bf16.msrb.mxu1 %v3852_v42 }
 0x2b7   : > { %3889 = vmatmul.msk.bf16.vlgmr.msra.gmra.mxu3 %vm503_vm9, %v3840_v6  ;;  %3890 = vmatmul.msk.bf16.vlgmr.msrb.gmra.mxu0 %vm503_vm9, %v3840_v6 }
 0x2b8   : > { %3891 = vmatmul.msk.bf16.vlgmr.msrb.gmra.mxu1 %vm503_vm9, %v3840_v6 }
 0x334   : > { %v1060_v43 = vpop.f32.mrf.mxu0 }
 0x335   : > { %v1073_v44 = vpop.f32.mrf.mxu1  ;;  %v1078_v45 = vmax.f32 %v1060_v43, 0.0 }
 0x336   : > { %v1079_v46 = vmax.f32 %v1073_v44, 0.0 }
 0x337   : > { %v1082_v25 = vrot.slane %v1078_v45, 4  ;;  %v1089_v49 = vmul.f32 %v1078_v45, %v4470_v5 }
 0x338   : > { %3893 = vst [vmem:[%s4464_s10 + $0x14] sm:$0xf] %v1079_v46  ;;  %v1090_v47 = vmul.f32 %v1079_v46, %v4459_v63 }
 0x33a   : > { %v1092_v48 = vpack.c.bf16 %v1090_v47, %v1090_v47  ;;  %v1047_v27 = vpop.f32.mrf.mxu3 }
 0x33b   : > { %v1077_v50 = vmax.f32 %v1047_v27, 0.0 }
 0x33c   : > { %1096 = vst.sshfl [vmem:[#allocation1 + $0x8] sm:$0xff pattern:$0x75643120] %v1092_v48  ;;  %v1062_v51 = vpop.f32.mrf.mxu0 }
 0x33d   : > { %v1083_v52 = vsel %vm229_vm3, %v1077_v50, %v1082_v25  ;;  %v1088_v53 = vmul.f32 %v1077_v50, %v4468_v4  ;;  %v1075_v18 = vpop.f32.mrf.mxu1 }
 0x33e   : > { %3892 = vst [vmem:[%s4464_s10 + $0xc] sm:$0xff] %v1083_v52 }
 0x33f   : > { %v1091_v54 = vpack.c.bf16 %v1089_v49, %v1088_v53 }
 0x341   : > { %1094 = vst.sshfl [vmem:[#allocation1] sm:$0xff pattern:$0x75643120] %v1091_v54 }
 0x342   : > { %v1049_v56 = vpop.f32.mrf.mxu3  ;;  %1104 = vst [vmem:[#allocation1] ss:$2 sm:$0xff] %v3894_v55 }
 0x348   : > { %v1098_v57 = vld [vmem:[#allocation1 + $0x1] ss:$2 sm:$0xff] }
 0x349   : > { %1100 = vst [vmem:[#allocation2 + $0x2] sm:$0x3f] %v1098_v57  ;;  %v4618_v58 = vld.sshfl [vmem:[#allocation1] sm:$0xff pattern:$0x75643120] }
 0x34a   : > { %v4620_v59 = vld.sshfl [vmem:[#allocation1 + $0x8] sm:$0xff pattern:$0x75643120] }
 0x350   : > { %v1122_v35 = vld [vmem:[#allocation2] sm:$0xff] }
 0x351   : > { %1125 = vst [vmem:[#allocation1 + $0x1] ss:$2 sm:$0xff] %v1122_v35  ;;  %v1275_v16 = vld [vmem:[#allocation2 + $0x2] sm:$0x3f] }
 0x352   : > { %v1305_v23 = vld [vmem:[#allocation2 + $0x2] sm:$0xff] }
 0x358   : > { %v4622_v60 = vld.sshfl [vmem:[#allocation1] sm:$0xff pattern:$0x75643120]  ;;  %v4624_v39 = vld.sshfl [vmem:[#allocation1 + $0x8] sm:$0xff pattern:$0x75643120] }
 0x359   : > { %1145 = vst [vmem:[#allocation1] ss:$2 sm:$0xff] %v3894_v55 }
 0x360   : > { %v4626_v61 = vld.sshfl [vmem:[#allocation1] sm:$0xff pattern:$0x75643120]  ;;  %v4628_v62 = vld.sshfl [vmem:[#allocation1 + $0x8] sm:$0xff pattern:$0x75643120] }
 0x361   : > { %1166 = vst [vmem:[#allocation1 + $0x1] ss:$2 sm:$0xff] %v1122_v35 }
 0x368   : > { %v4630_v0 = vld.sshfl [vmem:[#allocation1] sm:$0xff pattern:$0x75643120]  ;;  %v4632_v1 = vld.sshfl [vmem:[#allocation1 + $0x8] sm:$0xff pattern:$0x75643120] }
 0x369   : > { %1186 = vst [vmem:[#allocation1] ss:$2 sm:$0xff] %v3894_v55 }
 0x370   : > { %v1189_v2 = vld.sshfl [vmem:[#allocation1 + $0x8] sm:$0xff pattern:$0x75643120]  ;;  %v1187_v3 = vld.sshfl [vmem:[#allocation1] sm:$0xff pattern:$0x75643120] }
 0x371   : > { %1193 = vrot.lane.b32.xlu2 %v1189_v2, %s4323_s21  ;;  %1191 = vrot.lane.b32.xlu1 %v1187_v3, %s4323_s21  ;;  %1207 = vst [vmem:[#allocation1 + $0x1] ss:$2 sm:$0xff] %v1122_v35 }
 0x378   : > { %v1210_v7 = vld.sshfl [vmem:[#allocation1 + $0x8] sm:$0xff pattern:$0x75643120]  ;;  %v1208_v8 = vld.sshfl [vmem:[#allocation1] sm:$0xff pattern:$0x75643120] }
 0x379   : > { %1214 = vrot.lane.b32.xlu1 %v1210_v7, %s4323_s21  ;;  %1212 = vrot.lane.b32.xlu0 %v1208_v8, %s4323_s21  ;;  %1227 = vst [vmem:[#allocation1] ss:$2 sm:$0xff] %v3894_v55 }
 0x380   : > { %v1230_v9 = vld.sshfl [vmem:[#allocation1 + $0x8] sm:$0xff pattern:$0x75643120]  ;;  %v1228_v10 = vld.sshfl [vmem:[#allocation1] sm:$0xff pattern:$0x75643120] }
 0x381   : > { %1234 = vrot.lane.b32.xlu0 %v1230_v9, %s4324_s22  ;;  %1232 = vrot.lane.b32.xlu2 %v1228_v10, %s4324_s22  ;;  %1248 = vst [vmem:[#allocation1 + $0x1] ss:$2 sm:$0xff] %v1122_v35 }
 0x388   : > { %v1249_v14 = vld.sshfl [vmem:[#allocation1] sm:$0xff pattern:$0x75643120]  ;;  %v1251_v15 = vld.sshfl [vmem:[#allocation1 + $0x8] sm:$0xff pattern:$0x75643120] }
 0x389   : > { %1253 = vrot.lane.b32.xlu1 %v1249_v14, %s4324_s22  ;;  %1268 = vst [vmem:[#allocation1] ss:$2 sm:$0xff] %v3898_v12 }
 0x390   : > { %v1269_v17 = vld.sshfl [vmem:[#allocation1] sm:$0xff pattern:$0x75643120]  ;;  %v1270_v19 = vld.sshfl [vmem:[#allocation1 + $0x8] sm:$0xff pattern:$0x75643120] }
 0x391   : > { %1278 = vst [vmem:[#allocation1 + $0x1] ss:$2 sm:$0xff] %v1275_v16 }
 0x392   : > { %1273 = vst [vmem:[#allocation3 + $0x30] sm:$0x33] %v1269_v17 }
 0x393   : > { %1274 = vst [vmem:[#allocation3 + $0x38] sm:$0x3] %v1270_v19 }
 0x398   : > { %v1279_v21 = vld.sshfl [vmem:[#allocation1] sm:$0xff pattern:$0x75643120]  ;;  %v1280_v22 = vld.sshfl [vmem:[#allocation1 + $0x8] sm:$0xff pattern:$0x75643120] }
 0x399   : > { %1283 = vst [vmem:[#allocation3 + $0x30] sm:$0xcc] %v1279_v21 }
 0x39a   : > { %1284 = vst [vmem:[#allocation3 + $0x38] sm:$0xc] %v1280_v22 }
 0x39b   : > { %1287 = vst [vmem:[#allocation1] ss:$2 sm:$0xff] %v3899_v20 }
 0x3a2   : > { %v1290_v24 = vld.sshfl [vmem:[#allocation1 + $0x8] sm:$0xff pattern:$0x75643120]  ;;  %v1288_v26 = vld.sshfl [vmem:[#allocation1] sm:$0xff pattern:$0x75643120] }
 0x3a3   : > { %1294 = vrot.lane.b32.xlu1 %v1290_v24, %s4325_s23  ;;  %1292 = vrot.lane.b32.xlu0 %v1288_v26, %s4325_s23  ;;  %1308 = vst [vmem:[#allocation1 + $0x1] ss:$2 sm:$0xff] %v1305_v23 }
 0x3aa   : > { %v1311_v28 = vld.sshfl [vmem:[#allocation1 + $0x8] sm:$0xff pattern:$0x75643120]  ;;  %v1309_v29 = vld.sshfl [vmem:[#allocation1] sm:$0xff pattern:$0x75643120] }
 0x3ab   : > { %1315 = vrot.lane.b32.xlu0 %v1311_v28, %s4325_s23  ;;  %1313 = vrot.lane.b32.xlu2 %v1309_v29, %s4325_s23  ;;  %1328 = vst [vmem:[#allocation1] ss:$2 sm:$0xff] %v3899_v20 }
 0x3b2   : > { %v1331_v30 = vld.sshfl [vmem:[#allocation1 + $0x8] sm:$0xff pattern:$0x75643120]  ;;  %v1329_v31 = vld.sshfl [vmem:[#allocation1] sm:$0xff pattern:$0x75643120] }
 0x3b3   : > { %1335 = vrot.lane.b32.xlu2 %v1331_v30, %s4326_s24  ;;  %1333 = vrot.lane.b32.xlu1 %v1329_v31, %s4326_s24  ;;  %1349 = vst [vmem:[#allocation1 + $0x1] ss:$2 sm:$0xff] %v1305_v23 }
 0x3ba   : > { %v1352_v32 = vld.sshfl [vmem:[#allocation1 + $0x8] sm:$0xff pattern:$0x75643120]  ;;  %v1350_v11 = vld.sshfl [vmem:[#allocation1] sm:$0xff pattern:$0x75643120] }
 0x3bb   : > { %1356 = vrot.lane.b32.xlu1 %v1352_v32, %s4326_s24  ;;  %1354 = vrot.lane.b32.xlu0 %v1350_v11, %s4326_s24  ;;  %1369 = vst [vmem:[#allocation1] ss:$2 sm:$0xff] %v3899_v20 }
 0x3c2   : > { %v1372_v13 = vld.sshfl [vmem:[#allocation1 + $0x8] sm:$0xff pattern:$0x75643120]  ;;  %v1370_v33 = vld.sshfl [vmem:[#allocation1] sm:$0xff pattern:$0x75643120] }
 0x3c3   : > { %1376 = vrot.lane.b32.xlu0 %v1372_v13, %s4327_s25  ;;  %1374 = vrot.lane.b32.xlu2 %v1370_v33, %s4327_s25  ;;  %1390 = vst [vmem:[#allocation1 + $0x1] ss:$2 sm:$0xff] %v1305_v23 }
 0x3ca   : > { %v1393_v34 = vld.sshfl [vmem:[#allocation1 + $0x8] sm:$0xff pattern:$0x75643120]  ;;  %v1391_v36 = vld.sshfl [vmem:[#allocation1] sm:$0xff pattern:$0x75643120] }
 0x3cb   : > { %1397 = vrot.lane.b32.xlu2 %v1393_v34, %s4327_s25  ;;  %1395 = vrot.lane.b32.xlu1 %v1391_v36, %s4327_s25  ;;  %v1194_v37 = vpop.permute.xlu2 %1193  ;;  %1410 = vst [vmem:[#allocation1] ss:$2 sm:$0xff] %v3899_v20 }
 0x3cc   : > { %v1196_v38 = vrot.slane %v1194_v37, 4 }
 0x3ce   : > { %v1199_v40 = vsel %vm277_vm1, %v1194_v37, %v1196_v38 }
 0x3cf   : > { %1203 = vst [vmem:[#allocation3 + $0x20] sm:$0x3] %v1199_v40 }
 0x3d2   : > { %v1413_v41 = vld.sshfl [vmem:[#allocation1 + $0x8] sm:$0xff pattern:$0x75643120]  ;;  %v1411_v42 = vld.sshfl [vmem:[#allocation1] sm:$0xff pattern:$0x75643120] }
 0x3d3   : > { %1417 = vrot.lane.b32.xlu1 %v1413_v41, %s4330_s28  ;;  %1415 = vrot.lane.b32.xlu0 %v1411_v42, %s4330_s28  ;;  %1431 = vst [vmem:[#allocation1 + $0x1] ss:$2 sm:$0xff] %v1305_v23 }
 0x3da   : > { %v1434_v6 = vld.sshfl [vmem:[#allocation1 + $0x8] sm:$0xff pattern:$0x75643120]  ;;  %v1432_v43 = vld.sshfl [vmem:[#allocation1] sm:$0xff pattern:$0x75643120] }
 0x3db   : > { %1111 = vrot.lane.b32.xlu1 %v4620_v59, %s4329_s27  ;;  %1438 = vrot.lane.b32.xlu0 %v1434_v6, %s4330_s28  ;;  %v1233_v53 = vpop.permute.xlu2 %1232 }
 0x3dc   : > { %1436 = vrot.lane.b32.xlu2 %v1432_v43, %s4330_s28  ;;  %v1236_v54 = vrot.slane %v1233_v53, 4 }
 0x3e3   : > { %1150 = vrot.lane.b32.xlu1 %v4626_v61, %s4328_s26  ;;  %1109 = vrot.lane.b32.xlu0 %v4618_v58, %s4329_s27  ;;  %v1192_v44 = vpop.permute.xlu1 %1191 }
 0x3e4   : > { %1255 = vrot.lane.b32.xlu2 %v1251_v15, %s4324_s22  ;;  %v1195_v45 = vrot.slane %v1192_v44, 4 }
 0x3e6   : > { %v1197_v46 = vsel %vm229_vm3, %v1195_v45, %v1196_v38 }
 0x3e7   : > { %v1198_v47 = vsel %vm277_vm1, %v1192_v44, %v1197_v46 }
 0x3e8   : > { %1202 = vst [vmem:[#allocation3 + $0x18] sm:$0x33] %v1198_v47 }
 0x3eb   : > { %1173 = vrot.lane.b32.xlu1 %v4632_v1, %s4328_s26  ;;  %1132 = vrot.lane.b32.xlu0 %v4624_v39, %s4329_s27  ;;  %v1215_v25 = vpop.permute.xlu1 %1214  ;;  %v1213_v48 = vpop.permute.xlu0 %1212 }
 0x3ec   : > { %1130 = vrot.lane.b32.xlu2 %v4622_v60, %s4329_s27  ;;  %v1217_v27 = vrot.slane %v1215_v25, 4  ;;  %v1216_v49 = vrot.slane %v1213_v48, 4 }
 0x3ee   : > { %v1220_v50 = vsel %vm277_vm1, %v1215_v25, %v1217_v27  ;;  %v1218_v51 = vsel %vm229_vm3, %v1216_v49, %v1217_v27 }
 0x3ef   : > { %1224 = vst [vmem:[#allocation3 + $0x20] sm:$0xc] %v1220_v50  ;;  %v1219_v52 = vsel %vm277_vm1, %v1213_v48, %v1218_v51 }
 0x3f0   : > { %1223 = vst [vmem:[#allocation3 + $0x18] sm:$0xcc] %v1219_v52 }
 0x3f3   : > { %1171 = vrot.lane.b32.xlu0 %v4630_v0, %s4328_s26  ;;  %v1235_v18 = vpop.permute.xlu0 %1234 }
 0x3f4   : > { %1152 = vrot.lane.b32.xlu2 %v4628_v62, %s4328_s26  ;;  %v1237_v55 = vrot.slane %v1235_v18, 4 }
 0x3f6   : > { %v1238_v56 = vsel %vm229_vm3, %v1236_v54, %v1237_v55  ;;  %v1240_v57 = vsel %vm300_vm0, %v1235_v18, %v1237_v55 }
 0x3f7   : > { %v1239_v58 = vsel %vm300_vm0, %v1233_v53, %v1238_v56  ;;  %1244 = vst [vmem:[#allocation3 + $0x2c] sm:$0x3] %v1240_v57 }
 0x3f8   : > { %1243 = vst [vmem:[#allocation3 + $0x24] sm:$0x33] %v1239_v58 }
 0x3fb   : > { %v1254_v35 = vpop.permute.xlu1 %1253 }
 0x3fc   : > { %v1257_v44 = vrot.slane %v1254_v35, 4 }
 0x405   : > { %v1314_v59 = vpop.permute.xlu2 %1313 }
 0x406   : > { %v1317_v12 = vrot.slane %v1314_v59, 4 }
 0x40d   : > { %v1336_v60 = vpop.permute.xlu2 %1335 }
 0x40e   : > { %v1338_v39 = vrot.slane %v1336_v60, 4 }
 0x410   : > { %v1341_v61 = vsel %vm357_vm4, %v1336_v60, %v1338_v39 }
 0x411   : > { %1345 = vst [vmem:[#allocation3 + $0x50] sm:$0x3] %v1341_v61 }
 0x415   : > { %v1295_v0 = vpop.permute.xlu1 %1294  ;;  %v1293_v1 = vpop.permute.xlu0 %1292 }
 0x416   : > { %v1297_v2 = vrot.slane %v1295_v0, 4  ;;  %v1296_v62 = vrot.slane %v1293_v1, 4 }
 0x418   : > { %v1300_v3 = vsel %vm334_vm2, %v1295_v0, %v1297_v2  ;;  %v1298_v7 = vsel %vm229_vm3, %v1296_v62, %v1297_v2 }
 0x419   : > { %1304 = vst [vmem:[#allocation3 + $0x44] sm:$0x3] %v1300_v3  ;;  %v1299_v8 = vsel %vm334_vm2, %v1293_v1, %v1298_v7 }
 0x41a   : > { %1303 = vst [vmem:[#allocation3 + $0x3c] sm:$0x33] %v1299_v8 }
 0x41d   : > { %v1316_v9 = vpop.permute.xlu0 %1315  ;;  %v1375_v10 = vpop.permute.xlu2 %1374 }
 0x41e   : > { %v1318_v14 = vrot.slane %v1316_v9, 4  ;;  %v1378_v34 = vrot.slane %v1375_v10, 4 }
 0x420   : > { %v1319_v15 = vsel %vm229_vm3, %v1317_v12, %v1318_v14  ;;  %v1321_v16 = vsel %vm334_vm2, %v1316_v9, %v1318_v14 }
 0x421   : > { %v1320_v17 = vsel %vm334_vm2, %v1314_v59, %v1319_v15  ;;  %1325 = vst [vmem:[#allocation3 + $0x44] sm:$0xc] %v1321_v16 }
 0x422   : > { %1324 = vst [vmem:[#allocation3 + $0x3c] sm:$0xcc] %v1320_v17 }
 0x425   : > { %v1334_v19 = vpop.permute.xlu1 %1333  ;;  %v1398_v20 = vpop.permute.xlu2 %1397 }
 0x426   : > { %v1337_v21 = vrot.slane %v1334_v19, 4  ;;  %v1400_v22 = vrot.slane %v1398_v20, 4 }
 0x428   : > { %v1339_v23 = vsel %vm229_vm3, %v1337_v21, %v1338_v39  ;;  %v1403_v24 = vsel %vm380_vm6, %v1398_v20, %v1400_v22 }
 0x429   : > { %v1340_v26 = vsel %vm357_vm4, %v1334_v19, %v1339_v23  ;;  %1407 = vst [vmem:[#allocation3 + $0x5c] sm:$0xc] %v1403_v24 }
 0x42a   : > { %1344 = vst [vmem:[#allocation3 + $0x48] sm:$0x33] %v1340_v26 }
 0x42d   : > { %v1357_v28 = vpop.permute.xlu1 %1356  ;;  %v1355_v29 = vpop.permute.xlu0 %1354 }
 0x42e   : > { %v1359_v30 = vrot.slane %v1357_v28, 4  ;;  %v1358_v31 = vrot.slane %v1355_v29, 4 }
 0x430   : > { %v1362_v32 = vsel %vm357_vm4, %v1357_v28, %v1359_v30  ;;  %v1360_v11 = vsel %vm229_vm3, %v1358_v31, %v1359_v30 }
 0x431   : > { %1366 = vst [vmem:[#allocation3 + $0x50] sm:$0xc] %v1362_v32  ;;  %v1361_v13 = vsel %vm357_vm4, %v1355_v29, %v1360_v11 }
 0x432   : > { %1365 = vst [vmem:[#allocation3 + $0x48] sm:$0xcc] %v1361_v13 }
 0x435   : > { %v1377_v33 = vpop.permute.xlu0 %1376 }
 0x436   : > { %v1379_v36 = vrot.slane %v1377_v33, 4  ;;  %v1437_v37 = vpop.permute.xlu2 %1436 }
 0x437   : > { %v1440_v58 = vrot.slane %v1437_v37, 4 }
 0x438   : > { %v1380_v38 = vsel %vm229_vm3, %v1378_v34, %v1379_v36  ;;  %v1382_v40 = vsel %vm380_vm6, %v1377_v33, %v1379_v36 }
 0x439   : > { %v1381_v41 = vsel %vm380_vm6, %v1375_v10, %v1380_v38  ;;  %1386 = vst [vmem:[#allocation3 + $0x5c] sm:$0x3] %v1382_v40 }
 0x43a   : > { %1385 = vst [vmem:[#allocation3 + $0x54] sm:$0x33] %v1381_v41  ;;  %v3942_v41 = vld [vmem:[#allocation3 + $0x48] sm:$0xf] }
 0x43d   : > { %v1396_v42 = vpop.permute.xlu1 %1395 }
 0x43e   : > { %v1399_v6 = vrot.slane %v1396_v42, 4  ;;  %v1256_v43 = vpop.permute.xlu2 %1255 }
 0x43f   : > { %v1258_v45 = vrot.slane %v1256_v43, 4 }
 0x440   : > { %v1401_v46 = vsel %vm229_vm3, %v1399_v6, %v1400_v22  ;;  %v4246_v36 = vld [vmem:[#allocation3 + $0x58] sm:$0xf0] }
 0x441   : > { %v1402_v47 = vsel %vm380_vm6, %v1396_v42, %v1401_v46  ;;  %v1259_v25 = vsel %vm229_vm3, %v1257_v44, %v1258_v45  ;;  %v1261_v48 = vsel %vm300_vm0, %v1256_v43, %v1258_v45  ;;  %v4244_v42 = vld [vmem:[#allocation3 + $0x4c] sm:$0xf]  ;;  %v3950_v43 = vld [vmem:[#allocation3 + $0x50] sm:$0xf] }
 0x442   : > { %1406 = vst [vmem:[#allocation3 + $0x54] sm:$0xcc] %v1402_v47  ;;  %v1260_v27 = vsel %vm300_vm0, %v1254_v35, %v1259_v25  ;;  %v3951_v46 = vor.u32 %v4246_v36, %v3950_v43  ;;  %v4242_v47 = vld [vmem:[#allocation3 + $0x38] sm:$0xf0]  ;;  %v3932_v25 = vld [vmem:[#allocation3 + $0x3c] sm:$0xf0] }
 0x443   : > { %1264 = vst [vmem:[#allocation3 + $0x24] sm:$0xcc] %v1260_v27  ;;  %v3930_v27 = vld [vmem:[#allocation3 + $0x30] sm:$0xf] }
 0x444   : > { %1265 = vst [vmem:[#allocation3 + $0x2c] sm:$0xc] %v1261_v48  ;;  %v4243_v48 = vld [vmem:[#allocation3 + $0x40] sm:$0xf0] }
 0x445   : > { %v1418_v49 = vpop.permute.xlu1 %1417  ;;  %v1416_v50 = vpop.permute.xlu0 %1415 }
 0x446   : > { %v1420_v51 = vrot.slane %v1418_v49, 4  ;;  %v1419_v52 = vrot.slane %v1416_v50, 4  ;;  %v1131_v53 = vpop.permute.xlu2 %1130 }
 0x447   : > { %v1134_v24 = vrot.slane %v1131_v53, 4 }
 0x448   : > { %v1423_v18 = vsel %vm403_vm8, %v1418_v49, %v1420_v51  ;;  %v1421_v54 = vsel %vm229_vm3, %v1419_v52, %v1420_v51  ;;  %v4241_v49 = vld [vmem:[#allocation3 + $0x34] sm:$0xf]  ;;  %v3938_v51 = vld [vmem:[#allocation3 + $0x38] sm:$0xf]  ;;  %v3931_v52 = vor.u32 %v4242_v47, %v3930_v27 }
 0x449   : > { %1427 = vst [vmem:[#allocation3 + $0x68] sm:$0x3] %v1423_v18  ;;  %v1422_v55 = vsel %vm403_vm8, %v1416_v50, %v1421_v54  ;;  %v4245_v30 = vld [vmem:[#allocation3 + $0x50] sm:$0xf0]  ;;  %v3944_v33 = vld [vmem:[#allocation3 + $0x54] sm:$0xf0]  ;;  %v3935_v18 = vor.u32 %v4241_v49, %v3932_v25 }
 0x44a   : > { %1426 = vst [vmem:[#allocation3 + $0x60] sm:$0x33] %v1422_v55  ;;  %v3943_v44 = vor.u32 %v4245_v30, %v3942_v41  ;;  %v3947_v45 = vor.u32 %v4244_v42, %v3944_v33  ;;  %v4239_v55 = vld [vmem:[#allocation3 + $0x20] sm:$0xf0]  ;;  %v3961_v49 = vld [vmem:[%s4371_s20 + $0x2a] sm:$0x3f] }
 0x44d   : > { %v1112_v56 = vpop.permute.xlu1 %1111  ;;  %v1439_v57 = vpop.permute.xlu0 %1438 }
 0x44e   : > { %v1114_v59 = vrot.slane %v1112_v56, 4  ;;  %v1441_v35 = vrot.slane %v1439_v57, 4  ;;  %v1153_v60 = vpop.permute.xlu2 %1152 }
 0x44f   : > { %v1155_v39 = vrot.slane %v1153_v60, 4 }
 0x450   : > { %v1117_v61 = vsel %vm231_vm7, %v1112_v56, %v1114_v59  ;;  %v1442_v0 = vsel %vm229_vm3, %v1440_v58, %v1441_v35  ;;  %v1444_v1 = vsel %vm403_vm8, %v1439_v57, %v1441_v35  ;;  %v3920_v56 = vld [vmem:[#allocation3 + $0x24] sm:$0xf0]  ;;  %v4240_v57 = vld [vmem:[#allocation3 + $0x28] sm:$0xf0]  ;;  %v4238_v35 = vld [vmem:[#allocation3 + $0x1c] sm:$0xf] }
 0x451   : > { %1121 = vst [vmem:[#allocation3 + $0x8] sm:$0x3] %v1117_v61  ;;  %v1443_v2 = vsel %vm403_vm8, %v1437_v37, %v1442_v0  ;;  %v1158_v62 = vsel %vm254_vm5, %v1153_v60, %v1155_v39  ;;  %v3923_v0 = vor.u32 %v4238_v35, %v3920_v56 }
 0x452   : > { %1447 = vst [vmem:[#allocation3 + $0x60] sm:$0xcc] %v1443_v2 }
 0x453   : > { %1448 = vst [vmem:[#allocation3 + $0x68] sm:$0xc] %v1444_v1 }
 0x454   : > { %1162 = vst [vmem:[#allocation3 + $0x14] sm:$0x3] %v1158_v62 }
 0x455   : > { %v1151_v3 = vpop.permute.xlu1 %1150  ;;  %v1110_v7 = vpop.permute.xlu0 %1109 }
 0x456   : > { %v1154_v8 = vrot.slane %v1151_v3, 4  ;;  %v1113_v9 = vrot.slane %v1110_v7, 4 }
 0x458   : > { %v1156_v10 = vsel %vm229_vm3, %v1154_v8, %v1155_v39  ;;  %v1115_v12 = vsel %vm229_vm3, %v1113_v9, %v1114_v59  ;;  %v3918_v59 = vld [vmem:[#allocation3 + $0x18] sm:$0xf]  ;;  %v3926_v39 = vld [vmem:[#allocation3 + $0x20] sm:$0xf] }
 0x459   : > { %v1157_v14 = vsel %vm254_vm5, %v1151_v3, %v1156_v10  ;;  %v1116_v15 = vsel %vm231_vm7, %v1110_v7, %v1115_v12  ;;  %v1467_v16 = vld [vmem:[#allocation3 + $0x60] sm:$0xff]  ;;  %v3919_v61 = vor.u32 %v4239_v55, %v3918_v59  ;;  %v3927_v1 = vor.u32 %v4240_v57, %v3926_v39  ;;  %v3903_v8 = vld [vmem:[%s5330_s2 + $0x8] sm:$0xf] }
 0x45a   : > { %1161 = vst [vmem:[#allocation3 + $0xc] sm:$0x33] %v1157_v14  ;;  %v1468_v17 = vld [vmem:[#allocation3 + $0x68] sm:$0xf]  ;;  %v1511_v19 = vunpack.c.l.b16 %v1467_v16  ;;  %v1512_v20 = vunpack.c.h.b16 %v1467_v16 }
 0x45b   : > { %1120 = vst [vmem:[#allocation3] sm:$0x33] %v1116_v15  ;;  %v1513_v21 = vunpack.c.l.b16 %v1468_v17 }
 0x45c   : > { %v1526_v22 = vpack.c.b16 %v1511_v19, %v1511_v19  ;;  %v1527_v23 = vpack.c.b16 %v1512_v20, %v1512_v20 }
 0x45d   : > { %v1174_v26 = vpop.permute.xlu1 %1173  ;;  %v1133_v28 = vpop.permute.xlu0 %1132  ;;  %v1528_v29 = vpack.c.b16 %v1513_v21, %v1513_v21 }
 0x45e   : > { %v1176_v31 = vrot.slane %v1174_v26, 4  ;;  %v1135_v32 = vrot.slane %v1133_v28, 4  ;;  %v1545_v11 = vsel %vm229_vm3, %v1526_v22, 0  ;;  %v1548_v13 = vsel %vm229_vm3, %v1527_v23, 0 }
 0x45f   : > { %v1551_v34 = vsel %vm229_vm3, %v1528_v29, 0  ;;  %1556 = vmatpush.bf16.msrb.mxu2 %v1545_v11  ;;  %1569 = vmatpush.bf16.msrb.mxu3 %v1548_v13  ;;  %v3957_v11 = vld [vmem:[%s4371_s20 + $0x28] sm:$0xff] }
 0x460   : > { %v1179_v37 = vsel %vm254_vm5, %v1174_v26, %v1176_v31  ;;  %v1136_v38 = vsel %vm229_vm3, %v1134_v24, %v1135_v32  ;;  %v1138_v40 = vsel %vm231_vm7, %v1133_v28, %v1135_v32  ;;  %1582 = vmatpush.bf16.msra.mxu0 %v1551_v34 }
 0x461   : > { %1183 = vst [vmem:[#allocation3 + $0x14] sm:$0xc] %v1179_v37  ;;  %v1137_v6 = vsel %vm231_vm7, %v1131_v53, %v1136_v38  ;;  %v3939_v53 = vor.u32 %v4243_v48, %v3938_v51 }
 0x462   : > { %1141 = vst [vmem:[#allocation3] sm:$0xcc] %v1137_v6 }
 0x463   : > { %1142 = vst [vmem:[#allocation3 + $0x8] sm:$0xc] %v1138_v40  ;;  %1557 = vmatpush.bf16.msrb.mxu2 %v3943_v44  ;;  %1570 = vmatpush.bf16.msrb.mxu3 %v3947_v45 }
 0x464   : > { %1583 = vmatpush.bf16.msra.mxu0 %v3951_v46 }
 0x465   : > { %v1172_v50 = vpop.permute.xlu0 %1171 }
 0x466   : > { %v1175_v54 = vrot.slane %v1172_v50, 4 }
 0x467   : > { %1558 = vmatpush.bf16.msrb.mxu2 %v3931_v52  ;;  %1571 = vmatpush.bf16.msrb.mxu3 %v3935_v18 }
 0x468   : > { %v1177_v58 = vsel %vm229_vm3, %v1175_v54, %v1176_v31  ;;  %1584 = vmatpush.bf16.msra.mxu0 %v3939_v53  ;;  %v4237_v62 = vld [vmem:[#allocation3 + $0x10] sm:$0xf0]  ;;  %v3962_v53 = vld [vmem:[%s4371_s20 + $0x2a] sm:$0xff] }
 0x469   : > { %v1178_v60 = vsel %vm254_vm5, %v1172_v50, %v1177_v58  ;;  %v3906_v7 = vld [vmem:[#allocation3] sm:$0xf]  ;;  %v4235_v10 = vld [vmem:[#allocation3 + $0x4] sm:$0xf] }
 0x46a   : > { %1182 = vst [vmem:[#allocation3 + $0xc] sm:$0xcc] %v1178_v60  ;;  %v3914_v2 = vld [vmem:[#allocation3 + $0x8] sm:$0xf] }
 0x46b   : > { %1559 = vmatpush.bf16.msrb.mxu2 %v3919_v61  ;;  %1572 = vmatpush.bf16.msrb.mxu3 %v3923_v0  ;;  %v3915_v3 = vor.u32 %v4237_v62, %v3914_v2 }
 0x46c   : > { %1585 = vmatpush.bf16.msra.mxu0 %v3927_v1 }
 0x470   : > { %1586 = vmatpush.bf16.msra.mxu0 %v3915_v3 }
 0x471   : > { %v4236_v9 = vld [vmem:[#allocation3 + $0x8] sm:$0xf0]  ;;  %v3908_v12 = vld [vmem:[#allocation3 + $0xc] sm:$0xf0] }
 0x472   : > { %v3907_v14 = vor.u32 %v4236_v9, %v3906_v7  ;;  %v3911_v15 = vor.u32 %v4235_v10, %v3908_v12 }
 0x473   : > { %3954 = vmatmul.msk.bf16.vlgmr.msra.gmra.mxu0 %vm503_vm9, %v3903_v8 }
 0x474   : > { %1560 = vmatpush.bf16.msrb.mxu2 %v3907_v14  ;;  %1573 = vmatpush.bf16.msrb.mxu3 %v3911_v15 }
 0x477   : > { %3952 = vmatmul.msk.bf16.vlgmr.msrb.gmra.mxu2 %vm503_vm9, %v3903_v8  ;;  %3953 = vmatmul.msk.bf16.vlgmr.msrb.gmra.mxu3 %vm503_vm9, %v3903_v8 }
 0x4f0   : > { %v1588_v16 = vpop.f32.mrf.mxu0 }
 0x4f1   : > { %v1594_v17 = vmax.f32 %v1588_v16, 0.0 }
 0x4f3   : > { %3956 = vst [vmem:[%s4464_s10 + $0x20] sm:$0xf] %v1594_v17  ;;  %v1605_v19 = vmul.f32 %v1594_v17, %v4459_v63 }
 0x4f5   : > { %v1607_v20 = vpack.c.bf16 %v1605_v19, %v1605_v19 }
 0x4f7   : > { %1611 = vst.sshfl [vmem:[#allocation1 + $0x8] sm:$0xff pattern:$0x75643120] %v1607_v20 }
 0x4f8   : > { %v1590_v21 = vpop.f32.mrf.mxu0 }
 0x4fa   : > { %v1562_v22 = vpop.f32.mrf.mxu2  ;;  %v1575_v23 = vpop.f32.mrf.mxu3 }
 0x4fb   : > { %v1592_v24 = vmax.f32 %v1562_v22, 0.0  ;;  %v1593_v26 = vmax.f32 %v1575_v23, 0.0 }
 0x4fd   : > { %v1603_v28 = vmul.f32 %v1592_v24, %v4468_v4  ;;  %v1597_v29 = vrot.slane %v1593_v26, 4  ;;  %v1604_v30 = vmul.f32 %v1593_v26, %v4470_v5 }
 0x4ff   : > { %v1598_v31 = vsel %vm229_vm3, %v1592_v24, %v1597_v29  ;;  %v1606_v32 = vpack.c.bf16 %v1604_v30, %v1603_v28 }
 0x500   : > { %3955 = vst [vmem:[%s4464_s10 + $0x18] sm:$0xff] %v1598_v31 }
 0x501   : > { %1609 = vst.sshfl [vmem:[#allocation1] sm:$0xff pattern:$0x75643120] %v1606_v32 }
 0x502   : > { %v1564_v13 = vpop.f32.mrf.mxu2  ;;  %v1577_v33 = vpop.f32.mrf.mxu3  ;;  %1619 = vst [vmem:[#allocation1] ss:$2 sm:$0xff] %v3957_v11 }
 0x508   : > { %v1613_v34 = vld [vmem:[#allocation1 + $0x1] ss:$2 sm:$0xff] }
 0x509   : > { %1615 = vst [vmem:[#allocation2 + $0x2] sm:$0x3f] %v1613_v34  ;;  %v4740_v36 = vld.sshfl [vmem:[#allocation1] sm:$0xff pattern:$0x75643120] }
 0x50a   : > { %v4742_v37 = vld.sshfl [vmem:[#allocation1 + $0x8] sm:$0xff pattern:$0x75643120] }
 0x510   : > { %v1637_v38 = vld [vmem:[#allocation2] sm:$0xff] }
 0x511   : > { %1640 = vst [vmem:[#allocation1 + $0x1] ss:$2 sm:$0xff] %v1637_v38  ;;  %v1790_v52 = vld [vmem:[#allocation2 + $0x2] sm:$0x3f] }
 0x512   : > { %v1861_v57 = vld [vmem:[#allocation2 + $0x2] sm:$0xff] }
 0x518   : > { %v4744_v40 = vld.sshfl [vmem:[#allocation1] sm:$0xff pattern:$0x75643120]  ;;  %v4746_v41 = vld.sshfl [vmem:[#allocation1 + $0x8] sm:$0xff pattern:$0x75643120] }
 0x519   : > { %1660 = vst [vmem:[#allocation1] ss:$2 sm:$0xff] %v3957_v11 }
 0x520   : > { %v4748_v42 = vld.sshfl [vmem:[#allocation1] sm:$0xff pattern:$0x75643120]  ;;  %v4750_v6 = vld.sshfl [vmem:[#allocation1 + $0x8] sm:$0xff pattern:$0x75643120] }
 0x521   : > { %1681 = vst [vmem:[#allocation1 + $0x1] ss:$2 sm:$0xff] %v1637_v38 }
 0x528   : > { %v4752_v43 = vld.sshfl [vmem:[#allocation1] sm:$0xff pattern:$0x75643120]  ;;  %v4754_v44 = vld.sshfl [vmem:[#allocation1 + $0x8] sm:$0xff pattern:$0x75643120] }
 0x529   : > { %1701 = vst [vmem:[#allocation1] ss:$2 sm:$0xff] %v3957_v11 }
 0x530   : > { %v1704_v45 = vld.sshfl [vmem:[#allocation1 + $0x8] sm:$0xff pattern:$0x75643120]  ;;  %v1702_v46 = vld.sshfl [vmem:[#allocation1] sm:$0xff pattern:$0x75643120] }
 0x531   : > { %1708 = vrot.lane.b32.xlu1 %v1704_v45, %s4323_s21  ;;  %1706 = vrot.lane.b32.xlu0 %v1702_v46, %s4323_s21  ;;  %1722 = vst [vmem:[#allocation1 + $0x1] ss:$2 sm:$0xff] %v1637_v38 }
 0x538   : > { %v1725_v47 = vld.sshfl [vmem:[#allocation1 + $0x8] sm:$0xff pattern:$0x75643120]  ;;  %v1723_v25 = vld.sshfl [vmem:[#allocation1] sm:$0xff pattern:$0x75643120] }
 0x539   : > { %1729 = vrot.lane.b32.xlu0 %v1725_v47, %s4323_s21  ;;  %1727 = vrot.lane.b32.xlu2 %v1723_v25, %s4323_s21  ;;  %1742 = vst [vmem:[#allocation1] ss:$2 sm:$0xff] %v3957_v11 }
 0x540   : > { %v1745_v48 = vld.sshfl [vmem:[#allocation1 + $0x8] sm:$0xff pattern:$0x75643120]  ;;  %v1743_v27 = vld.sshfl [vmem:[#allocation1] sm:$0xff pattern:$0x75643120] }
 0x541   : > { %1749 = vrot.lane.b32.xlu2 %v1745_v48, %s4324_s22  ;;  %1747 = vrot.lane.b32.xlu1 %v1743_v27, %s4324_s22  ;;  %1763 = vst [vmem:[#allocation1 + $0x1] ss:$2 sm:$0xff] %v1637_v38 }
 0x548   : > { %v1764_v50 = vld.sshfl [vmem:[#allocation1] sm:$0xff pattern:$0x75643120]  ;;  %v4763_v51 = vld.sshfl [vmem:[#allocation1 + $0x8] sm:$0xff pattern:$0x75643120] }
 0x549   : > { %1768 = vrot.lane.b32.xlu0 %v1764_v50, %s4324_s22  ;;  %1783 = vst [vmem:[#allocation1] ss:$2 sm:$0xff] %v3961_v49 }
 0x550   : > { %v1784_v18 = vld.sshfl [vmem:[#allocation1] sm:$0xff pattern:$0x75643120]  ;;  %v1785_v54 = vld.sshfl [vmem:[#allocation1 + $0x8] sm:$0xff pattern:$0x75643120] }
 0x551   : > { %1793 = vst [vmem:[#allocation1 + $0x1] ss:$2 sm:$0xff] %v1790_v52 }
 0x552   : > { %1788 = vst [vmem:[#allocation3 + $0x30] sm:$0x33] %v1784_v18 }
 0x553   : > { %1789 = vst [vmem:[#allocation3 + $0x38] sm:$0x3] %v1785_v54 }
 0x558   : > { %v1794_v55 = vld.sshfl [vmem:[#allocation1] sm:$0xff pattern:$0x75643120]  ;;  %v1795_v56 = vld.sshfl [vmem:[#allocation1 + $0x8] sm:$0xff pattern:$0x75643120] }
 0x559   : > { %1798 = vst [vmem:[#allocation3 + $0x30] sm:$0xcc] %v1794_v55 }
 0x55a   : > { %1799 = vst [vmem:[#allocation3 + $0x38] sm:$0xc] %v1795_v56 }
 0x55b   : > { %1802 = vst [vmem:[#allocation1] ss:$2 sm:$0xff] %v3962_v53 }
 0x562   : > { %v1805_v58 = vld.sshfl [vmem:[#allocation1 + $0x8] sm:$0xff pattern:$0x75643120]  ;;  %v1803_v59 = vld.sshfl [vmem:[#allocation1] sm:$0xff pattern:$0x75643120] }
 0x563   : > { %1809 = vrot.lane.b32.xlu0 %v1805_v58, %s4325_s23  ;;  %1807 = vrot.lane.b32.xlu2 %v1803_v59, %s4325_s23  ;;  %1823 = vst [vmem:[#allocation1 + $0x1] ss:$2 sm:$0xff] %v1861_v57 }
 0x56a   : > { %v1826_v35 = vld.sshfl [vmem:[#allocation1 + $0x8] sm:$0xff pattern:$0x75643120]  ;;  %v1824_v60 = vld.sshfl [vmem:[#allocation1] sm:$0xff pattern:$0x75643120] }
 0x56b   : > { %1830 = vrot.lane.b32.xlu2 %v1826_v35, %s4325_s23  ;;  %1828 = vrot.lane.b32.xlu1 %v1824_v60, %s4325_s23  ;;  %1843 = vst [vmem:[#allocation1] ss:$2 sm:$0xff] %v3962_v53 }
 0x572   : > { %v1846_v39 = vld.sshfl [vmem:[#allocation1 + $0x8] sm:$0xff pattern:$0x75643120]  ;;  %v1844_v61 = vld.sshfl [vmem:[#allocation1] sm:$0xff pattern:$0x75643120] }
 0x573   : > { %1850 = vrot.lane.b32.xlu1 %v1846_v39, %s4326_s24  ;;  %1848 = vrot.lane.b32.xlu0 %v1844_v61, %s4326_s24  ;;  %1864 = vst [vmem:[#allocation1 + $0x1] ss:$2 sm:$0xff] %v1861_v57 }
 0x57a   : > { %v1867_v0 = vld.sshfl [vmem:[#allocation1 + $0x8] sm:$0xff pattern:$0x75643120]  ;;  %v1865_v1 = vld.sshfl [vmem:[#allocation1] sm:$0xff pattern:$0x75643120] }
 0x57b   : > { %1871 = vrot.lane.b32.xlu0 %v1867_v0, %s4326_s24  ;;  %1869 = vrot.lane.b32.xlu2 %v1865_v1, %s4326_s24  ;;  %1884 = vst [vmem:[#allocation1] ss:$2 sm:$0xff] %v3962_v53 }
 0x582   : > { %v1887_v2 = vld.sshfl [vmem:[#allocation1 + $0x8] sm:$0xff pattern:$0x75643120]  ;;  %v1885_v62 = vld.sshfl [vmem:[#allocation1] sm:$0xff pattern:$0x75643120] }
 0x583   : > { %1891 = vrot.lane.b32.xlu2 %v1887_v2, %s4327_s25  ;;  %1889 = vrot.lane.b32.xlu1 %v1885_v62, %s4327_s25  ;;  %1905 = vst [vmem:[#allocation1 + $0x1] ss:$2 sm:$0xff] %v1861_v57 }
 0x58a   : > { %v1908_v3 = vld.sshfl [vmem:[#allocation1 + $0x8] sm:$0xff pattern:$0x75643120]  ;;  %v1906_v7 = vld.sshfl [vmem:[#allocation1] sm:$0xff pattern:$0x75643120] }
 0x58b   : > { %1912 = vrot.lane.b32.xlu1 %v1908_v3, %s4327_s25  ;;  %1910 = vrot.lane.b32.xlu0 %v1906_v7, %s4327_s25  ;;  %1925 = vst [vmem:[#allocation1] ss:$2 sm:$0xff] %v3962_v53 }
 0x592   : > { %v1928_v8 = vld.sshfl [vmem:[#allocation1 + $0x8] sm:$0xff pattern:$0x75643120]  ;;  %v1926_v9 = vld.sshfl [vmem:[#allocation1] sm:$0xff pattern:$0x75643120] }
 0x593   : > { %1932 = vrot.lane.b32.xlu0 %v1928_v8, %s4330_s28  ;;  %1930 = vrot.lane.b32.xlu2 %v1926_v9, %s4330_s28  ;;  %1946 = vst [vmem:[#allocation1 + $0x1] ss:$2 sm:$0xff] %v1861_v57  ;;  %v1728_v10 = vpop.permute.xlu2 %1727 }
 0x594   : > { %v1731_v29 = vrot.slane %v1728_v10, 4 }
 0x59a   : > { %v1949_v12 = vld.sshfl [vmem:[#allocation1 + $0x8] sm:$0xff pattern:$0x75643120]  ;;  %v1947_v14 = vld.sshfl [vmem:[#allocation1] sm:$0xff pattern:$0x75643120] }
 0x59b   : > { %1626 = vrot.lane.b32.xlu0 %v4742_v37, %s4329_s27  ;;  %1953 = vrot.lane.b32.xlu2 %v1949_v12, %s4330_s28  ;;  %v1750_v15 = vpop.permute.xlu2 %1749 }
 0x59c   : > { %1951 = vrot.lane.b32.xlu1 %v1947_v14, %s4330_s28  ;;  %v1752_v16 = vrot.slane %v1750_v15, 4 }
 0x59e   : > { %v1755_v17 = vsel %vm300_vm0, %v1750_v15, %v1752_v16 }
 0x59f   : > { %1759 = vst [vmem:[#allocation3 + $0x2c] sm:$0x3] %v1755_v17 }
 0x5a3   : > { %1665 = vrot.lane.b32.xlu0 %v4748_v42, %s4328_s26  ;;  %1624 = vrot.lane.b32.xlu2 %v4740_v36, %s4329_s27  ;;  %v1709_v19 = vpop.permute.xlu1 %1708  ;;  %v1707_v20 = vpop.permute.xlu0 %1706 }
 0x5a4   : > { %1770 = vrot.lane.b32.xlu1 %v4763_v51, %s4324_s22  ;;  %v1711_v21 = vrot.slane %v1709_v19, 4  ;;  %v1710_v22 = vrot.slane %v1707_v20, 4 }
 0x5a6   : > { %v1714_v23 = vsel %vm277_vm1, %v1709_v19, %v1711_v21  ;;  %v1712_v24 = vsel %vm229_vm3, %v1710_v22, %v1711_v21 }
 0x5a7   : > { %1718 = vst [vmem:[#allocation3 + $0x20] sm:$0x3] %v1714_v23  ;;  %v1713_v26 = vsel %vm277_vm1, %v1707_v20, %v1712_v24 }
 0x5a8   : > { %1717 = vst [vmem:[#allocation3 + $0x18] sm:$0x33] %v1713_v26 }
 0x5ab   : > { %1688 = vrot.lane.b32.xlu0 %v4754_v44, %s4328_s26  ;;  %1647 = vrot.lane.b32.xlu2 %v4746_v41, %s4329_s27  ;;  %v1730_v28 = vpop.permute.xlu0 %1729 }
 0x5ac   : > { %1645 = vrot.lane.b32.xlu1 %v4744_v40, %s4329_s27  ;;  %v1732_v30 = vrot.slane %v1730_v28, 4 }
 0x5ae   : > { %v1733_v31 = vsel %vm229_vm3, %v1731_v29, %v1732_v30  ;;  %v1735_v32 = vsel %vm277_vm1, %v1730_v28, %v1732_v30 }
 0x5af   : > { %v1734_v11 = vsel %vm277_vm1, %v1728_v10, %v1733_v31  ;;  %1739 = vst [vmem:[#allocation3 + $0x20] sm:$0xc] %v1735_v32 }
 0x5b0   : > { %1738 = vst [vmem:[#allocation3 + $0x18] sm:$0xcc] %v1734_v11 }
 0x5b3   : > { %1686 = vrot.lane.b32.xlu2 %v4752_v43, %s4328_s26  ;;  %v1748_v13 = vpop.permute.xlu1 %1747 }
 0x5b4   : > { %1667 = vrot.lane.b32.xlu1 %v4750_v6, %s4328_s26  ;;  %v1751_v33 = vrot.slane %v1748_v13, 4 }
 0x5b6   : > { %v1753_v34 = vsel %vm229_vm3, %v1751_v33, %v1752_v16 }
 0x5b7   : > { %v1754_v36 = vsel %vm300_vm0, %v1748_v13, %v1753_v34 }
 0x5b8   : > { %1758 = vst [vmem:[#allocation3 + $0x24] sm:$0x33] %v1754_v36 }
 0x5bb   : > { %v4811_v42 = vpop.permute.xlu0 %1768 }
 0x5bd   : > { %v1808_v37 = vpop.permute.xlu2 %1807 }
 0x5be   : > { %v1811_v45 = vrot.slane %v1808_v37, 4 }
 0x5c5   : > { %v1831_v38 = vpop.permute.xlu2 %1830 }
 0x5c6   : > { %v1833_v40 = vrot.slane %v1831_v38, 4 }
 0x5c8   : > { %v1836_v41 = vsel %vm334_vm2, %v1831_v38, %v1833_v40 }
 0x5c9   : > { %1840 = vst [vmem:[#allocation3 + $0x44] sm:$0xc] %v1836_v41 }
 0x5d5   : > { %v1810_v44 = vpop.permute.xlu0 %1809  ;;  %v1870_v43 = vpop.permute.xlu2 %1869 }
 0x5d6   : > { %v1812_v46 = vrot.slane %v1810_v44, 4  ;;  %v1873_v39 = vrot.slane %v1870_v43, 4 }
 0x5d8   : > { %v1813_v6 = vsel %vm229_vm3, %v1811_v45, %v1812_v46  ;;  %v1815_v47 = vsel %vm334_vm2, %v1810_v44, %v1812_v46 }
 0x5d9   : > { %v1814_v25 = vsel %vm334_vm2, %v1808_v37, %v1813_v6  ;;  %1819 = vst [vmem:[#allocation3 + $0x44] sm:$0x3] %v1815_v47 }
 0x5da   : > { %1818 = vst [vmem:[#allocation3 + $0x3c] sm:$0x33] %v1814_v25 }
 0x5dd   : > { %v1829_v48 = vpop.permute.xlu1 %1828  ;;  %v1892_v27 = vpop.permute.xlu2 %1891 }
 0x5de   : > { %v1832_v49 = vrot.slane %v1829_v48, 4  ;;  %v1894_v50 = vrot.slane %v1892_v27, 4 }
 0x5e0   : > { %v1834_v51 = vsel %vm229_vm3, %v1832_v49, %v1833_v40  ;;  %v1897_v52 = vsel %vm380_vm6, %v1892_v27, %v1894_v50  ;;  %v1772_v49 = vrot.slane %v4811_v42, 4 }
 0x5e1   : > { %v1835_v18 = vsel %vm334_vm2, %v1829_v48, %v1834_v51  ;;  %1901 = vst [vmem:[#allocation3 + $0x5c] sm:$0x3] %v1897_v52 }
 0x5e2   : > { %1839 = vst [vmem:[#allocation3 + $0x3c] sm:$0xcc] %v1835_v18 }
 0x5e5   : > { %v1851_v54 = vpop.permute.xlu1 %1850  ;;  %v1849_v53 = vpop.permute.xlu0 %1848 }
 0x5e6   : > { %v1853_v55 = vrot.slane %v1851_v54, 4  ;;  %v1852_v56 = vrot.slane %v1849_v53, 4 }
 0x5e8   : > { %v1856_v57 = vsel %vm357_vm4, %v1851_v54, %v1853_v55  ;;  %v1854_v58 = vsel %vm229_vm3, %v1852_v56, %v1853_v55 }
 0x5e9   : > { %1860 = vst [vmem:[#allocation3 + $0x50] sm:$0x3] %v1856_v57  ;;  %v1855_v59 = vsel %vm357_vm4, %v1849_v53, %v1854_v58  ;;  %v4255_v53 = vld [vmem:[#allocation3 + $0x40] sm:$0xf0]  ;;  %v4001_v58 = vld [vmem:[#allocation3 + $0x38] sm:$0xf] }
 0x5ea   : > { %1859 = vst [vmem:[#allocation3 + $0x48] sm:$0x33] %v1855_v59 }
 0x5ed   : > { %v1872_v35 = vpop.permute.xlu0 %1871  ;;  %v1931_v60 = vpop.permute.xlu2 %1930 }
 0x5ee   : > { %v1874_v61 = vrot.slane %v1872_v35, 4  ;;  %v1934_v24 = vrot.slane %v1931_v60, 4 }
 0x5f0   : > { %v1875_v0 = vsel %vm229_vm3, %v1873_v39, %v1874_v61  ;;  %v1877_v1 = vsel %vm357_vm4, %v1872_v35, %v1874_v61 }
 0x5f1   : > { %v1876_v2 = vsel %vm357_vm4, %v1870_v43, %v1875_v0  ;;  %1881 = vst [vmem:[#allocation3 + $0x50] sm:$0xc] %v1877_v1 }
 0x5f2   : > { %1880 = vst [vmem:[#allocation3 + $0x48] sm:$0xcc] %v1876_v2 }
 0x5f5   : > { %v1890_v62 = vpop.permute.xlu1 %1889  ;;  %v1954_v3 = vpop.permute.xlu2 %1953 }
 0x5f6   : > { %v1893_v7 = vrot.slane %v1890_v62, 4  ;;  %v1956_v8 = vrot.slane %v1954_v3, 4 }
 0x5f8   : > { %v1895_v9 = vsel %vm229_vm3, %v1893_v7, %v1894_v50  ;;  %v1959_v10 = vsel %vm403_vm8, %v1954_v3, %v1956_v8  ;;  %v4013_v51 = vld [vmem:[#allocation3 + $0x50] sm:$0xf] }
 0x5f9   : > { %v1896_v12 = vsel %vm380_vm6, %v1890_v62, %v1895_v9  ;;  %1963 = vst [vmem:[#allocation3 + $0x68] sm:$0xc] %v1959_v10 }
 0x5fa   : > { %1900 = vst [vmem:[#allocation3 + $0x54] sm:$0x33] %v1896_v12 }
 0x5fd   : > { %v1913_v14 = vpop.permute.xlu1 %1912  ;;  %v1911_v15 = vpop.permute.xlu0 %1910 }
 0x5fe   : > { %v1915_v16 = vrot.slane %v1913_v14, 4  ;;  %v1914_v17 = vrot.slane %v1911_v15, 4  ;;  %v1625_v19 = vpop.permute.xlu2 %1624 }
 0x5ff   : > { %v1628_v33 = vrot.slane %v1625_v19, 4 }
 0x600   : > { %v1918_v20 = vsel %vm380_vm6, %v1913_v14, %v1915_v16  ;;  %v1916_v21 = vsel %vm229_vm3, %v1914_v17, %v1915_v16  ;;  %v4005_v14 = vld [vmem:[#allocation3 + $0x48] sm:$0xf] }
 0x601   : > { %1922 = vst [vmem:[#allocation3 + $0x5c] sm:$0xc] %v1918_v20  ;;  %v1917_v22 = vsel %vm380_vm6, %v1911_v15, %v1916_v21  ;;  %v3989_v15 = vld [vmem:[#allocation3 + $0x20] sm:$0xf] }
 0x602   : > { %1921 = vst [vmem:[#allocation3 + $0x54] sm:$0xcc] %v1917_v22 }
 0x605   : > { %v1933_v23 = vpop.permute.xlu0 %1932 }
 0x606   : > { %v1935_v26 = vrot.slane %v1933_v23, 4  ;;  %v4831_v28 = vpop.permute.xlu2 %1647 }
 0x607   : > { %v1650_v29 = vrot.slane %v4831_v28, 4 }
 0x608   : > { %v1936_v30 = vsel %vm229_vm3, %v1934_v24, %v1935_v26  ;;  %v1938_v31 = vsel %vm403_vm8, %v1933_v23, %v1935_v26  ;;  %v4258_v48 = vld [vmem:[#allocation3 + $0x58] sm:$0xf0] }
 0x609   : > { %v1937_v32 = vsel %vm403_vm8, %v1931_v60, %v1936_v30  ;;  %1942 = vst [vmem:[#allocation3 + $0x68] sm:$0x3] %v1938_v31  ;;  %v1653_v11 = vsel %vm231_vm7, %v4831_v28, %v1650_v29  ;;  %v4014_v52 = vor.u32 %v4258_v48, %v4013_v51  ;;  %v4002_v60 = vor.u32 %v4255_v53, %v4001_v58  ;;  %v4257_v3 = vld [vmem:[#allocation3 + $0x50] sm:$0xf0]  ;;  %v4007_v9 = vld [vmem:[#allocation3 + $0x54] sm:$0xf0] }
 0x60a   : > { %1941 = vst [vmem:[#allocation3 + $0x60] sm:$0x33] %v1937_v32  ;;  %v4006_v22 = vor.u32 %v4257_v3, %v4005_v14  ;;  %v4254_v26 = vld [vmem:[#allocation3 + $0x38] sm:$0xf0]  ;;  %v3995_v30 = vld [vmem:[#allocation3 + $0x3c] sm:$0xf0] }
 0x60b   : > { %1657 = vst [vmem:[#allocation3 + $0x8] sm:$0xc] %v1653_v11  ;;  %v3993_v31 = vld [vmem:[#allocation3 + $0x30] sm:$0xf]  ;;  %v4253_v32 = vld [vmem:[#allocation3 + $0x34] sm:$0xf] }
 0x60c   : > { %v3994_v28 = vor.u32 %v4254_v26, %v3993_v31  ;;  %v4024_v26 = vld [vmem:[%s4371_s20 + $0x34] sm:$0x3f] }
 0x60d   : > { %v1627_v13 = vpop.permute.xlu0 %1626 }
 0x60e   : > { %v1629_v34 = vrot.slane %v1627_v13, 4  ;;  %v1952_v36 = vpop.permute.xlu1 %1951  ;;  %v1687_v57 = vpop.permute.xlu2 %1686 }
 0x60f   : > { %v1955_v37 = vrot.slane %v1952_v36, 4  ;;  %v1690_v1 = vrot.slane %v1687_v57, 4 }
 0x610   : > { %v1630_v38 = vsel %vm229_vm3, %v1628_v33, %v1629_v34  ;;  %v1632_v40 = vsel %vm231_vm7, %v1627_v13, %v1629_v34  ;;  %v1983_v41 = vld [vmem:[#allocation3 + $0x68] sm:$0xf]  ;;  %v3998_v13 = vor.u32 %v4253_v32, %v3995_v30 }
 0x611   : > { %v1631_v44 = vsel %vm231_vm7, %v1625_v19, %v1630_v38  ;;  %1636 = vst [vmem:[#allocation3 + $0x8] sm:$0x3] %v1632_v40  ;;  %v1957_v43 = vsel %vm229_vm3, %v1955_v37, %v1956_v8  ;;  %v2028_v45 = vunpack.c.l.b16 %v1983_v41  ;;  %v4256_v19 = vld [vmem:[#allocation3 + $0x4c] sm:$0xf]  ;;  %v3981_v40 = vld [vmem:[#allocation3 + $0x18] sm:$0xf] }
 0x612   : > { %1635 = vst [vmem:[#allocation3] sm:$0x33] %v1631_v44  ;;  %v1958_v46 = vsel %vm403_vm8, %v1952_v36, %v1957_v43  ;;  %v4010_v23 = vor.u32 %v4256_v19, %v4007_v9  ;;  %v4250_v41 = vld [vmem:[#allocation3 + $0x1c] sm:$0xf] }
 0x613   : > { %1962 = vst [vmem:[#allocation3 + $0x60] sm:$0xcc] %v1958_v46  ;;  %v2043_v6 = vpack.c.b16 %v2028_v45, %v2028_v45 }
 0x615   : > { %v4846_v47 = vpop.permute.xlu0 %1665  ;;  %v2066_v25 = vsel %vm229_vm3, %v2043_v6, 0 }
 0x616   : > { %v1771_v27 = vpop.permute.xlu1 %1770  ;;  %2097 = vmatpush.bf16.msra.mxu3 %v2066_v25 }
 0x617   : > { %v1773_v50 = vrot.slane %v1771_v27, 4 }
 0x618   : > { %v3977_v46 = vld [vmem:[#allocation3 + $0x8] sm:$0xf] }
 0x619   : > { %v1774_v18 = vsel %vm229_vm3, %v1772_v49, %v1773_v50  ;;  %v1776_v54 = vsel %vm300_vm0, %v1771_v27, %v1773_v50 }
 0x61a   : > { %v1775_v55 = vsel %vm300_vm0, %v4811_v42, %v1774_v18  ;;  %1780 = vst [vmem:[#allocation3 + $0x2c] sm:$0xc] %v1776_v54  ;;  %2098 = vmatpush.bf16.msra.mxu3 %v4014_v52  ;;  %v1982_v56 = vld [vmem:[#allocation3 + $0x60] sm:$0xff] }
 0x61b   : > { %1779 = vst [vmem:[#allocation3 + $0x24] sm:$0xcc] %v1775_v55  ;;  %v2026_v59 = vunpack.c.l.b16 %v1982_v56  ;;  %v2027_v35 = vunpack.c.h.b16 %v1982_v56 }
 0x61d   : > { %v1689_v39 = vpop.permute.xlu0 %1688  ;;  %v2041_v61 = vpack.c.b16 %v2026_v59, %v2026_v59  ;;  %v2042_v0 = vpack.c.b16 %v2027_v35, %v2027_v35 }
 0x61e   : > { %v1691_v2 = vrot.slane %v1689_v39, 4  ;;  %v1646_v62 = vpop.permute.xlu1 %1645  ;;  %2099 = vmatpush.bf16.msra.mxu3 %v4002_v60 }
 0x61f   : > { %v1649_v7 = vrot.slane %v1646_v62, 4  ;;  %v2060_v42 = vsel %vm229_vm3, %v2041_v61, 0  ;;  %v2063_v8 = vsel %vm229_vm3, %v2042_v0, 0 }
 0x620   : > { %v1692_v10 = vsel %vm229_vm3, %v1690_v1, %v1691_v2  ;;  %v1694_v12 = vsel %vm254_vm5, %v1689_v39, %v1691_v2  ;;  %2071 = vmatpush.bf16.msra.mxu1 %v2060_v42  ;;  %2084 = vmatpush.bf16.msra.mxu2 %v2063_v8  ;;  %v4020_v2 = vld [vmem:[%s4371_s20 + $0x32] sm:$0xff] }
 0x621   : > { %v1693_v16 = vsel %vm254_vm5, %v1687_v57, %v1692_v10  ;;  %1698 = vst [vmem:[#allocation3 + $0x14] sm:$0xc] %v1694_v12  ;;  %v1651_v17 = vsel %vm229_vm3, %v1649_v7, %v1650_v29  ;;  %v4252_v20 = vld [vmem:[#allocation3 + $0x28] sm:$0xf0]  ;;  %v1669_v29 = vrot.slane %v4846_v47, 4 }
 0x622   : > { %1697 = vst [vmem:[#allocation3 + $0xc] sm:$0xcc] %v1693_v16  ;;  %v1652_v21 = vsel %vm231_vm7, %v1646_v62, %v1651_v17  ;;  %v3990_v24 = vor.u32 %v4252_v20, %v3989_v15  ;;  %v4251_v34 = vld [vmem:[#allocation3 + $0x20] sm:$0xf0]  ;;  %v3983_v36 = vld [vmem:[#allocation3 + $0x24] sm:$0xf0] }
 0x623   : > { %1656 = vst [vmem:[#allocation3] sm:$0xcc] %v1652_v21  ;;  %v3982_v43 = vor.u32 %v4251_v34, %v3981_v40  ;;  %v3986_v45 = vor.u32 %v4250_v41, %v3983_v36 }
 0x624   : > { %2072 = vmatpush.bf16.msra.mxu1 %v4006_v22  ;;  %2085 = vmatpush.bf16.msra.mxu2 %v4010_v23 }
 0x625   : > { %2100 = vmatpush.bf16.msra.mxu3 %v3990_v24 }
 0x626   : > { %v1668_v11 = vpop.permute.xlu1 %1667 }
 0x627   : > { %v1670_v33 = vrot.slane %v1668_v11, 4 }
 0x628   : > { %2073 = vmatpush.bf16.msra.mxu1 %v3994_v28  ;;  %2086 = vmatpush.bf16.msra.mxu2 %v3998_v13  ;;  %v4025_v13 = vld [vmem:[%s4371_s20 + $0x34] sm:$0xff] }
 0x629   : > { %v1671_v37 = vsel %vm229_vm3, %v1669_v29, %v1670_v33  ;;  %v1673_v38 = vsel %vm254_vm5, %v1668_v11, %v1670_v33 }
 0x62a   : > { %v1672_v44 = vsel %vm254_vm5, %v4846_v47, %v1671_v37  ;;  %1677 = vst [vmem:[#allocation3 + $0x14] sm:$0x3] %v1673_v38  ;;  %v3969_v25 = vld [vmem:[#allocation3] sm:$0xf]  ;;  %v4247_v49 = vld [vmem:[#allocation3 + $0x4] sm:$0xf] }
 0x62b   : > { %1676 = vst [vmem:[#allocation3 + $0xc] sm:$0x33] %v1672_v44  ;;  %v3966_v47 = vld [vmem:[%s5330_s2 + $0xc] sm:$0xf] }
 0x62c   : > { %2074 = vmatpush.bf16.msra.mxu1 %v3982_v43  ;;  %2087 = vmatpush.bf16.msra.mxu2 %v3986_v45 }
 0x631   : > { %v4249_v6 = vld [vmem:[#allocation3 + $0x10] sm:$0xf0] }
 0x632   : > { %v3978_v48 = vor.u32 %v4249_v6, %v3977_v46  ;;  %v4248_v27 = vld [vmem:[#allocation3 + $0x8] sm:$0xf0]  ;;  %v3971_v50 = vld [vmem:[#allocation3 + $0xc] sm:$0xf0] }
 0x633   : > { %v3970_v51 = vor.u32 %v4248_v27, %v3969_v25  ;;  %v3974_v52 = vor.u32 %v4247_v49, %v3971_v50 }
 0x634   : > { %2101 = vmatpush.bf16.msra.mxu3 %v3978_v48 }
 0x635   : > { %2075 = vmatpush.bf16.msra.mxu1 %v3970_v51  ;;  %2088 = vmatpush.bf16.msra.mxu2 %v3974_v52 }
 0x637   : > { %4017 = vmatmul.msk.bf16.vlgmr.msra.gmra.mxu3 %vm503_vm9, %v3966_v47 }
 0x638   : > { %4015 = vmatmul.msk.bf16.vlgmr.msra.gmra.mxu1 %vm503_vm9, %v3966_v47  ;;  %4016 = vmatmul.msk.bf16.vlgmr.msra.gmra.mxu2 %vm503_vm9, %v3966_v47 }
 0x6b5   : > { %v2077_v18 = vpop.f32.mrf.mxu1 }
 0x6b6   : > { %v2107_v54 = vmax.f32 %v2077_v18, 0.0 }
 0x6b8   : > { %v2118_v57 = vmul.f32 %v2107_v54, %v4468_v4 }
 0x6ba   : > { %v2103_v53 = vpop.f32.mrf.mxu3 }
 0x6bb   : > { %v2109_v55 = vmax.f32 %v2103_v53, 0.0  ;;  %v2090_v56 = vpop.f32.mrf.mxu2 }
 0x6bc   : > { %v2108_v58 = vmax.f32 %v2090_v56, 0.0 }
 0x6bd   : > { %4019 = vst [vmem:[%s4464_s10 + $0x2c] sm:$0xf] %v2109_v55  ;;  %v2120_v59 = vmul.f32 %v2109_v55, %v4459_v63  ;;  %v2079_v35 = vpop.f32.mrf.mxu1 }
 0x6be   : > { %v2112_v60 = vrot.slane %v2108_v58, 4  ;;  %v2119_v39 = vmul.f32 %v2108_v58, %v4470_v5 }
 0x6bf   : > { %v2122_v61 = vpack.c.bf16 %v2120_v59, %v2120_v59 }
 0x6c0   : > { %v2113_v0 = vsel %vm229_vm3, %v2107_v54, %v2112_v60  ;;  %v2121_v1 = vpack.c.bf16 %v2119_v39, %v2118_v57 }
 0x6c1   : > { %2126 = vst.sshfl [vmem:[#allocation1 + $0x8] sm:$0xff pattern:$0x75643120] %v2122_v61 }
 0x6c2   : > { %4018 = vst [vmem:[%s4464_s10 + $0x24] sm:$0xff] %v2113_v0  ;;  %v2105_v62 = vpop.f32.mrf.mxu3 }
 0x6c3   : > { %2124 = vst.sshfl [vmem:[#allocation1] sm:$0xff pattern:$0x75643120] %v2121_v1  ;;  %v2092_v3 = vpop.f32.mrf.mxu2 }
 0x6c4   : > { %2134 = vst [vmem:[#allocation1] ss:$2 sm:$0xff] %v4020_v2 }
 0x6ca   : > { %v2128_v7 = vld [vmem:[#allocation1 + $0x1] ss:$2 sm:$0xff] }
 0x6cb   : > { %2130 = vst [vmem:[#allocation2 + $0x2] sm:$0x3f] %v2128_v7  ;;  %v2137_v42 = vld.sshfl [vmem:[#allocation1 + $0x8] sm:$0xff pattern:$0x75643120] }
 0x6cc   : > { %2141 = vrot.lane.b32.xlu0 %v2137_v42, %s4329_s27  ;;  %v4882_v8 = vld.sshfl [vmem:[#allocation1] sm:$0xff pattern:$0x75643120] }
 0x6d2   : > { %v2152_v9 = vld [vmem:[#allocation2] sm:$0xff] }
 0x6d3   : > { %2155 = vst [vmem:[#allocation1 + $0x1] ss:$2 sm:$0xff] %v2152_v9  ;;  %v2305_v32 = vld [vmem:[#allocation2 + $0x2] sm:$0x3f] }
 0x6d4   : > { %v2417_v34 = vld [vmem:[#allocation2 + $0x2] sm:$0xff] }
 0x6da   : > { %v2158_v10 = vld.sshfl [vmem:[#allocation1 + $0x8] sm:$0xff pattern:$0x75643120]  ;;  %v4884_v12 = vld.sshfl [vmem:[#allocation1] sm:$0xff pattern:$0x75643120] }
 0x6db   : > { %2162 = vrot.lane.b32.xlu1 %v2158_v10, %s4329_s27  ;;  %2175 = vst [vmem:[#allocation1] ss:$2 sm:$0xff] %v4020_v2 }
 0x6e2   : > { %v2178_v14 = vld.sshfl [vmem:[#allocation1 + $0x8] sm:$0xff pattern:$0x75643120]  ;;  %v4887_v15 = vld.sshfl [vmem:[#allocation1] sm:$0xff pattern:$0x75643120] }
 0x6e3   : > { %2182 = vrot.lane.b32.xlu2 %v2178_v14, %s4328_s26  ;;  %2196 = vst [vmem:[#allocation1 + $0x1] ss:$2 sm:$0xff] %v2152_v9 }
 0x6ea   : > { %v4890_v16 = vld.sshfl [vmem:[#allocation1] sm:$0xff pattern:$0x75643120]  ;;  %v4892_v17 = vld.sshfl [vmem:[#allocation1 + $0x8] sm:$0xff pattern:$0x75643120] }
 0x6eb   : > { %2216 = vst [vmem:[#allocation1] ss:$2 sm:$0xff] %v4020_v2 }
 0x6f2   : > { %v2219_v19 = vld.sshfl [vmem:[#allocation1 + $0x8] sm:$0xff pattern:$0x75643120]  ;;  %v4894_v20 = vld.sshfl [vmem:[#allocation1] sm:$0xff pattern:$0x75643120] }
 0x6f3   : > { %2223 = vrot.lane.b32.xlu0 %v2219_v19, %s4323_s21  ;;  %2237 = vst [vmem:[#allocation1 + $0x1] ss:$2 sm:$0xff] %v2152_v9 }
 0x6fa   : > { %v2240_v21 = vld.sshfl [vmem:[#allocation1 + $0x8] sm:$0xff pattern:$0x75643120]  ;;  %v4897_v22 = vld.sshfl [vmem:[#allocation1] sm:$0xff pattern:$0x75643120] }
 0x6fb   : > { %2244 = vrot.lane.b32.xlu1 %v2240_v21, %s4323_s21  ;;  %2257 = vst [vmem:[#allocation1] ss:$2 sm:$0xff] %v4020_v2 }
 0x702   : > { %v2260_v23 = vld.sshfl [vmem:[#allocation1 + $0x8] sm:$0xff pattern:$0x75643120]  ;;  %v4900_v24 = vld.sshfl [vmem:[#allocation1] sm:$0xff pattern:$0x75643120] }
 0x703   : > { %2264 = vrot.lane.b32.xlu2 %v2260_v23, %s4324_s22  ;;  %2278 = vst [vmem:[#allocation1 + $0x1] ss:$2 sm:$0xff] %v2152_v9 }
 0x70a   : > { %v2281_v30 = vld.sshfl [vmem:[#allocation1 + $0x8] sm:$0xff pattern:$0x75643120]  ;;  %v4904_v31 = vld.sshfl [vmem:[#allocation1] sm:$0xff pattern:$0x75643120] }
 0x70b   : > { %2285 = vrot.lane.b32.xlu0 %v2281_v30, %s4324_s22  ;;  %2298 = vst [vmem:[#allocation1] ss:$2 sm:$0xff] %v4024_v26 }
 0x712   : > { %v2299_v11 = vld.sshfl [vmem:[#allocation1] sm:$0xff pattern:$0x75643120]  ;;  %v2300_v28 = vld.sshfl [vmem:[#allocation1 + $0x8] sm:$0xff pattern:$0x75643120] }
 0x713   : > { %2308 = vst [vmem:[#allocation1 + $0x1] ss:$2 sm:$0xff] %v2305_v32 }
 0x714   : > { %2303 = vst [vmem:[#allocation3 + $0x30] sm:$0x33] %v2299_v11 }
 0x715   : > { %2304 = vst [vmem:[#allocation3 + $0x38] sm:$0x3] %v2300_v28 }
 0x71a   : > { %v2309_v29 = vld.sshfl [vmem:[#allocation1] sm:$0xff pattern:$0x75643120]  ;;  %v2310_v33 = vld.sshfl [vmem:[#allocation1 + $0x8] sm:$0xff pattern:$0x75643120] }
 0x71b   : > { %2313 = vst [vmem:[#allocation3 + $0x30] sm:$0xcc] %v2309_v29 }
 0x71c   : > { %2314 = vst [vmem:[#allocation3 + $0x38] sm:$0xc] %v2310_v33 }
 0x71d   : > { %2317 = vst [vmem:[#allocation1] ss:$2 sm:$0xff] %v4025_v13 }
 0x724   : > { %v2320_v36 = vld.sshfl [vmem:[#allocation1 + $0x8] sm:$0xff pattern:$0x75643120]  ;;  %v2318_v37 = vld.sshfl [vmem:[#allocation1] sm:$0xff pattern:$0x75643120] }
 0x725   : > { %2324 = vrot.lane.b32.xlu0 %v2320_v36, %s4325_s23  ;;  %2322 = vrot.lane.b32.xlu1 %v2318_v37, %s4325_s23  ;;  %2338 = vst [vmem:[#allocation1 + $0x1] ss:$2 sm:$0xff] %v2417_v34 }
 0x72c   : > { %v2341_v38 = vld.sshfl [vmem:[#allocation1 + $0x8] sm:$0xff pattern:$0x75643120]  ;;  %v2339_v40 = vld.sshfl [vmem:[#allocation1] sm:$0xff pattern:$0x75643120] }
 0x72d   : > { %2345 = vrot.lane.b32.xlu1 %v2341_v38, %s4325_s23  ;;  %2343 = vrot.lane.b32.xlu2 %v2339_v40, %s4325_s23  ;;  %2358 = vst [vmem:[#allocation1] ss:$2 sm:$0xff] %v4025_v13 }
 0x734   : > { %v2361_v41 = vld.sshfl [vmem:[#allocation1 + $0x8] sm:$0xff pattern:$0x75643120]  ;;  %v2359_v44 = vld.sshfl [vmem:[#allocation1] sm:$0xff pattern:$0x75643120] }
 0x735   : > { %2365 = vrot.lane.b32.xlu2 %v2361_v41, %s4326_s24  ;;  %2379 = vst [vmem:[#allocation1 + $0x1] ss:$2 sm:$0xff] %v2417_v34 }
 0x73c   : > { %v2382_v43 = vld.sshfl [vmem:[#allocation1 + $0x8] sm:$0xff pattern:$0x75643120]  ;;  %v2380_v45 = vld.sshfl [vmem:[#allocation1] sm:$0xff pattern:$0x75643120] }
 0x73d   : > { %2363 = vrot.lane.b32.xlu2 %v2359_v44, %s4326_s24  ;;  %2386 = vrot.lane.b32.xlu0 %v2382_v43, %s4326_s24  ;;  %v4915_v46 = vpop.permute.xlu2 %2182  ;;  %2399 = vst [vmem:[#allocation1] ss:$2 sm:$0xff] %v4025_v13 }
 0x73e   : > { %v2185_v6 = vrot.slane %v4915_v46, 4  ;;  %v4918_v25 = vpop.permute.xlu0 %2141 }
 0x73f   : > { %v2144_v48 = vrot.slane %v4918_v25, 4 }
 0x740   : > { %v2188_v27 = vsel %vm254_vm5, %v4915_v46, %v2185_v6 }
 0x741   : > { %2192 = vst [vmem:[#allocation3 + $0x14] sm:$0x3] %v2188_v27  ;;  %v2147_v49 = vsel %vm231_vm7, %v4918_v25, %v2144_v48 }
 0x742   : > { %2151 = vst [vmem:[#allocation3 + $0x8] sm:$0x3] %v2147_v49 }
 0x744   : > { %v2402_v50 = vld.sshfl [vmem:[#allocation1 + $0x8] sm:$0xff pattern:$0x75643120]  ;;  %v2400_v51 = vld.sshfl [vmem:[#allocation1] sm:$0xff pattern:$0x75643120] }
 0x745   : > { %2384 = vrot.lane.b32.xlu0 %v2380_v45, %s4326_s24  ;;  %2406 = vrot.lane.b32.xlu1 %v2402_v50, %s4327_s25  ;;  %2420 = vst [vmem:[#allocation1 + $0x1] ss:$2 sm:$0xff] %v2417_v34 }
 0x74c   : > { %v2423_v52 = vld.sshfl [vmem:[#allocation1 + $0x8] sm:$0xff pattern:$0x75643120]  ;;  %v2421_v47 = vld.sshfl [vmem:[#allocation1] sm:$0xff pattern:$0x75643120] }
 0x74d   : > { %2404 = vrot.lane.b32.xlu1 %v2400_v51, %s4327_s25  ;;  %2427 = vrot.lane.b32.xlu2 %v2423_v52, %s4327_s25  ;;  %v4933_v18 = vpop.permute.xlu1 %2162  ;;  %2440 = vst [vmem:[#allocation1] ss:$2 sm:$0xff] %v4025_v13 }
 0x74e   : > { %v2165_v54 = vrot.slane %v4933_v18, 4 }
 0x750   : > { %v2168_v53 = vsel %vm231_vm7, %v4933_v18, %v2165_v54 }
 0x751   : > { %2172 = vst [vmem:[#allocation3 + $0x8] sm:$0xc] %v2168_v53 }
 0x754   : > { %v2443_v55 = vld.sshfl [vmem:[#allocation1 + $0x8] sm:$0xff pattern:$0x75643120]  ;;  %v2441_v56 = vld.sshfl [vmem:[#allocation1] sm:$0xff pattern:$0x75643120] }
 0x755   : > { %2425 = vrot.lane.b32.xlu2 %v2421_v47, %s4327_s25  ;;  %2447 = vrot.lane.b32.xlu1 %v2443_v55, %s4330_s28  ;;  %2461 = vst [vmem:[#allocation1 + $0x1] ss:$2 sm:$0xff] %v2417_v34 }
 0x756   : > { %2445 = vrot.lane.b32.xlu0 %v2441_v56, %s4330_s28 }
 0x75c   : > { %v2464_v57 = vld.sshfl [vmem:[#allocation1 + $0x8] sm:$0xff pattern:$0x75643120]  ;;  %v2462_v58 = vld.sshfl [vmem:[#allocation1] sm:$0xff pattern:$0x75643120] }
 0x75d   : > { %2468 = vrot.lane.b32.xlu2 %v2464_v57, %s4330_s28  ;;  %2466 = vrot.lane.b32.xlu1 %v2462_v58, %s4330_s28  ;;  %v4945_v59 = vpop.permute.xlu2 %2264 }
 0x75e   : > { %2203 = vrot.lane.b32.xlu0 %v4892_v17, %s4328_s26  ;;  %v2267_v35 = vrot.slane %v4945_v59, 4 }
 0x760   : > { %v2270_v60 = vsel %vm300_vm0, %v4945_v59, %v2267_v35 }
 0x761   : > { %2274 = vst [vmem:[#allocation3 + $0x2c] sm:$0x3] %v2270_v60 }
 0x765   : > { %2242 = vrot.lane.b32.xlu2 %v4897_v22, %s4323_s21  ;;  %2221 = vrot.lane.b32.xlu1 %v4894_v20, %s4323_s21  ;;  %v4958_v39 = vpop.permute.xlu0 %2223 }
 0x766   : > { %2262 = vrot.lane.b32.xlu0 %v4900_v24, %s4324_s22  ;;  %v2226_v61 = vrot.slane %v4958_v39, 4 }
 0x768   : > { %v2229_v0 = vsel %vm277_vm1, %v4958_v39, %v2226_v61 }
 0x769   : > { %2233 = vst [vmem:[#allocation3 + $0x20] sm:$0x3] %v2229_v0 }
 0x76d   : > { %2139 = vrot.lane.b32.xlu2 %v4882_v8, %s4329_s27  ;;  %2283 = vrot.lane.b32.xlu1 %v4904_v31, %s4324_s22  ;;  %v4971_v1 = vpop.permute.xlu1 %2244 }
 0x76e   : > { %2160 = vrot.lane.b32.xlu0 %v4884_v12, %s4329_s27  ;;  %v2247_v2 = vrot.slane %v4971_v1, 4 }
 0x770   : > { %v2250_v62 = vsel %vm277_vm1, %v4971_v1, %v2247_v2 }
 0x771   : > { %2254 = vst [vmem:[#allocation3 + $0x20] sm:$0xc] %v2250_v62 }
 0x775   : > { %2201 = vrot.lane.b32.xlu2 %v4890_v16, %s4328_s26  ;;  %2180 = vrot.lane.b32.xlu1 %v4887_v15, %s4328_s26 }
 0x77d   : > { %v4984_v3 = vpop.permute.xlu0 %2285 }
 0x77e   : > { %v2288_v7 = vrot.slane %v4984_v3, 4 }
 0x780   : > { %v2291_v42 = vsel %vm300_vm0, %v4984_v3, %v2288_v7 }
 0x781   : > { %2295 = vst [vmem:[#allocation3 + $0x2c] sm:$0xc] %v2291_v42 }
 0x787   : > { %v2344_v8 = vpop.permute.xlu2 %2343 }
 0x788   : > { %v2347_v31 = vrot.slane %v2344_v8, 4 }
 0x78f   : > { %v2366_v9 = vpop.permute.xlu2 %2365 }
 0x790   : > { %v2368_v10 = vrot.slane %v2366_v9, 4 }
 0x792   : > { %v2371_v12 = vsel %vm357_vm4, %v2366_v9, %v2368_v10 }
 0x793   : > { %2375 = vst [vmem:[#allocation3 + $0x50] sm:$0x3] %v2371_v12 }
 0x797   : > { %v2325_v14 = vpop.permute.xlu0 %2324  ;;  %v2323_v16 = vpop.permute.xlu1 %2322 }
 0x798   : > { %v2327_v17 = vrot.slane %v2325_v14, 4  ;;  %v2326_v15 = vrot.slane %v2323_v16, 4  ;;  %v2364_v19 = vpop.permute.xlu2 %2363 }
 0x799   : > { %v2367_v20 = vrot.slane %v2364_v19, 4 }
 0x79a   : > { %v2330_v21 = vsel %vm334_vm2, %v2325_v14, %v2327_v17  ;;  %v2328_v22 = vsel %vm229_vm3, %v2326_v15, %v2327_v17 }
 0x79b   : > { %2334 = vst [vmem:[#allocation3 + $0x44] sm:$0x3] %v2330_v21  ;;  %v2329_v23 = vsel %vm334_vm2, %v2323_v16, %v2328_v22  ;;  %v2369_v24 = vsel %vm229_vm3, %v2367_v20, %v2368_v10 }
 0x79c   : > { %2333 = vst [vmem:[#allocation3 + $0x3c] sm:$0x33] %v2329_v23  ;;  %v2370_v26 = vsel %vm357_vm4, %v2364_v19, %v2369_v24 }
 0x79d   : > { %2374 = vst [vmem:[#allocation3 + $0x48] sm:$0x33] %v2370_v26 }
 0x79f   : > { %v2346_v30 = vpop.permute.xlu1 %2345 }
 0x7a0   : > { %v2348_v32 = vrot.slane %v2346_v30, 4 }
 0x7a2   : > { %v2349_v11 = vsel %vm229_vm3, %v2347_v31, %v2348_v32  ;;  %v2351_v28 = vsel %vm334_vm2, %v2346_v30, %v2348_v32 }
 0x7a3   : > { %v2350_v13 = vsel %vm334_vm2, %v2344_v8, %v2349_v11  ;;  %2355 = vst [vmem:[#allocation3 + $0x44] sm:$0xc] %v2351_v28 }
 0x7a4   : > { %2354 = vst [vmem:[#allocation3 + $0x3c] sm:$0xcc] %v2350_v13 }
 0x7a7   : > { %v2428_v29 = vpop.permute.xlu2 %2427 }
 0x7a8   : > { %v2430_v33 = vrot.slane %v2428_v29, 4 }
 0x7aa   : > { %v2433_v34 = vsel %vm380_vm6, %v2428_v29, %v2430_v33 }
 0x7ab   : > { %2437 = vst [vmem:[#allocation3 + $0x5c] sm:$0xc] %v2433_v34  ;;  %v4058_v18 = vld [vmem:[#allocation3 + $0x3c] sm:$0xf0] }
 0x7af   : > { %v2387_v36 = vpop.permute.xlu0 %2386  ;;  %v2426_v37 = vpop.permute.xlu2 %2425 }
 0x7b0   : > { %v2389_v38 = vrot.slane %v2387_v36, 4  ;;  %v2429_v40 = vrot.slane %v2426_v37, 4 }
 0x7b2   : > { %v2392_v41 = vsel %vm357_vm4, %v2387_v36, %v2389_v38  ;;  %v2431_v44 = vsel %vm229_vm3, %v2429_v40, %v2430_v33 }
 0x7b3   : > { %2396 = vst [vmem:[#allocation3 + $0x50] sm:$0xc] %v2392_v41  ;;  %v2432_v43 = vsel %vm380_vm6, %v2426_v37, %v2431_v44 }
 0x7b4   : > { %2436 = vst [vmem:[#allocation3 + $0x54] sm:$0xcc] %v2432_v43 }
 0x7b7   : > { %v2385_v45 = vpop.permute.xlu0 %2384  ;;  %v2407_v27 = vpop.permute.xlu1 %2406 }
 0x7b8   : > { %v2388_v49 = vrot.slane %v2385_v45, 4  ;;  %v2409_v50 = vrot.slane %v2407_v27, 4  ;;  %v2469_v51 = vpop.permute.xlu2 %2468 }
 0x7b9   : > { %v2471_v52 = vrot.slane %v2469_v51, 4 }
 0x7ba   : > { %v2390_v47 = vsel %vm229_vm3, %v2388_v49, %v2389_v38  ;;  %v2412_v53 = vsel %vm380_vm6, %v2407_v27, %v2409_v50  ;;  %v4076_v44 = vld [vmem:[#allocation3 + $0x50] sm:$0xf] }
 0x7bb   : > { %v2391_v55 = vsel %vm357_vm4, %v2385_v45, %v2390_v47  ;;  %2416 = vst [vmem:[#allocation3 + $0x5c] sm:$0x3] %v2412_v53  ;;  %v2474_v56 = vsel %vm403_vm8, %v2469_v51, %v2471_v52 }
 0x7bc   : > { %2395 = vst [vmem:[#allocation3 + $0x48] sm:$0xcc] %v2391_v55 }
 0x7bd   : > { %2478 = vst [vmem:[#allocation3 + $0x68] sm:$0xc] %v2474_v56 }
 0x7bf   : > { %v2405_v57 = vpop.permute.xlu1 %2404 }
 0x7c0   : > { %v2408_v58 = vrot.slane %v2405_v57, 4  ;;  %v2243_v60 = vpop.permute.xlu2 %2242 }
 0x7c1   : > { %v2246_v0 = vrot.slane %v2243_v60, 4 }
 0x7c2   : > { %v2410_v62 = vsel %vm229_vm3, %v2408_v58, %v2409_v50  ;;  %v4270_v37 = vld [vmem:[#allocation3 + $0x58] sm:$0xf0]  ;;  %v4267_v50 = vld [vmem:[#allocation3 + $0x40] sm:$0xf0] }
 0x7c3   : > { %v2411_v42 = vsel %vm380_vm6, %v2405_v57, %v2410_v62  ;;  %v2248_v8 = vsel %vm229_vm3, %v2246_v0, %v2247_v2  ;;  %v4077_v45 = vor.u32 %v4270_v37, %v4076_v44  ;;  %v4052_v0 = vld [vmem:[#allocation3 + $0x20] sm:$0xf] }
 0x7c4   : > { %2415 = vst [vmem:[#allocation3 + $0x54] sm:$0x33] %v2411_v42  ;;  %v2249_v9 = vsel %vm277_vm1, %v2243_v60, %v2248_v8 }
 0x7c5   : > { %2253 = vst [vmem:[#allocation3 + $0x18] sm:$0xcc] %v2249_v9 }
 0x7c7   : > { %v2448_v10 = vpop.permute.xlu1 %2447 }
 0x7c8   : > { %v2450_v12 = vrot.slane %v2448_v10, 4  ;;  %v2446_v14 = vpop.permute.xlu0 %2445  ;;  %v2140_v16 = vpop.permute.xlu2 %2139 }
 0x7c9   : > { %v2449_v17 = vrot.slane %v2446_v14, 4  ;;  %v2143_v15 = vrot.slane %v2140_v16, 4 }
 0x7ca   : > { %v2453_v19 = vsel %vm403_vm8, %v2448_v10, %v2450_v12 }
 0x7cb   : > { %2457 = vst [vmem:[#allocation3 + $0x68] sm:$0x3] %v2453_v19  ;;  %v2451_v20 = vsel %vm229_vm3, %v2449_v17, %v2450_v12  ;;  %v2145_v1 = vsel %vm229_vm3, %v2143_v15, %v2144_v48  ;;  %v4269_v10 = vld [vmem:[#allocation3 + $0x50] sm:$0xf0]  ;;  %v4070_v12 = vld [vmem:[#allocation3 + $0x54] sm:$0xf0] }
 0x7cc   : > { %v2452_v2 = vsel %vm403_vm8, %v2446_v14, %v2451_v20  ;;  %v2146_v21 = vsel %vm231_vm7, %v2140_v16, %v2145_v1  ;;  %v4268_v15 = vld [vmem:[#allocation3 + $0x4c] sm:$0xf]  ;;  %v4040_v1 = vld [vmem:[#allocation3 + $0x8] sm:$0xf] }
 0x7cd   : > { %2456 = vst [vmem:[#allocation3 + $0x60] sm:$0x33] %v2452_v2  ;;  %v4073_v20 = vor.u32 %v4268_v15, %v4070_v12  ;;  %v4087_v15 = vld [vmem:[%s4371_s20 + $0x3e] sm:$0x3f] }
 0x7ce   : > { %2150 = vst [vmem:[#allocation3] sm:$0x33] %v2146_v21  ;;  %v4266_v21 = vld [vmem:[#allocation3 + $0x38] sm:$0xf0] }
 0x7cf   : > { %v2467_v22 = vpop.permute.xlu1 %2466 }
 0x7d0   : > { %v2204_v23 = vpop.permute.xlu0 %2203  ;;  %v2202_v24 = vpop.permute.xlu2 %2201  ;;  %v2470_v26 = vrot.slane %v2467_v22, 4 }
 0x7d1   : > { %v2206_v30 = vrot.slane %v2204_v23, 4  ;;  %v2205_v31 = vrot.slane %v2202_v24, 4 }
 0x7d2   : > { %v2472_v32 = vsel %vm229_vm3, %v2470_v26, %v2471_v52  ;;  %v2498_v11 = vld [vmem:[#allocation3 + $0x68] sm:$0xf]  ;;  %v4064_v52 = vld [vmem:[#allocation3 + $0x38] sm:$0xf] }
 0x7d3   : > { %v2209_v28 = vsel %vm254_vm5, %v2204_v23, %v2206_v30  ;;  %v2207_v25 = vsel %vm229_vm3, %v2205_v31, %v2206_v30  ;;  %v2473_v48 = vsel %vm403_vm8, %v2467_v22, %v2472_v32  ;;  %v2543_v13 = vunpack.c.l.b16 %v2498_v11  ;;  %v4056_v23 = vld [vmem:[#allocation3 + $0x30] sm:$0xf]  ;;  %v4029_v31 = vld [vmem:[%s5330_s2 + $0x10] sm:$0xf] }
 0x7d4   : > { %2213 = vst [vmem:[#allocation3 + $0x14] sm:$0xc] %v2209_v28  ;;  %v2208_v29 = vsel %vm254_vm5, %v2202_v24, %v2207_v25  ;;  %v4065_v53 = vor.u32 %v4267_v50, %v4064_v52  ;;  %v4265_v24 = vld [vmem:[#allocation3 + $0x34] sm:$0xf]  ;;  %v4057_v26 = vor.u32 %v4266_v21, %v4056_v23 }
 0x7d5   : > { %2212 = vst [vmem:[#allocation3 + $0xc] sm:$0xcc] %v2208_v29  ;;  %v2558_v33 = vpack.c.b16 %v2543_v13, %v2543_v13  ;;  %v4061_v30 = vor.u32 %v4265_v24, %v4058_v18  ;;  %v4088_v18 = vld [vmem:[%s4371_s20 + $0x3e] sm:$0xff] }
 0x7d6   : > { %2477 = vst [vmem:[#allocation3 + $0x60] sm:$0xcc] %v2473_v48 }
 0x7d7   : > { %v2222_v34 = vpop.permute.xlu1 %2221  ;;  %v2581_v36 = vsel %vm229_vm3, %v2558_v33, 0 }
 0x7d8   : > { %v2263_v38 = vpop.permute.xlu0 %2262  ;;  %v2225_v40 = vrot.slane %v2222_v34, 4  ;;  %2612 = vmatpush.bf16.msrb.mxu2 %v2581_v36 }
 0x7d9   : > { %v2266_v41 = vrot.slane %v2263_v38, 4 }
 0x7da   : > { %v2227_v43 = vsel %vm229_vm3, %v2225_v40, %v2226_v61  ;;  %v4264_v61 = vld [vmem:[#allocation3 + $0x28] sm:$0xf0] }
 0x7db   : > { %v2268_v27 = vsel %vm229_vm3, %v2266_v41, %v2267_v35  ;;  %v2228_v49 = vsel %vm277_vm1, %v2222_v34, %v2227_v43  ;;  %v4053_v9 = vor.u32 %v4264_v61, %v4052_v0  ;;  %v4261_v17 = vld [vmem:[#allocation3 + $0x10] sm:$0xf0] }
 0x7dc   : > { %v2269_v51 = vsel %vm300_vm0, %v2263_v38, %v2268_v27  ;;  %2232 = vst [vmem:[#allocation3 + $0x18] sm:$0x33] %v2228_v49  ;;  %2613 = vmatpush.bf16.msrb.mxu2 %v4077_v45  ;;  %v4041_v2 = vor.u32 %v4261_v17, %v4040_v1 }
 0x7dd   : > { %2273 = vst [vmem:[#allocation3 + $0x24] sm:$0x33] %v2269_v51  ;;  %v2497_v47 = vld [vmem:[#allocation3 + $0x60] sm:$0xff] }
 0x7de   : > { %v2541_v55 = vunpack.c.l.b16 %v2497_v47  ;;  %v2542_v39 = vunpack.c.h.b16 %v2497_v47 }
 0x7df   : > { %v2284_v56 = vpop.permute.xlu1 %2283 }
 0x7e0   : > { %v2161_v57 = vpop.permute.xlu0 %2160  ;;  %v2287_v58 = vrot.slane %v2284_v56, 4  ;;  %2614 = vmatpush.bf16.msrb.mxu2 %v4065_v53  ;;  %v2556_v59 = vpack.c.b16 %v2541_v55, %v2541_v55  ;;  %v2557_v35 = vpack.c.b16 %v2542_v39, %v2542_v39 }
 0x7e1   : > { %v2164_v60 = vrot.slane %v2161_v57, 4 }
 0x7e2   : > { %v2289_v62 = vsel %vm229_vm3, %v2287_v58, %v2288_v7  ;;  %v2575_v42 = vsel %vm229_vm3, %v2556_v59, 0  ;;  %v2578_v8 = vsel %vm229_vm3, %v2557_v35, 0  ;;  %v4068_v7 = vld [vmem:[#allocation3 + $0x48] sm:$0xf] }
 0x7e3   : > { %v2166_v14 = vsel %vm229_vm3, %v2164_v60, %v2165_v54  ;;  %v2290_v16 = vsel %vm300_vm0, %v2284_v56, %v2289_v62  ;;  %2586 = vmatpush.bf16.msrb.mxu0 %v2575_v42  ;;  %2599 = vmatpush.bf16.msrb.mxu1 %v2578_v8  ;;  %v4069_v19 = vor.u32 %v4269_v10, %v4068_v7  ;;  %v4044_v11 = vld [vmem:[#allocation3 + $0x18] sm:$0xf]  ;;  %v4262_v48 = vld [vmem:[#allocation3 + $0x1c] sm:$0xf]  ;;  %v4083_v56 = vld [vmem:[%s4371_s20 + $0x3c] sm:$0xff] }
 0x7e4   : > { %v2167_v3 = vsel %vm231_vm7, %v2161_v57, %v2166_v14  ;;  %2294 = vst [vmem:[#allocation3 + $0x24] sm:$0xcc] %v2290_v16  ;;  %2615 = vmatpush.bf16.msrb.mxu2 %v4053_v9 }
 0x7e5   : > { %2171 = vst [vmem:[#allocation3] sm:$0xcc] %v2167_v3 }
 0x7e7   : > { %2587 = vmatpush.bf16.msrb.mxu0 %v4069_v19  ;;  %2600 = vmatpush.bf16.msrb.mxu1 %v4073_v20  ;;  %v2181_v54 = vpop.permute.xlu1 %2180 }
 0x7e8   : > { %v2184_v22 = vrot.slane %v2181_v54, 4  ;;  %2616 = vmatpush.bf16.msrb.mxu2 %v4041_v2 }
 0x7ea   : > { %v2186_v32 = vsel %vm229_vm3, %v2184_v22, %v2185_v6 }
 0x7eb   : > { %v2187_v28 = vsel %vm254_vm5, %v2181_v54, %v2186_v32  ;;  %2588 = vmatpush.bf16.msrb.mxu0 %v4057_v26  ;;  %2601 = vmatpush.bf16.msrb.mxu1 %v4061_v30  ;;  %v4263_v25 = vld [vmem:[#allocation3 + $0x20] sm:$0xf0]  ;;  %v4046_v13 = vld [vmem:[#allocation3 + $0x24] sm:$0xf0] }
 0x7ec   : > { %2191 = vst [vmem:[#allocation3 + $0xc] sm:$0x33] %v2187_v28  ;;  %4080 = vmatmul.msk.bf16.vlgmr.msrb.gmra.mxu2 %vm503_vm9, %v4029_v31  ;;  %v4045_v29 = vor.u32 %v4263_v25, %v4044_v11  ;;  %v4049_v33 = vor.u32 %v4262_v48, %v4046_v13  ;;  %v4032_v34 = vld [vmem:[#allocation3] sm:$0xf]  ;;  %v4259_v36 = vld [vmem:[#allocation3 + $0x4] sm:$0xf] }
 0x7ef   : > { %2589 = vmatpush.bf16.msrb.mxu0 %v4045_v29  ;;  %2602 = vmatpush.bf16.msrb.mxu1 %v4049_v33 }
 0x7f3   : > { %v4260_v46 = vld [vmem:[#allocation3 + $0x8] sm:$0xf0]  ;;  %v4034_v6 = vld [vmem:[#allocation3 + $0xc] sm:$0xf0] }
 0x7f4   : > { %v4033_v37 = vor.u32 %v4260_v46, %v4032_v34  ;;  %v4037_v38 = vor.u32 %v4259_v36, %v4034_v6 }
 0x7f6   : > { %2590 = vmatpush.bf16.msrb.mxu0 %v4033_v37  ;;  %2603 = vmatpush.bf16.msrb.mxu1 %v4037_v38 }
 0x7f9   : > { %4078 = vmatmul.msk.bf16.vlgmr.msrb.gmra.mxu0 %vm503_vm9, %v4029_v31  ;;  %4079 = vmatmul.msk.bf16.vlgmr.msrb.gmra.mxu1 %vm503_vm9, %v4029_v31 }
 0x86f   : > { %v2618_v40 = vpop.f32.mrf.mxu2 }
 0x870   : > { %v2624_v41 = vmax.f32 %v2618_v40, 0.0 }
 0x872   : > { %4082 = vst [vmem:[%s4464_s10 + $0x38] sm:$0xf] %v2624_v41  ;;  %v2635_v44 = vmul.f32 %v2624_v41, %v4459_v63 }
 0x874   : > { %v2637_v43 = vpack.c.bf16 %v2635_v44, %v2635_v44 }
 0x876   : > { %2641 = vst.sshfl [vmem:[#allocation1 + $0x8] sm:$0xff pattern:$0x75643120] %v2637_v43  ;;  %v2592_v45 = vpop.f32.mrf.mxu0  ;;  %v2605_v27 = vpop.f32.mrf.mxu1 }
 0x877   : > { %v2622_v49 = vmax.f32 %v2592_v45, 0.0  ;;  %v2623_v50 = vmax.f32 %v2605_v27, 0.0  ;;  %v2620_v51 = vpop.f32.mrf.mxu2 }
 0x879   : > { %v2633_v52 = vmul.f32 %v2622_v49, %v4468_v4  ;;  %v2627_v47 = vrot.slane %v2623_v50, 4  ;;  %v2634_v53 = vmul.f32 %v2623_v50, %v4470_v5 }
 0x87b   : > { %v2628_v55 = vsel %vm229_vm3, %v2622_v49, %v2627_v47  ;;  %v2636_v39 = vpack.c.bf16 %v2634_v53, %v2633_v52 }
 0x87c   : > { %4081 = vst [vmem:[%s4464_s10 + $0x30] sm:$0xff] %v2628_v55 }
 0x87d   : > { %2639 = vst.sshfl [vmem:[#allocation1] sm:$0xff pattern:$0x75643120] %v2636_v39 }
 0x87e   : > { %v2594_v61 = vpop.f32.mrf.mxu0  ;;  %v2607_v57 = vpop.f32.mrf.mxu1  ;;  %2649 = vst [vmem:[#allocation1] ss:$2 sm:$0xff] %v4083_v56 }
 0x884   : > { %v2643_v58 = vld [vmem:[#allocation1 + $0x1] ss:$2 sm:$0xff] }
 0x885   : > { %2645 = vst [vmem:[#allocation2 + $0x2] sm:$0x3f] %v2643_v58  ;;  %v5062_v59 = vld.sshfl [vmem:[#allocation1] sm:$0xff pattern:$0x75643120] }
 0x886   : > { %v5064_v35 = vld.sshfl [vmem:[#allocation1 + $0x8] sm:$0xff pattern:$0x75643120] }
 0x88c   : > { %v2667_v60 = vld [vmem:[#allocation2] sm:$0xff] }
 0x88d   : > { %2670 = vst [vmem:[#allocation1 + $0x1] ss:$2 sm:$0xff] %v2667_v60  ;;  %v2820_v1 = vld [vmem:[#allocation2 + $0x2] sm:$0x3f] }
 0x88e   : > { %v2850_v23 = vld [vmem:[#allocation2 + $0x2] sm:$0xff] }
 0x894   : > { %v5066_v0 = vld.sshfl [vmem:[#allocation1] sm:$0xff pattern:$0x75643120]  ;;  %v5068_v62 = vld.sshfl [vmem:[#allocation1 + $0x8] sm:$0xff pattern:$0x75643120] }
 0x895   : > { %2690 = vst [vmem:[#allocation1] ss:$2 sm:$0xff] %v4083_v56 }
 0x89c   : > { %v5070_v42 = vld.sshfl [vmem:[#allocation1] sm:$0xff pattern:$0x75643120]  ;;  %v5072_v8 = vld.sshfl [vmem:[#allocation1 + $0x8] sm:$0xff pattern:$0x75643120] }
 0x89d   : > { %2711 = vst [vmem:[#allocation1 + $0x1] ss:$2 sm:$0xff] %v2667_v60 }
 0x8a4   : > { %v5074_v9 = vld.sshfl [vmem:[#allocation1] sm:$0xff pattern:$0x75643120]  ;;  %v5076_v10 = vld.sshfl [vmem:[#allocation1 + $0x8] sm:$0xff pattern:$0x75643120] }
 0x8a5   : > { %2731 = vst [vmem:[#allocation1] ss:$2 sm:$0xff] %v4083_v56 }
 0x8ac   : > { %v2734_v12 = vld.sshfl [vmem:[#allocation1 + $0x8] sm:$0xff pattern:$0x75643120]  ;;  %v2732_v14 = vld.sshfl [vmem:[#allocation1] sm:$0xff pattern:$0x75643120] }
 0x8ad   : > { %2738 = vrot.lane.b32.xlu2 %v2734_v12, %s4323_s21  ;;  %2736 = vrot.lane.b32.xlu1 %v2732_v14, %s4323_s21  ;;  %2752 = vst [vmem:[#allocation1 + $0x1] ss:$2 sm:$0xff] %v2667_v60 }
 0x8b4   : > { %v2755_v16 = vld.sshfl [vmem:[#allocation1 + $0x8] sm:$0xff pattern:$0x75643120]  ;;  %v2753_v17 = vld.sshfl [vmem:[#allocation1] sm:$0xff pattern:$0x75643120] }
 0x8b5   : > { %2759 = vrot.lane.b32.xlu1 %v2755_v16, %s4323_s21  ;;  %2757 = vrot.lane.b32.xlu0 %v2753_v17, %s4323_s21  ;;  %2772 = vst [vmem:[#allocation1] ss:$2 sm:$0xff] %v4083_v56 }
 0x8bc   : > { %v2775_v3 = vld.sshfl [vmem:[#allocation1 + $0x8] sm:$0xff pattern:$0x75643120]  ;;  %v2773_v7 = vld.sshfl [vmem:[#allocation1] sm:$0xff pattern:$0x75643120] }
 0x8bd   : > { %2779 = vrot.lane.b32.xlu0 %v2775_v3, %s4324_s22  ;;  %2777 = vrot.lane.b32.xlu2 %v2773_v7, %s4324_s22  ;;  %2793 = vst [vmem:[#allocation1 + $0x1] ss:$2 sm:$0xff] %v2667_v60 }
 0x8c4   : > { %v2794_v19 = vld.sshfl [vmem:[#allocation1] sm:$0xff pattern:$0x75643120]  ;;  %v2796_v20 = vld.sshfl [vmem:[#allocation1 + $0x8] sm:$0xff pattern:$0x75643120] }
 0x8c5   : > { %2798 = vrot.lane.b32.xlu1 %v2794_v19, %s4324_s22  ;;  %2813 = vst [vmem:[#allocation1] ss:$2 sm:$0xff] %v4087_v15 }
 0x8cc   : > { %v2814_v2 = vld.sshfl [vmem:[#allocation1] sm:$0xff pattern:$0x75643120]  ;;  %v2815_v21 = vld.sshfl [vmem:[#allocation1 + $0x8] sm:$0xff pattern:$0x75643120] }
 0x8cd   : > { %2823 = vst [vmem:[#allocation1 + $0x1] ss:$2 sm:$0xff] %v2820_v1 }
 0x8ce   : > { %2818 = vst [vmem:[#allocation3 + $0x30] sm:$0x33] %v2814_v2 }
 0x8cf   : > { %2819 = vst [vmem:[#allocation3 + $0x38] sm:$0x3] %v2815_v21 }
 0x8d4   : > { %v2824_v54 = vld.sshfl [vmem:[#allocation1] sm:$0xff pattern:$0x75643120]  ;;  %v2825_v22 = vld.sshfl [vmem:[#allocation1 + $0x8] sm:$0xff pattern:$0x75643120] }
 0x8d5   : > { %2828 = vst [vmem:[#allocation3 + $0x30] sm:$0xcc] %v2824_v54 }
 0x8d6   : > { %2829 = vst [vmem:[#allocation3 + $0x38] sm:$0xc] %v2825_v22 }
 0x8d7   : > { %2832 = vst [vmem:[#allocation1] ss:$2 sm:$0xff] %v4088_v18 }
 0x8de   : > { %v2835_v24 = vld.sshfl [vmem:[#allocation1 + $0x8] sm:$0xff pattern:$0x75643120]  ;;  %v2833_v26 = vld.sshfl [vmem:[#allocation1] sm:$0xff pattern:$0x75643120] }
 0x8df   : > { %2839 = vrot.lane.b32.xlu1 %v2835_v24, %s4325_s23  ;;  %2837 = vrot.lane.b32.xlu0 %v2833_v26, %s4325_s23  ;;  %2853 = vst [vmem:[#allocation1 + $0x1] ss:$2 sm:$0xff] %v2850_v23 }
 0x8e6   : > { %v2856_v30 = vld.sshfl [vmem:[#allocation1 + $0x8] sm:$0xff pattern:$0x75643120]  ;;  %v2854_v31 = vld.sshfl [vmem:[#allocation1] sm:$0xff pattern:$0x75643120] }
 0x8e7   : > { %2860 = vrot.lane.b32.xlu0 %v2856_v30, %s4325_s23  ;;  %2858 = vrot.lane.b32.xlu2 %v2854_v31, %s4325_s23  ;;  %2873 = vst [vmem:[#allocation1] ss:$2 sm:$0xff] %v4088_v18 }
 0x8ee   : > { %v2876_v32 = vld.sshfl [vmem:[#allocation1 + $0x8] sm:$0xff pattern:$0x75643120]  ;;  %v2874_v11 = vld.sshfl [vmem:[#allocation1] sm:$0xff pattern:$0x75643120] }
 0x8ef   : > { %2880 = vrot.lane.b32.xlu2 %v2876_v32, %s4326_s24  ;;  %2878 = vrot.lane.b32.xlu1 %v2874_v11, %s4326_s24  ;;  %2894 = vst [vmem:[#allocation1 + $0x1] ss:$2 sm:$0xff] %v2850_v23 }
 0x8f6   : > { %v2897_v28 = vld.sshfl [vmem:[#allocation1 + $0x8] sm:$0xff pattern:$0x75643120]  ;;  %v2895_v25 = vld.sshfl [vmem:[#allocation1] sm:$0xff pattern:$0x75643120] }
 0x8f7   : > { %2901 = vrot.lane.b32.xlu1 %v2897_v28, %s4326_s24  ;;  %2899 = vrot.lane.b32.xlu0 %v2895_v25, %s4326_s24  ;;  %2914 = vst [vmem:[#allocation1] ss:$2 sm:$0xff] %v4088_v18 }
 0x8fe   : > { %v2917_v48 = vld.sshfl [vmem:[#allocation1 + $0x8] sm:$0xff pattern:$0x75643120]  ;;  %v2915_v13 = vld.sshfl [vmem:[#allocation1] sm:$0xff pattern:$0x75643120] }
 0x8ff   : > { %2921 = vrot.lane.b32.xlu0 %v2917_v48, %s4327_s25  ;;  %2919 = vrot.lane.b32.xlu2 %v2915_v13, %s4327_s25  ;;  %2935 = vst [vmem:[#allocation1 + $0x1] ss:$2 sm:$0xff] %v2850_v23 }
 0x906   : > { %v2938_v29 = vld.sshfl [vmem:[#allocation1 + $0x8] sm:$0xff pattern:$0x75643120]  ;;  %v2936_v33 = vld.sshfl [vmem:[#allocation1] sm:$0xff pattern:$0x75643120] }
 0x907   : > { %2942 = vrot.lane.b32.xlu2 %v2938_v29, %s4327_s25  ;;  %2940 = vrot.lane.b32.xlu1 %v2936_v33, %s4327_s25  ;;  %v2739_v34 = vpop.permute.xlu2 %2738  ;;  %2955 = vst [vmem:[#allocation1] ss:$2 sm:$0xff] %v4088_v18 }
 0x908   : > { %v2741_v46 = vrot.slane %v2739_v34, 4 }
 0x90a   : > { %v2744_v36 = vsel %vm277_vm1, %v2739_v34, %v2741_v46 }
 0x90b   : > { %2748 = vst [vmem:[#allocation3 + $0x20] sm:$0x3] %v2744_v36 }
 0x90e   : > { %v2958_v6 = vld.sshfl [vmem:[#allocation1 + $0x8] sm:$0xff pattern:$0x75643120]  ;;  %v2956_v37 = vld.sshfl [vmem:[#allocation1] sm:$0xff pattern:$0x75643120] }
 0x90f   : > { %2962 = vrot.lane.b32.xlu1 %v2958_v6, %s4330_s28  ;;  %2960 = vrot.lane.b32.xlu0 %v2956_v37, %s4330_s28  ;;  %2976 = vst [vmem:[#allocation1 + $0x1] ss:$2 sm:$0xff] %v2850_v23 }
 0x916   : > { %v2979_v38 = vld.sshfl [vmem:[#allocation1 + $0x8] sm:$0xff pattern:$0x75643120]  ;;  %v2977_v40 = vld.sshfl [vmem:[#allocation1] sm:$0xff pattern:$0x75643120] }
 0x917   : > { %2656 = vrot.lane.b32.xlu1 %v5064_v35, %s4329_s27  ;;  %2983 = vrot.lane.b32.xlu0 %v2979_v38, %s4330_s28  ;;  %v2778_v55 = vpop.permute.xlu2 %2777 }
 0x918   : > { %2981 = vrot.lane.b32.xlu2 %v2977_v40, %s4330_s28  ;;  %v2781_v56 = vrot.slane %v2778_v55, 4 }
 0x91f   : > { %2695 = vrot.lane.b32.xlu1 %v5070_v42, %s4328_s26  ;;  %2654 = vrot.lane.b32.xlu0 %v5062_v59, %s4329_s27  ;;  %v2737_v41 = vpop.permute.xlu1 %2736 }
 0x920   : > { %2800 = vrot.lane.b32.xlu2 %v2796_v20, %s4324_s22  ;;  %v2740_v44 = vrot.slane %v2737_v41, 4 }
 0x922   : > { %v2742_v43 = vsel %vm229_vm3, %v2740_v44, %v2741_v46 }
 0x923   : > { %v2743_v45 = vsel %vm277_vm1, %v2737_v41, %v2742_v43 }
 0x924   : > { %2747 = vst [vmem:[#allocation3 + $0x18] sm:$0x33] %v2743_v45 }
 0x927   : > { %2718 = vrot.lane.b32.xlu1 %v5076_v10, %s4328_s26  ;;  %2677 = vrot.lane.b32.xlu0 %v5068_v62, %s4329_s27  ;;  %v2760_v27 = vpop.permute.xlu1 %2759  ;;  %v2758_v49 = vpop.permute.xlu0 %2757 }
 0x928   : > { %2675 = vrot.lane.b32.xlu2 %v5066_v0, %s4329_s27  ;;  %v2762_v50 = vrot.slane %v2760_v27, 4  ;;  %v2761_v51 = vrot.slane %v2758_v49, 4 }
 0x92a   : > { %v2765_v52 = vsel %vm277_vm1, %v2760_v27, %v2762_v50  ;;  %v2763_v47 = vsel %vm229_vm3, %v2761_v51, %v2762_v50 }
 0x92b   : > { %2769 = vst [vmem:[#allocation3 + $0x20] sm:$0xc] %v2765_v52  ;;  %v2764_v53 = vsel %vm277_vm1, %v2758_v49, %v2763_v47 }
 0x92c   : > { %2768 = vst [vmem:[#allocation3 + $0x18] sm:$0xcc] %v2764_v53 }
 0x92f   : > { %2716 = vrot.lane.b32.xlu0 %v5074_v9, %s4328_s26  ;;  %v2780_v39 = vpop.permute.xlu0 %2779 }
 0x930   : > { %2697 = vrot.lane.b32.xlu2 %v5072_v8, %s4328_s26  ;;  %v2782_v61 = vrot.slane %v2780_v39, 4 }
 0x932   : > { %v2783_v57 = vsel %vm229_vm3, %v2781_v56, %v2782_v61  ;;  %v2785_v58 = vsel %vm300_vm0, %v2780_v39, %v2782_v61 }
 0x933   : > { %v2784_v59 = vsel %vm300_vm0, %v2778_v55, %v2783_v57  ;;  %2789 = vst [vmem:[#allocation3 + $0x2c] sm:$0x3] %v2785_v58 }
 0x934   : > { %2788 = vst [vmem:[#allocation3 + $0x24] sm:$0x33] %v2784_v59 }
 0x937   : > { %v2799_v60 = vpop.permute.xlu1 %2798 }
 0x938   : > { %v2802_v41 = vrot.slane %v2799_v60, 4 }
 0x941   : > { %v2859_v35 = vpop.permute.xlu2 %2858 }
 0x942   : > { %v2862_v15 = vrot.slane %v2859_v35, 4 }
 0x949   : > { %v2881_v0 = vpop.permute.xlu2 %2880 }
 0x94a   : > { %v2883_v62 = vrot.slane %v2881_v0, 4 }
 0x94c   : > { %v2886_v42 = vsel %vm357_vm4, %v2881_v0, %v2883_v62 }
 0x94d   : > { %2890 = vst [vmem:[#allocation3 + $0x50] sm:$0x3] %v2886_v42 }
 0x951   : > { %v2840_v9 = vpop.permute.xlu1 %2839  ;;  %v2838_v10 = vpop.permute.xlu0 %2837 }
 0x952   : > { %v2842_v12 = vrot.slane %v2840_v9, 4  ;;  %v2841_v8 = vrot.slane %v2838_v10, 4 }
 0x954   : > { %v2845_v14 = vsel %vm334_vm2, %v2840_v9, %v2842_v12  ;;  %v2843_v16 = vsel %vm229_vm3, %v2841_v8, %v2842_v12 }
 0x955   : > { %2849 = vst [vmem:[#allocation3 + $0x44] sm:$0x3] %v2845_v14  ;;  %v2844_v17 = vsel %vm334_vm2, %v2838_v10, %v2843_v16 }
 0x956   : > { %2848 = vst [vmem:[#allocation3 + $0x3c] sm:$0x33] %v2844_v17 }
 0x959   : > { %v2861_v3 = vpop.permute.xlu0 %2860  ;;  %v2920_v7 = vpop.permute.xlu2 %2919 }
 0x95a   : > { %v2863_v19 = vrot.slane %v2861_v3, 4  ;;  %v2923_v29 = vrot.slane %v2920_v7, 4 }
 0x95c   : > { %v2864_v20 = vsel %vm229_vm3, %v2862_v15, %v2863_v19  ;;  %v2866_v1 = vsel %vm334_vm2, %v2861_v3, %v2863_v19 }
 0x95d   : > { %v2865_v2 = vsel %vm334_vm2, %v2859_v35, %v2864_v20  ;;  %2870 = vst [vmem:[#allocation3 + $0x44] sm:$0xc] %v2866_v1 }
 0x95e   : > { %2869 = vst [vmem:[#allocation3 + $0x3c] sm:$0xcc] %v2865_v2 }
 0x961   : > { %v2879_v21 = vpop.permute.xlu1 %2878  ;;  %v2943_v18 = vpop.permute.xlu2 %2942 }
 0x962   : > { %v2882_v54 = vrot.slane %v2879_v21, 4  ;;  %v2945_v22 = vrot.slane %v2943_v18, 4 }
 0x964   : > { %v2884_v23 = vsel %vm229_vm3, %v2882_v54, %v2883_v62  ;;  %v2948_v24 = vsel %vm380_vm6, %v2943_v18, %v2945_v22 }
 0x965   : > { %v2885_v26 = vsel %vm357_vm4, %v2879_v21, %v2884_v23  ;;  %2952 = vst [vmem:[#allocation3 + $0x5c] sm:$0xc] %v2948_v24 }
 0x966   : > { %2889 = vst [vmem:[#allocation3 + $0x48] sm:$0x33] %v2885_v26 }
 0x969   : > { %v2902_v30 = vpop.permute.xlu1 %2901  ;;  %v2900_v31 = vpop.permute.xlu0 %2899 }
 0x96a   : > { %v2904_v32 = vrot.slane %v2902_v30, 4  ;;  %v2903_v11 = vrot.slane %v2900_v31, 4 }
 0x96c   : > { %v2907_v28 = vsel %vm357_vm4, %v2902_v30, %v2904_v32  ;;  %v2905_v25 = vsel %vm229_vm3, %v2903_v11, %v2904_v32 }
 0x96d   : > { %2911 = vst [vmem:[#allocation3 + $0x50] sm:$0xc] %v2907_v28  ;;  %v2906_v48 = vsel %vm357_vm4, %v2900_v31, %v2905_v25 }
 0x96e   : > { %2910 = vst [vmem:[#allocation3 + $0x48] sm:$0xcc] %v2906_v48 }
 0x971   : > { %v2922_v13 = vpop.permute.xlu0 %2921 }
 0x972   : > { %v2924_v33 = vrot.slane %v2922_v13, 4  ;;  %v2982_v34 = vpop.permute.xlu2 %2981 }
 0x973   : > { %v2985_v59 = vrot.slane %v2982_v34, 4 }
 0x974   : > { %v2925_v46 = vsel %vm229_vm3, %v2923_v29, %v2924_v33  ;;  %v2927_v36 = vsel %vm380_vm6, %v2922_v13, %v2924_v33 }
 0x975   : > { %v2926_v6 = vsel %vm380_vm6, %v2920_v7, %v2925_v46  ;;  %2931 = vst [vmem:[#allocation3 + $0x5c] sm:$0x3] %v2927_v36 }
 0x976   : > { %2930 = vst [vmem:[#allocation3 + $0x54] sm:$0x33] %v2926_v6  ;;  %v4131_v6 = vld [vmem:[#allocation3 + $0x48] sm:$0xf] }
 0x979   : > { %v2941_v37 = vpop.permute.xlu1 %2940 }
 0x97a   : > { %v2944_v38 = vrot.slane %v2941_v37, 4  ;;  %v2801_v40 = vpop.permute.xlu2 %2800 }
 0x97b   : > { %v2803_v44 = vrot.slane %v2801_v40, 4 }
 0x97c   : > { %v2946_v43 = vsel %vm229_vm3, %v2944_v38, %v2945_v22  ;;  %v4282_v33 = vld [vmem:[#allocation3 + $0x58] sm:$0xf0] }
 0x97d   : > { %v2947_v45 = vsel %vm380_vm6, %v2941_v37, %v2946_v43  ;;  %v2804_v27 = vsel %vm229_vm3, %v2802_v41, %v2803_v44  ;;  %v2806_v49 = vsel %vm300_vm0, %v2801_v40, %v2803_v44  ;;  %v4280_v37 = vld [vmem:[#allocation3 + $0x4c] sm:$0xf]  ;;  %v4139_v40 = vld [vmem:[#allocation3 + $0x50] sm:$0xf] }
 0x97e   : > { %2951 = vst [vmem:[#allocation3 + $0x54] sm:$0xcc] %v2947_v45  ;;  %v2805_v50 = vsel %vm300_vm0, %v2799_v60, %v2804_v27  ;;  %v4140_v43 = vor.u32 %v4282_v33, %v4139_v40  ;;  %v4278_v45 = vld [vmem:[#allocation3 + $0x38] sm:$0xf0]  ;;  %v4121_v27 = vld [vmem:[#allocation3 + $0x3c] sm:$0xf0] }
 0x97f   : > { %2810 = vst [vmem:[#allocation3 + $0x2c] sm:$0xc] %v2806_v49  ;;  %v4279_v49 = vld [vmem:[#allocation3 + $0x40] sm:$0xf0] }
 0x980   : > { %2809 = vst [vmem:[#allocation3 + $0x24] sm:$0xcc] %v2805_v50  ;;  %v4119_v50 = vld [vmem:[#allocation3 + $0x30] sm:$0xf] }
 0x981   : > { %v2963_v51 = vpop.permute.xlu1 %2962  ;;  %v2961_v52 = vpop.permute.xlu0 %2960 }
 0x982   : > { %v2965_v47 = vrot.slane %v2963_v51, 4  ;;  %v2964_v53 = vrot.slane %v2961_v52, 4  ;;  %v2676_v55 = vpop.permute.xlu2 %2675 }
 0x983   : > { %v2679_v24 = vrot.slane %v2676_v55, 4 }
 0x984   : > { %v2968_v39 = vsel %vm403_vm8, %v2963_v51, %v2965_v47  ;;  %v2966_v56 = vsel %vm229_vm3, %v2964_v53, %v2965_v47  ;;  %v4277_v51 = vld [vmem:[#allocation3 + $0x34] sm:$0xf]  ;;  %v4127_v47 = vld [vmem:[#allocation3 + $0x38] sm:$0xf]  ;;  %v4120_v53 = vor.u32 %v4278_v45, %v4119_v50 }
 0x985   : > { %2972 = vst [vmem:[#allocation3 + $0x68] sm:$0x3] %v2968_v39  ;;  %v2967_v61 = vsel %vm403_vm8, %v2961_v52, %v2966_v56  ;;  %v4281_v32 = vld [vmem:[#allocation3 + $0x50] sm:$0xf0]  ;;  %v4133_v13 = vld [vmem:[#allocation3 + $0x54] sm:$0xf0]  ;;  %v4124_v39 = vor.u32 %v4277_v51, %v4121_v27 }
 0x986   : > { %2971 = vst [vmem:[#allocation3 + $0x60] sm:$0x33] %v2967_v61  ;;  %v4132_v41 = vor.u32 %v4281_v32, %v4131_v6  ;;  %v4136_v44 = vor.u32 %v4280_v37, %v4133_v13  ;;  %v4150_v27 = vld [vmem:[%s4371_s20 + $0x48] sm:$0x3f] }
 0x987   : > { %v4275_v61 = vld [vmem:[#allocation3 + $0x20] sm:$0xf0] }
 0x989   : > { %v2657_v57 = vpop.permute.xlu1 %2656  ;;  %v2984_v58 = vpop.permute.xlu0 %2983 }
 0x98a   : > { %v2659_v35 = vrot.slane %v2657_v57, 4  ;;  %v2986_v60 = vrot.slane %v2984_v58, 4  ;;  %v2698_v0 = vpop.permute.xlu2 %2697 }
 0x98b   : > { %v2700_v62 = vrot.slane %v2698_v0, 4 }
 0x98c   : > { %v2662_v42 = vsel %vm231_vm7, %v2657_v57, %v2659_v35  ;;  %v2987_v9 = vsel %vm229_vm3, %v2985_v59, %v2986_v60  ;;  %v2989_v10 = vsel %vm403_vm8, %v2984_v58, %v2986_v60  ;;  %v4109_v57 = vld [vmem:[#allocation3 + $0x24] sm:$0xf0]  ;;  %v4276_v58 = vld [vmem:[#allocation3 + $0x28] sm:$0xf0]  ;;  %v4274_v60 = vld [vmem:[#allocation3 + $0x1c] sm:$0xf] }
 0x98d   : > { %2666 = vst [vmem:[#allocation3 + $0x8] sm:$0x3] %v2662_v42  ;;  %v2988_v12 = vsel %vm403_vm8, %v2982_v34, %v2987_v9  ;;  %v2703_v8 = vsel %vm254_vm5, %v2698_v0, %v2700_v62  ;;  %v4112_v9 = vor.u32 %v4274_v60, %v4109_v57 }
 0x98e   : > { %2992 = vst [vmem:[#allocation3 + $0x60] sm:$0xcc] %v2988_v12 }
 0x98f   : > { %2993 = vst [vmem:[#allocation3 + $0x68] sm:$0xc] %v2989_v10 }
 0x990   : > { %2707 = vst [vmem:[#allocation3 + $0x14] sm:$0x3] %v2703_v8 }
 0x991   : > { %v2696_v14 = vpop.permute.xlu1 %2695  ;;  %v2655_v16 = vpop.permute.xlu0 %2654 }
 0x992   : > { %v2699_v17 = vrot.slane %v2696_v14, 4  ;;  %v2658_v3 = vrot.slane %v2655_v16, 4 }
 0x994   : > { %v2701_v7 = vsel %vm229_vm3, %v2699_v17, %v2700_v62  ;;  %v2660_v15 = vsel %vm229_vm3, %v2658_v3, %v2659_v35  ;;  %v4107_v35 = vld [vmem:[#allocation3 + $0x18] sm:$0xf]  ;;  %v4115_v62 = vld [vmem:[#allocation3 + $0x20] sm:$0xf] }
 0x995   : > { %v2702_v19 = vsel %vm254_vm5, %v2696_v14, %v2701_v7  ;;  %v2661_v20 = vsel %vm231_vm7, %v2655_v16, %v2660_v15  ;;  %v3012_v1 = vld [vmem:[#allocation3 + $0x60] sm:$0xff]  ;;  %v4108_v42 = vor.u32 %v4275_v61, %v4107_v35  ;;  %v4116_v10 = vor.u32 %v4276_v58, %v4115_v62 }
 0x996   : > { %2706 = vst [vmem:[#allocation3 + $0xc] sm:$0x33] %v2702_v19  ;;  %v3013_v2 = vld [vmem:[#allocation3 + $0x68] sm:$0xf]  ;;  %v3056_v21 = vunpack.c.l.b16 %v3012_v1  ;;  %v3057_v18 = vunpack.c.h.b16 %v3012_v1  ;;  %v4092_v17 = vld [vmem:[%s5330_s2 + $0x14] sm:$0xf] }
 0x997   : > { %2665 = vst [vmem:[#allocation3] sm:$0x33] %v2661_v20  ;;  %v3058_v54 = vunpack.c.l.b16 %v3013_v2 }
 0x998   : > { %v3071_v22 = vpack.c.b16 %v3056_v21, %v3056_v21  ;;  %v3072_v23 = vpack.c.b16 %v3057_v18, %v3057_v18 }
 0x999   : > { %v2719_v26 = vpop.permute.xlu1 %2718  ;;  %v2678_v30 = vpop.permute.xlu0 %2677  ;;  %v3073_v31 = vpack.c.b16 %v3058_v54, %v3058_v54 }
 0x99a   : > { %v2721_v11 = vrot.slane %v2719_v26, 4  ;;  %v2680_v28 = vrot.slane %v2678_v30, 4  ;;  %v3090_v25 = vsel %vm229_vm3, %v3071_v22, 0  ;;  %v3093_v48 = vsel %vm229_vm3, %v3072_v23, 0 }
 0x99b   : > { %v3096_v29 = vsel %vm229_vm3, %v3073_v31, 0  ;;  %3101 = vmatpush.bf16.msrb.mxu3 %v3090_v25  ;;  %3114 = vmatpush.bf16.msra.mxu0 %v3093_v48  ;;  %v4146_v48 = vld [vmem:[%s4371_s20 + $0x46] sm:$0xff] }
 0x99c   : > { %v2724_v34 = vsel %vm254_vm5, %v2719_v26, %v2721_v11  ;;  %v2681_v46 = vsel %vm229_vm3, %v2679_v24, %v2680_v28  ;;  %v2683_v36 = vsel %vm231_vm7, %v2678_v30, %v2680_v28  ;;  %3127 = vmatpush.bf16.msra.mxu1 %v3096_v29 }
 0x99d   : > { %2728 = vst [vmem:[#allocation3 + $0x14] sm:$0xc] %v2724_v34  ;;  %v2682_v38 = vsel %vm231_vm7, %v2676_v55, %v2681_v46  ;;  %v4128_v55 = vor.u32 %v4279_v49, %v4127_v47 }
 0x99e   : > { %2687 = vst [vmem:[#allocation3 + $0x8] sm:$0xc] %v2683_v36 }
 0x99f   : > { %2686 = vst [vmem:[#allocation3] sm:$0xcc] %v2682_v38  ;;  %3102 = vmatpush.bf16.msrb.mxu3 %v4132_v41  ;;  %3115 = vmatpush.bf16.msra.mxu0 %v4136_v44 }
 0x9a0   : > { %3128 = vmatpush.bf16.msra.mxu1 %v4140_v43 }
 0x9a1   : > { %v2717_v52 = vpop.permute.xlu0 %2716 }
 0x9a2   : > { %v2720_v56 = vrot.slane %v2717_v52, 4 }
 0x9a3   : > { %3103 = vmatpush.bf16.msrb.mxu3 %v4120_v53  ;;  %3116 = vmatpush.bf16.msra.mxu0 %v4124_v39  ;;  %v4151_v53 = vld [vmem:[%s4371_s20 + $0x48] sm:$0xff] }
 0x9a4   : > { %v2722_v59 = vsel %vm229_vm3, %v2720_v56, %v2721_v11  ;;  %3129 = vmatpush.bf16.msra.mxu1 %v4128_v55  ;;  %v4273_v8 = vld [vmem:[#allocation3 + $0x10] sm:$0xf0] }
 0x9a5   : > { %v2723_v0 = vsel %vm254_vm5, %v2717_v52, %v2722_v59  ;;  %v4103_v12 = vld [vmem:[#allocation3 + $0x8] sm:$0xf] }
 0x9a6   : > { %2727 = vst [vmem:[#allocation3 + $0xc] sm:$0xcc] %v2723_v0  ;;  %v4104_v14 = vor.u32 %v4273_v8, %v4103_v12  ;;  %v4095_v16 = vld [vmem:[#allocation3] sm:$0xf]  ;;  %v4271_v7 = vld [vmem:[#allocation3 + $0x4] sm:$0xf] }
 0x9a7   : > { %3104 = vmatpush.bf16.msrb.mxu3 %v4108_v42  ;;  %3117 = vmatpush.bf16.msra.mxu0 %v4112_v9 }
 0x9a8   : > { %3130 = vmatpush.bf16.msra.mxu1 %v4116_v10 }
 0x9ac   : > { %3131 = vmatpush.bf16.msra.mxu1 %v4104_v14 }
 0x9ad   : > { %v4272_v3 = vld [vmem:[#allocation3 + $0x8] sm:$0xf0]  ;;  %v4097_v15 = vld [vmem:[#allocation3 + $0xc] sm:$0xf0] }
 0x9ae   : > { %v4096_v19 = vor.u32 %v4272_v3, %v4095_v16  ;;  %v4100_v20 = vor.u32 %v4271_v7, %v4097_v15 }
 0x9af   : > { %4143 = vmatmul.msk.bf16.vlgmr.msra.gmra.mxu1 %vm503_vm9, %v4092_v17 }
 0x9b0   : > { %3105 = vmatpush.bf16.msrb.mxu3 %v4096_v19  ;;  %3118 = vmatpush.bf16.msra.mxu0 %v4100_v20 }
 0x9b3   : > { %4141 = vmatmul.msk.bf16.vlgmr.msrb.gmra.mxu3 %vm503_vm9, %v4092_v17  ;;  %4142 = vmatmul.msk.bf16.vlgmr.msra.gmra.mxu0 %vm503_vm9, %v4092_v17 }
 0xa2c   : > { %v3133_v1 = vpop.f32.mrf.mxu1 }
 0xa2d   : > { %v3139_v2 = vmax.f32 %v3133_v1, 0.0 }
 0xa2f   : > { %4145 = vst [vmem:[%s4464_s10 + $0x44] sm:$0xf] %v3139_v2  ;;  %v3150_v21 = vmul.f32 %v3139_v2, %v4459_v63 }
 0xa30   : > { %v3120_v18 = vpop.f32.mrf.mxu0 }
 0xa31   : > { %v3152_v54 = vpack.c.bf16 %v3150_v21, %v3150_v21  ;;  %v3138_v22 = vmax.f32 %v3120_v18, 0.0 }
 0xa33   : > { %3156 = vst.sshfl [vmem:[#allocation1 + $0x8] sm:$0xff pattern:$0x75643120] %v3152_v54  ;;  %v3142_v24 = vrot.slane %v3138_v22, 4  ;;  %v3149_v30 = vmul.f32 %v3138_v22, %v4470_v5 }
 0xa34   : > { %v3135_v23 = vpop.f32.mrf.mxu1 }
 0xa36   : > { %v3107_v26 = vpop.f32.mrf.mxu3 }
 0xa37   : > { %v3137_v31 = vmax.f32 %v3107_v26, 0.0 }
 0xa38   : > { %v3122_v32 = vpop.f32.mrf.mxu0 }
 0xa39   : > { %v3143_v11 = vsel %vm229_vm3, %v3137_v31, %v3142_v24  ;;  %v3148_v28 = vmul.f32 %v3137_v31, %v4468_v4 }
 0xa3a   : > { %4144 = vst [vmem:[%s4464_s10 + $0x3c] sm:$0xff] %v3143_v11 }
 0xa3b   : > { %v3151_v25 = vpack.c.bf16 %v3149_v30, %v3148_v28 }
 0xa3d   : > { %3154 = vst.sshfl [vmem:[#allocation1] sm:$0xff pattern:$0x75643120] %v3151_v25 }
 0xa3e   : > { %v3109_v63 = vpop.f32.mrf.mxu3  ;;  %3164 = vst [vmem:[#allocation1] ss:$2 sm:$0xff] %v4146_v48 }
 0xa44   : > { %v3158_v13 = vld [vmem:[#allocation1 + $0x1] ss:$2 sm:$0xff] }
 0xa45   : > { %3160 = vst [vmem:[#allocation2 + $0x2] sm:$0x3f] %v3158_v13  ;;  %v5184_v29 = vld.sshfl [vmem:[#allocation1] sm:$0xff pattern:$0x75643120] }
 0xa46   : > { %v5186_v33 = vld.sshfl [vmem:[#allocation1 + $0x8] sm:$0xff pattern:$0x75643120] }
 0xa4c   : > { %v3182_v34 = vld [vmem:[#allocation2] sm:$0xff] }
 0xa4d   : > { %3185 = vst [vmem:[#allocation1 + $0x1] ss:$2 sm:$0xff] %v3182_v34  ;;  %v3335_v51 = vld [vmem:[#allocation2 + $0x2] sm:$0x3f] }
 0xa4e   : > { %v3365_v55 = vld [vmem:[#allocation2 + $0x2] sm:$0xff] }
 0xa54   : > { %v5188_v5 = vld.sshfl [vmem:[#allocation1] sm:$0xff pattern:$0x75643120]  ;;  %v5190_v46 = vld.sshfl [vmem:[#allocation1 + $0x8] sm:$0xff pattern:$0x75643120] }
 0xa55   : > { %3205 = vst [vmem:[#allocation1] ss:$2 sm:$0xff] %v4146_v48 }
 0xa5c   : > { %v5192_v4 = vld.sshfl [vmem:[#allocation1] sm:$0xff pattern:$0x75643120]  ;;  %v5194_v36 = vld.sshfl [vmem:[#allocation1 + $0x8] sm:$0xff pattern:$0x75643120] }
 0xa5d   : > { %3226 = vst [vmem:[#allocation1 + $0x1] ss:$2 sm:$0xff] %v3182_v34 }
 0xa64   : > { %v5196_v6 = vld.sshfl [vmem:[#allocation1] sm:$0xff pattern:$0x75643120]  ;;  %v5198_v37 = vld.sshfl [vmem:[#allocation1 + $0x8] sm:$0xff pattern:$0x75643120] }
 0xa65   : > { %3246 = vst [vmem:[#allocation1] ss:$2 sm:$0xff] %v4146_v48 }
 0xa6c   : > { %v3249_v38 = vld.sshfl [vmem:[#allocation1 + $0x8] sm:$0xff pattern:$0x75643120]  ;;  %v3247_v40 = vld.sshfl [vmem:[#allocation1] sm:$0xff pattern:$0x75643120] }
 0xa6d   : > { %3253 = vrot.lane.b32.xlu1 %v3249_v38, %s4323_s21  ;;  %3251 = vrot.lane.b32.xlu0 %v3247_v40, %s4323_s21  ;;  %3267 = vst [vmem:[#allocation1 + $0x1] ss:$2 sm:$0xff] %v3182_v34 }
 0xa74   : > { %v3270_v41 = vld.sshfl [vmem:[#allocation1 + $0x8] sm:$0xff pattern:$0x75643120]  ;;  %v3268_v44 = vld.sshfl [vmem:[#allocation1] sm:$0xff pattern:$0x75643120] }
 0xa75   : > { %3274 = vrot.lane.b32.xlu0 %v3270_v41, %s4323_s21  ;;  %3272 = vrot.lane.b32.xlu2 %v3268_v44, %s4323_s21  ;;  %3287 = vst [vmem:[#allocation1] ss:$2 sm:$0xff] %v4146_v48 }
 0xa7c   : > { %v3290_v43 = vld.sshfl [vmem:[#allocation1 + $0x8] sm:$0xff pattern:$0x75643120]  ;;  %v3288_v45 = vld.sshfl [vmem:[#allocation1] sm:$0xff pattern:$0x75643120] }
 0xa7d   : > { %3294 = vrot.lane.b32.xlu2 %v3290_v43, %s4324_s22  ;;  %3292 = vrot.lane.b32.xlu1 %v3288_v45, %s4324_s22  ;;  %3308 = vst [vmem:[#allocation1 + $0x1] ss:$2 sm:$0xff] %v3182_v34 }
 0xa84   : > { %v3309_v49 = vld.sshfl [vmem:[#allocation1] sm:$0xff pattern:$0x75643120]  ;;  %v5207_v50 = vld.sshfl [vmem:[#allocation1 + $0x8] sm:$0xff pattern:$0x75643120] }
 0xa85   : > { %3313 = vrot.lane.b32.xlu0 %v3309_v49, %s4324_s22  ;;  %3328 = vst [vmem:[#allocation1] ss:$2 sm:$0xff] %v4150_v27 }
 0xa8c   : > { %v3329_v52 = vld.sshfl [vmem:[#allocation1] sm:$0xff pattern:$0x75643120]  ;;  %v3330_v47 = vld.sshfl [vmem:[#allocation1 + $0x8] sm:$0xff pattern:$0x75643120] }
 0xa8d   : > { %3338 = vst [vmem:[#allocation1 + $0x1] ss:$2 sm:$0xff] %v3335_v51 }
 0xa8e   : > { %3333 = vst [vmem:[#allocation3 + $0x30] sm:$0x33] %v3329_v52 }
 0xa8f   : > { %3334 = vst [vmem:[#allocation3 + $0x38] sm:$0x3] %v3330_v47 }
 0xa94   : > { %v3339_v39 = vld.sshfl [vmem:[#allocation1] sm:$0xff pattern:$0x75643120]  ;;  %v3340_v56 = vld.sshfl [vmem:[#allocation1 + $0x8] sm:$0xff pattern:$0x75643120] }
 0xa95   : > { %3343 = vst [vmem:[#allocation3 + $0x30] sm:$0xcc] %v3339_v39 }
 0xa96   : > { %3344 = vst [vmem:[#allocation3 + $0x38] sm:$0xc] %v3340_v56 }
 0xa97   : > { %3347 = vst [vmem:[#allocation1] ss:$2 sm:$0xff] %v4151_v53 }
 0xa9e   : > { %v3350_v61 = vld.sshfl [vmem:[#allocation1 + $0x8] sm:$0xff pattern:$0x75643120]  ;;  %v3348_v57 = vld.sshfl [vmem:[#allocation1] sm:$0xff pattern:$0x75643120] }
 0xa9f   : > { %3354 = vrot.lane.b32.xlu0 %v3350_v61, %s4325_s23  ;;  %3352 = vrot.lane.b32.xlu2 %v3348_v57, %s4325_s23  ;;  %3368 = vst [vmem:[#allocation1 + $0x1] ss:$2 sm:$0xff] %v3365_v55 }
 0xaa6   : > { %v3371_v58 = vld.sshfl [vmem:[#allocation1 + $0x8] sm:$0xff pattern:$0x75643120]  ;;  %v3369_v59 = vld.sshfl [vmem:[#allocation1] sm:$0xff pattern:$0x75643120] }
 0xaa7   : > { %3375 = vrot.lane.b32.xlu2 %v3371_v58, %s4325_s23  ;;  %3373 = vrot.lane.b32.xlu1 %v3369_v59, %s4325_s23  ;;  %3388 = vst [vmem:[#allocation1] ss:$2 sm:$0xff] %v4151_v53 }
 0xaae   : > { %v3391_v35 = vld.sshfl [vmem:[#allocation1 + $0x8] sm:$0xff pattern:$0x75643120]  ;;  %v3389_v60 = vld.sshfl [vmem:[#allocation1] sm:$0xff pattern:$0x75643120] }
 0xaaf   : > { %3395 = vrot.lane.b32.xlu1 %v3391_v35, %s4326_s24  ;;  %3393 = vrot.lane.b32.xlu0 %v3389_v60, %s4326_s24  ;;  %3409 = vst [vmem:[#allocation1 + $0x1] ss:$2 sm:$0xff] %v3365_v55 }
 0xab6   : > { %v3412_v0 = vld.sshfl [vmem:[#allocation1 + $0x8] sm:$0xff pattern:$0x75643120]  ;;  %v3410_v62 = vld.sshfl [vmem:[#allocation1] sm:$0xff pattern:$0x75643120] }
 0xab7   : > { %3416 = vrot.lane.b32.xlu0 %v3412_v0, %s4326_s24  ;;  %3414 = vrot.lane.b32.xlu2 %v3410_v62, %s4326_s24  ;;  %3429 = vst [vmem:[#allocation1] ss:$2 sm:$0xff] %v4151_v53 }
 0xabe   : > { %v3432_v42 = vld.sshfl [vmem:[#allocation1 + $0x8] sm:$0xff pattern:$0x75643120]  ;;  %v3430_v9 = vld.sshfl [vmem:[#allocation1] sm:$0xff pattern:$0x75643120] }
 0xabf   : > { %3436 = vrot.lane.b32.xlu2 %v3432_v42, %s4327_s25  ;;  %3434 = vrot.lane.b32.xlu1 %v3430_v9, %s4327_s25  ;;  %3450 = vst [vmem:[#allocation1 + $0x1] ss:$2 sm:$0xff] %v3365_v55 }
 0xac6   : > { %v3453_v10 = vld.sshfl [vmem:[#allocation1 + $0x8] sm:$0xff pattern:$0x75643120]  ;;  %v3451_v12 = vld.sshfl [vmem:[#allocation1] sm:$0xff pattern:$0x75643120] }
 0xac7   : > { %3457 = vrot.lane.b32.xlu1 %v3453_v10, %s4327_s25  ;;  %3455 = vrot.lane.b32.xlu0 %v3451_v12, %s4327_s25  ;;  %3470 = vst [vmem:[#allocation1] ss:$2 sm:$0xff] %v4151_v53 }
 0xace   : > { %v3473_v8 = vld.sshfl [vmem:[#allocation1 + $0x8] sm:$0xff pattern:$0x75643120]  ;;  %v3471_v14 = vld.sshfl [vmem:[#allocation1] sm:$0xff pattern:$0x75643120] }
 0xacf   : > { %3477 = vrot.lane.b32.xlu0 %v3473_v8, %s4330_s28  ;;  %3475 = vrot.lane.b32.xlu2 %v3471_v14, %s4330_s28  ;;  %v3273_v16 = vpop.permute.xlu2 %3272  ;;  %3491 = vst [vmem:[#allocation1 + $0x1] ss:$2 sm:$0xff] %v3365_v55 }
 0xad0   : > { %v3276_v24 = vrot.slane %v3273_v16, 4 }
 0xad6   : > { %v3494_v17 = vld.sshfl [vmem:[#allocation1 + $0x8] sm:$0xff pattern:$0x75643120]  ;;  %v3492_v3 = vld.sshfl [vmem:[#allocation1] sm:$0xff pattern:$0x75643120] }
 0xad7   : > { %3171 = vrot.lane.b32.xlu0 %v5186_v33, %s4329_s27  ;;  %3498 = vrot.lane.b32.xlu2 %v3494_v17, %s4330_s28  ;;  %v3295_v7 = vpop.permute.xlu2 %3294 }
 0xad8   : > { %3496 = vrot.lane.b32.xlu1 %v3492_v3, %s4330_s28  ;;  %v3297_v15 = vrot.slane %v3295_v7, 4 }
 0xada   : > { %v3300_v19 = vsel %vm300_vm0, %v3295_v7, %v3297_v15 }
 0xadb   : > { %3304 = vst [vmem:[#allocation3 + $0x2c] sm:$0x3] %v3300_v19 }
 0xadf   : > { %3210 = vrot.lane.b32.xlu0 %v5192_v4, %s4328_s26  ;;  %3169 = vrot.lane.b32.xlu2 %v5184_v29, %s4329_s27  ;;  %v3254_v20 = vpop.permute.xlu1 %3253  ;;  %v3252_v1 = vpop.permute.xlu0 %3251 }
 0xae0   : > { %3315 = vrot.lane.b32.xlu1 %v5207_v50, %s4324_s22  ;;  %v3256_v2 = vrot.slane %v3254_v20, 4  ;;  %v3255_v21 = vrot.slane %v3252_v1, 4  ;;  %s4297_s22 = smul.u32 12, %s5334_s16 }
 0xae2   : > { %v3259_v18 = vsel %vm277_vm1, %v3254_v20, %v3256_v2  ;;  %v3257_v54 = vsel %vm229_vm3, %v3255_v21, %v3256_v2  ;;  %s210_s25 = scalar_lea.vmem %s5332_s4, %s4297_s22 }
 0xae3   : > { %3263 = vst [vmem:[#allocation3 + $0x20] sm:$0x3] %v3259_v18  ;;  %v3258_v22 = vsel %vm277_vm1, %v3252_v1, %v3257_v54 }
 0xae4   : > { %3262 = vst [vmem:[#allocation3 + $0x18] sm:$0x33] %v3258_v22 }
 0xae7   : > { %3233 = vrot.lane.b32.xlu0 %v5198_v37, %s4328_s26  ;;  %3192 = vrot.lane.b32.xlu2 %v5190_v46, %s4329_s27  ;;  %v3275_v23 = vpop.permute.xlu0 %3274 }
 0xae8   : > { %3190 = vrot.lane.b32.xlu1 %v5188_v5, %s4329_s27  ;;  %v3277_v26 = vrot.slane %v3275_v23, 4 }
 0xaea   : > { %v3278_v30 = vsel %vm229_vm3, %v3276_v24, %v3277_v26  ;;  %v3280_v31 = vsel %vm277_vm1, %v3275_v23, %v3277_v26 }
 0xaeb   : > { %v3279_v32 = vsel %vm277_vm1, %v3273_v16, %v3278_v30  ;;  %3284 = vst [vmem:[#allocation3 + $0x20] sm:$0xc] %v3280_v31 }
 0xaec   : > { %3283 = vst [vmem:[#allocation3 + $0x18] sm:$0xcc] %v3279_v32 }
 0xaef   : > { %3231 = vrot.lane.b32.xlu2 %v5196_v6, %s4328_s26  ;;  %v3293_v11 = vpop.permute.xlu1 %3292 }
 0xaf0   : > { %3212 = vrot.lane.b32.xlu1 %v5194_v36, %s4328_s26  ;;  %v3296_v28 = vrot.slane %v3293_v11, 4 }
 0xaf2   : > { %v3298_v25 = vsel %vm229_vm3, %v3296_v28, %v3297_v15 }
 0xaf3   : > { %v3299_v48 = vsel %vm300_vm0, %v3293_v11, %v3298_v25 }
 0xaf4   : > { %3303 = vst [vmem:[#allocation3 + $0x24] sm:$0x33] %v3299_v48 }
 0xaf7   : > { %v5255_v34 = vpop.permute.xlu0 %3313 }
 0xaf9   : > { %v3353_v63 = vpop.permute.xlu2 %3352 }
 0xafa   : > { %v3356_v4 = vrot.slane %v3353_v63, 4 }
 0xb01   : > { %v3376_v13 = vpop.permute.xlu2 %3375 }
 0xb02   : > { %v3378_v29 = vrot.slane %v3376_v13, 4 }
 0xb04   : > { %v3381_v33 = vsel %vm334_vm2, %v3376_v13, %v3378_v29 }
 0xb05   : > { %3385 = vst [vmem:[#allocation3 + $0x44] sm:$0xc] %v3381_v33 }
 0xb11   : > { %v3355_v5 = vpop.permute.xlu0 %3354  ;;  %v3415_v46 = vpop.permute.xlu2 %3414 }
 0xb12   : > { %v3357_v6 = vrot.slane %v3355_v5, 4  ;;  %v3418_v57 = vrot.slane %v3415_v46, 4 }
 0xb14   : > { %v3358_v36 = vsel %vm229_vm3, %v3356_v4, %v3357_v6  ;;  %v3360_v37 = vsel %vm334_vm2, %v3355_v5, %v3357_v6 }
 0xb15   : > { %v3359_v38 = vsel %vm334_vm2, %v3353_v63, %v3358_v36  ;;  %3364 = vst [vmem:[#allocation3 + $0x44] sm:$0x3] %v3360_v37 }
 0xb16   : > { %3363 = vst [vmem:[#allocation3 + $0x3c] sm:$0x33] %v3359_v38  ;;  %v3317_v38 = vrot.slane %v5255_v34, 4 }
 0xb19   : > { %v3374_v40 = vpop.permute.xlu1 %3373  ;;  %v3437_v41 = vpop.permute.xlu2 %3436 }
 0xb1a   : > { %v3377_v44 = vrot.slane %v3374_v40, 4  ;;  %v3439_v43 = vrot.slane %v3437_v41, 4 }
 0xb1c   : > { %v3379_v45 = vsel %vm229_vm3, %v3377_v44, %v3378_v29  ;;  %v3442_v27 = vsel %vm380_vm6, %v3437_v41, %v3439_v43 }
 0xb1d   : > { %v3380_v49 = vsel %vm334_vm2, %v3374_v40, %v3379_v45  ;;  %3446 = vst [vmem:[#allocation3 + $0x5c] sm:$0x3] %v3442_v27  ;;  %v4291_v27 = vld [vmem:[#allocation3 + $0x40] sm:$0xf0] }
 0xb1e   : > { %3384 = vst [vmem:[#allocation3 + $0x3c] sm:$0xcc] %v3380_v49 }
 0xb21   : > { %v3396_v50 = vpop.permute.xlu1 %3395  ;;  %v3394_v51 = vpop.permute.xlu0 %3393 }
 0xb22   : > { %v3398_v52 = vrot.slane %v3396_v50, 4  ;;  %v3397_v47 = vrot.slane %v3394_v51, 4 }
 0xb24   : > { %v3401_v53 = vsel %vm357_vm4, %v3396_v50, %v3398_v52  ;;  %v3399_v39 = vsel %vm229_vm3, %v3397_v47, %v3398_v52  ;;  %v4190_v52 = vld [vmem:[#allocation3 + $0x38] sm:$0xf] }
 0xb25   : > { %3405 = vst [vmem:[#allocation3 + $0x50] sm:$0x3] %v3401_v53  ;;  %v3400_v56 = vsel %vm357_vm4, %v3394_v51, %v3399_v39  ;;  %v4191_v39 = vor.u32 %v4291_v27, %v4190_v52 }
 0xb26   : > { %3404 = vst [vmem:[#allocation3 + $0x48] sm:$0x33] %v3400_v56 }
 0xb29   : > { %v3417_v55 = vpop.permute.xlu0 %3416  ;;  %v3476_v61 = vpop.permute.xlu2 %3475 }
 0xb2a   : > { %v3419_v58 = vrot.slane %v3417_v55, 4  ;;  %v3479_v2 = vrot.slane %v3476_v61, 4 }
 0xb2c   : > { %v3420_v59 = vsel %vm229_vm3, %v3418_v57, %v3419_v58  ;;  %v3422_v35 = vsel %vm357_vm4, %v3417_v55, %v3419_v58 }
 0xb2d   : > { %v3421_v60 = vsel %vm357_vm4, %v3415_v46, %v3420_v59  ;;  %3426 = vst [vmem:[#allocation3 + $0x50] sm:$0xc] %v3422_v35 }
 0xb2e   : > { %3425 = vst [vmem:[#allocation3 + $0x48] sm:$0xcc] %v3421_v60 }
 0xb31   : > { %v3435_v0 = vpop.permute.xlu1 %3434  ;;  %v3499_v62 = vpop.permute.xlu2 %3498 }
 0xb32   : > { %v3438_v42 = vrot.slane %v3435_v0, 4  ;;  %v3501_v9 = vrot.slane %v3499_v62, 4 }
 0xb34   : > { %v3440_v10 = vsel %vm229_vm3, %v3438_v42, %v3439_v43  ;;  %v3504_v12 = vsel %vm403_vm8, %v3499_v62, %v3501_v9  ;;  %v4202_v41 = vld [vmem:[#allocation3 + $0x50] sm:$0xf] }
 0xb35   : > { %v3441_v8 = vsel %vm380_vm6, %v3435_v0, %v3440_v10  ;;  %3508 = vst [vmem:[#allocation3 + $0x68] sm:$0xc] %v3504_v12  ;;  %v4194_v10 = vld [vmem:[#allocation3 + $0x48] sm:$0xf]  ;;  %v4178_v12 = vld [vmem:[#allocation3 + $0x20] sm:$0xf] }
 0xb36   : > { %3445 = vst [vmem:[#allocation3 + $0x54] sm:$0x33] %v3441_v8 }
 0xb39   : > { %v3458_v14 = vpop.permute.xlu1 %3457  ;;  %v3456_v16 = vpop.permute.xlu0 %3455 }
 0xb3a   : > { %v3460_v17 = vrot.slane %v3458_v14, 4  ;;  %v3459_v3 = vrot.slane %v3456_v16, 4  ;;  %v3170_v7 = vpop.permute.xlu2 %3169 }
 0xb3b   : > { %v3173_v31 = vrot.slane %v3170_v7, 4 }
 0xb3c   : > { %v3463_v15 = vsel %vm380_vm6, %v3458_v14, %v3460_v17  ;;  %v3461_v19 = vsel %vm229_vm3, %v3459_v3, %v3460_v17 }
 0xb3d   : > { %3467 = vst [vmem:[#allocation3 + $0x5c] sm:$0xc] %v3463_v15  ;;  %v3462_v20 = vsel %vm380_vm6, %v3456_v16, %v3461_v19  ;;  %v4292_v16 = vld [vmem:[#allocation3 + $0x4c] sm:$0xf] }
 0xb3e   : > { %3466 = vst [vmem:[#allocation3 + $0x54] sm:$0xcc] %v3462_v20  ;;  %v4290_v20 = vld [vmem:[#allocation3 + $0x38] sm:$0xf0] }
 0xb41   : > { %v3478_v1 = vpop.permute.xlu0 %3477 }
 0xb42   : > { %v3480_v21 = vrot.slane %v3478_v1, 4  ;;  %v5275_v18 = vpop.permute.xlu2 %3192 }
 0xb43   : > { %v3195_v54 = vrot.slane %v5275_v18, 4 }
 0xb44   : > { %v3481_v22 = vsel %vm229_vm3, %v3479_v2, %v3480_v21  ;;  %v3483_v23 = vsel %vm403_vm8, %v3478_v1, %v3480_v21  ;;  %v4294_v36 = vld [vmem:[#allocation3 + $0x58] sm:$0xf0]  ;;  %v4184_v1 = vld [vmem:[#allocation3 + $0x3c] sm:$0xf0]  ;;  %v4182_v2 = vld [vmem:[#allocation3 + $0x30] sm:$0xf] }
 0xb45   : > { %v3482_v24 = vsel %vm403_vm8, %v3476_v61, %v3481_v22  ;;  %3487 = vst [vmem:[#allocation3 + $0x68] sm:$0x3] %v3483_v23  ;;  %v3198_v26 = vsel %vm231_vm7, %v5275_v18, %v3195_v54  ;;  %v4203_v44 = vor.u32 %v4294_v36, %v4202_v41  ;;  %v4293_v35 = vld [vmem:[#allocation3 + $0x50] sm:$0xf0]  ;;  %v4196_v62 = vld [vmem:[#allocation3 + $0x54] sm:$0xf0]  ;;  %v4183_v18 = vor.u32 %v4290_v20, %v4182_v2 }
 0xb46   : > { %3486 = vst [vmem:[#allocation3 + $0x60] sm:$0x33] %v3482_v24  ;;  %v4199_v15 = vor.u32 %v4292_v16, %v4196_v62  ;;  %v4289_v21 = vld [vmem:[#allocation3 + $0x34] sm:$0xf] }
 0xb47   : > { %3202 = vst [vmem:[#allocation3 + $0x8] sm:$0xc] %v3198_v26  ;;  %v4187_v23 = vor.u32 %v4289_v21, %v4184_v1 }
 0xb49   : > { %v3172_v30 = vpop.permute.xlu0 %3171 }
 0xb4a   : > { %v3174_v32 = vrot.slane %v3172_v30, 4  ;;  %v3497_v11 = vpop.permute.xlu1 %3496  ;;  %v3232_v51 = vpop.permute.xlu2 %3231 }
 0xb4b   : > { %v3500_v28 = vrot.slane %v3497_v11, 4  ;;  %v3235_v57 = vrot.slane %v3232_v51, 4 }
 0xb4c   : > { %v3175_v25 = vsel %vm229_vm3, %v3173_v31, %v3174_v32  ;;  %v3177_v48 = vsel %vm231_vm7, %v3172_v30, %v3174_v32  ;;  %v3528_v63 = vld [vmem:[#allocation3 + $0x68] sm:$0xf] }
 0xb4d   : > { %v3176_v13 = vsel %vm231_vm7, %v3170_v7, %v3175_v25  ;;  %3181 = vst [vmem:[#allocation3 + $0x8] sm:$0x3] %v3177_v48  ;;  %v3502_v29 = vsel %vm229_vm3, %v3500_v28, %v3501_v9  ;;  %v3573_v33 = vunpack.c.l.b16 %v3528_v63  ;;  %v4195_v7 = vor.u32 %v4293_v35, %v4194_v10  ;;  %v4286_v28 = vld [vmem:[#allocation3 + $0x1c] sm:$0xf] }
 0xb4e   : > { %3180 = vst [vmem:[#allocation3] sm:$0x33] %v3176_v13  ;;  %v3503_v5 = vsel %vm403_vm8, %v3497_v11, %v3502_v29  ;;  %v4170_v11 = vld [vmem:[#allocation3 + $0x18] sm:$0xf] }
 0xb4f   : > { %3507 = vst [vmem:[#allocation3 + $0x60] sm:$0xcc] %v3503_v5  ;;  %v3588_v46 = vpack.c.b16 %v3573_v33, %v3573_v33 }
 0xb51   : > { %v5290_v4 = vpop.permute.xlu0 %3210  ;;  %v3611_v6 = vsel %vm229_vm3, %v3588_v46, 0 }
 0xb52   : > { %v3316_v37 = vpop.permute.xlu1 %3315  ;;  %3642 = vmatpush.bf16.msrb.mxu0 %v3611_v6 }
 0xb53   : > { %v3318_v40 = vrot.slane %v3316_v37, 4 }
 0xb54   : > { %v4166_v13 = vld [vmem:[#allocation3 + $0x8] sm:$0xf] }
 0xb55   : > { %v3319_v43 = vsel %vm229_vm3, %v3317_v38, %v3318_v40  ;;  %v3321_v45 = vsel %vm300_vm0, %v3316_v37, %v3318_v40 }
 0xb56   : > { %v3320_v49 = vsel %vm300_vm0, %v5255_v34, %v3319_v43  ;;  %3325 = vst [vmem:[#allocation3 + $0x2c] sm:$0xc] %v3321_v45  ;;  %3643 = vmatpush.bf16.msrb.mxu0 %v4203_v44  ;;  %v3527_v50 = vld [vmem:[#allocation3 + $0x60] sm:$0xff] }
 0xb57   : > { %3324 = vst [vmem:[#allocation3 + $0x24] sm:$0xcc] %v3320_v49  ;;  %v3571_v47 = vunpack.c.l.b16 %v3527_v50  ;;  %v3572_v53 = vunpack.c.h.b16 %v3527_v50 }
 0xb59   : > { %v3234_v56 = vpop.permute.xlu0 %3233  ;;  %v3586_v55 = vpack.c.b16 %v3571_v47, %v3571_v47  ;;  %v3587_v61 = vpack.c.b16 %v3572_v53, %v3572_v53 }
 0xb5a   : > { %v3236_v58 = vrot.slane %v3234_v56, 4  ;;  %v3191_v59 = vpop.permute.xlu1 %3190  ;;  %3644 = vmatpush.bf16.msrb.mxu0 %v4191_v39 }
 0xb5b   : > { %v3194_v60 = vrot.slane %v3191_v59, 4  ;;  %v3605_v34 = vsel %vm229_vm3, %v3586_v55, 0  ;;  %v3608_v0 = vsel %vm229_vm3, %v3587_v61, 0 }
 0xb5c   : > { %v3237_v42 = vsel %vm229_vm3, %v3235_v57, %v3236_v58  ;;  %v3239_v9 = vsel %vm254_vm5, %v3234_v56, %v3236_v58  ;;  %3616 = vmatpush.bf16.msra.mxu2 %v3605_v34  ;;  %3629 = vmatpush.bf16.msra.mxu3 %v3608_v0 }
 0xb5d   : > { %v3238_v8 = vsel %vm254_vm5, %v3232_v51, %v3237_v42  ;;  %3243 = vst [vmem:[#allocation3 + $0x14] sm:$0xc] %v3239_v9  ;;  %v3196_v14 = vsel %vm229_vm3, %v3194_v60, %v3195_v54  ;;  %v4288_v17 = vld [vmem:[#allocation3 + $0x28] sm:$0xf0]  ;;  %v3214_v54 = vrot.slane %v5290_v4, 4 }
 0xb5e   : > { %3242 = vst [vmem:[#allocation3 + $0xc] sm:$0xcc] %v3238_v8  ;;  %v3197_v3 = vsel %vm231_vm7, %v3191_v59, %v3196_v14  ;;  %v4179_v19 = vor.u32 %v4288_v17, %v4178_v12  ;;  %v4287_v26 = vld [vmem:[#allocation3 + $0x20] sm:$0xf0]  ;;  %v4172_v30 = vld [vmem:[#allocation3 + $0x24] sm:$0xf0] }
 0xb5f   : > { %3201 = vst [vmem:[#allocation3] sm:$0xcc] %v3197_v3  ;;  %v4171_v48 = vor.u32 %v4287_v26, %v4170_v11  ;;  %v4175_v63 = vor.u32 %v4286_v28, %v4172_v30 }
 0xb60   : > { %3617 = vmatpush.bf16.msra.mxu2 %v4195_v7  ;;  %3630 = vmatpush.bf16.msra.mxu3 %v4199_v15 }
 0xb61   : > { %3645 = vmatpush.bf16.msrb.mxu0 %v4179_v19 }
 0xb62   : > { %v3213_v22 = vpop.permute.xlu1 %3212 }
 0xb63   : > { %v3215_v24 = vrot.slane %v3213_v22, 4 }
 0xb64   : > { %3618 = vmatpush.bf16.msra.mxu2 %v4183_v18  ;;  %3631 = vmatpush.bf16.msra.mxu3 %v4187_v23 }
 0xb65   : > { %v3216_v31 = vsel %vm229_vm3, %v3214_v54, %v3215_v24  ;;  %v3218_v32 = vsel %vm254_vm5, %v3213_v22, %v3215_v24 }
 0xb66   : > { %v3217_v25 = vsel %vm254_vm5, %v5290_v4, %v3216_v31  ;;  %3222 = vst [vmem:[#allocation3 + $0x14] sm:$0x3] %v3218_v32  ;;  %v4158_v33 = vld [vmem:[#allocation3] sm:$0xf]  ;;  %v4283_v6 = vld [vmem:[#allocation3 + $0x4] sm:$0xf] }
 0xb67   : > { %3221 = vst [vmem:[#allocation3 + $0xc] sm:$0x33] %v3217_v25  ;;  %v4155_v4 = vld [vmem:[%s5330_s2 + $0x18] sm:$0xf] }
 0xb68   : > { %3619 = vmatpush.bf16.msra.mxu2 %v4171_v48  ;;  %3632 = vmatpush.bf16.msra.mxu3 %v4175_v63 }
 0xb6d   : > { %v4285_v29 = vld [vmem:[#allocation3 + $0x10] sm:$0xf0] }
 0xb6e   : > { %v4167_v5 = vor.u32 %v4285_v29, %v4166_v13  ;;  %v4284_v46 = vld [vmem:[#allocation3 + $0x8] sm:$0xf0]  ;;  %v4160_v36 = vld [vmem:[#allocation3 + $0xc] sm:$0xf0] }
 0xb6f   : > { %v4159_v37 = vor.u32 %v4284_v46, %v4158_v33  ;;  %v4163_v38 = vor.u32 %v4283_v6, %v4160_v36 }
 0xb70   : > { %3646 = vmatpush.bf16.msrb.mxu0 %v4167_v5 }
 0xb71   : > { %3620 = vmatpush.bf16.msra.mxu2 %v4159_v37  ;;  %3633 = vmatpush.bf16.msra.mxu3 %v4163_v38 }
 0xb73   : > { %4206 = vmatmul.msk.bf16.vlgmr.msrb.gmra.mxu0 %vm503_vm9, %v4155_v4 }
 0xb74   : > { %4204 = vmatmul.msk.bf16.vlgmr.msra.gmra.mxu2 %vm503_vm9, %v4155_v4  ;;  %4205 = vmatmul.msk.bf16.vlgmr.msra.gmra.mxu3 %vm503_vm9, %v4155_v4 }
 0xbf0   : > { %v3648_v40 = vpop.f32.mrf.mxu0 }
 0xbf1   : > { %v3654_v41 = vmax.f32 %v3648_v40, 0.0 }
 0xbf3   : > { %4208 = vst [vmem:[%s4464_s10 + $0x50] sm:$0xf] %v3654_v41 }
 0xbf4   : > { %3666 = vst.sshfl [vmem:[#allocation1 + $0x10] sm:$0xff pattern:$0x75316420] %v3654_v41 }
 0xbf7   : > { %v3622_v44 = vpop.f32.mrf.mxu2  ;;  %v3635_v43 = vpop.f32.mrf.mxu3 }
 0xbf8   : > { %v3652_v45 = vmax.f32 %v3622_v44, 0.0  ;;  %v3653_v27 = vmax.f32 %v3635_v43, 0.0  ;;  %v3650_v49 = vpop.f32.mrf.mxu0 }
 0xbfa   : > { %3664 = vst.sshfl [vmem:[#allocation1] sm:$0xff pattern:$0x75316420] %v3652_v45  ;;  %v3657_v50 = vrot.slane %v3653_v27, 4 }
 0xbfb   : > { %v3670_v51 = vld [vmem:[#allocation1 + $0x11] ss:$2 sm:$0xff]  ;;  %3665 = vst.sshfl [vmem:[#allocation1 + $0x8] sm:$0xff pattern:$0x75316420] %v3653_v27 }
 0xbfc   : > { %3674 = vst [vmem:[%s210_s25 + $0x8] sm:$0xf] %v3670_v51  ;;  %v3658_v52 = vsel %vm229_vm3, %v3652_v45, %v3657_v50 }
 0xbfd   : > { %4207 = vst [vmem:[%s4464_s10 + $0x48] sm:$0xff] %v3658_v52 }
 0xbff   : > { %v3624_v47 = vpop.f32.mrf.mxu2  ;;  %v3637_v53 = vpop.f32.mrf.mxu3 }
 0xc02   : > { %v3668_v39 = vld [vmem:[#allocation1 + $0x1] ss:$2 sm:$0xff] }
 0xc03   : > { %3673 = vst [vmem:[%s210_s25] sm:$0xff] %v3668_v39 }
 0xc04 PF: > { %s15_s15 = sadd.s32 1, %s4321_s15  }
 0xc05   : > { %p12_p4 = scmp.ge.s32.totalorder %s15_s15, 4  }
 0xc07   :  { %14 = sbr.rel (!%p12_p4) target bundleno = 1 (0x1), region = 155 }

</bundles_post_ra>
